<compile_context>
chip_gen: v7x
topology: tpu7x:2x2x1
jax: 0.10.0
libtpu: 0.0.40
codegen_flags: <defaults>
</compile_context>

<pallas_src>
import jax
import jax.numpy as jnp
from jax.experimental import pallas as pl
from jax.experimental.pallas import tpu as pltpu

IMAGE_DIM = 28 * 28 * 1   # 784
HIDDEN = 128
OUT = 1


def _round_up(n, m):
    return ((n + m - 1) // m) * m


def discriminator_kernel(x_ref, w1_ref, b1_ref, w2_ref, b2_ref, o_ref):
    # Cast the streamed f32 x tile to bf16 in-kernel (hidden under the DMA),
    # then run linear1 on the MXU with f32 accumulation: [TB, K] @ [K, 128].
    x_bf16 = x_ref[...].astype(jnp.bfloat16)
    h = jnp.dot(x_bf16, w1_ref[...], preferred_element_type=jnp.float32)
    h = h + b1_ref[...]
    # LeakyReLU(0.01) on the VPU.
    h = jnp.where(h > 0, h, 0.01 * h)
    # linear2 ([TB,128] @ [128,1]) as VPU multiply + XLU lane reduction:
    # avoids an N=1 MXU matmul (weight reload for a single output column).
    z = jnp.sum(h * w2_ref[...], axis=-1, keepdims=True) + b2_ref[0]
    # Sigmoid: exp on the EUP, approximate reciprocal also on the EUP.
    o_ref[...] = pl.reciprocal(1.0 + jnp.exp(-z), approx=True).astype(o_ref.dtype)


def discriminator_forward(x, w1, b1, w2, b2, *, tb=512):
    """x: [B, 784] f32, w1: [784, 128], b1: [1, 128], w2: [128, 1], b2: [1, 1] -> [B, 1] f32."""
    B, K = x.shape
    H = w1.shape[1]

    # Batch tile (multiple of 8 sublanes); pad B up so the grid divides evenly.
    # Padded rows are garbage-in/garbage-out and sliced off at the end.
    TB = min(tb, _round_up(B, 8))
    Bp = _round_up(B, TB)
    if Bp != B:
        x = jnp.pad(x, ((0, Bp - B), (0, 0)))

    # W1 cast to bf16 once in the wrapper (small, VMEM-resident afterwards).
    w1_bf16 = w1.astype(jnp.bfloat16)
    b1_2d = jnp.reshape(b1, (1, H)).astype(jnp.float32)
    w2_row = jnp.reshape(w2, (1, H)).astype(jnp.float32)   # second layer as a row vector
    b2_s = jnp.reshape(b2, (1,)).astype(jnp.float32)       # SMEM scalar

    grid = (Bp // TB,)
    out = pl.pallas_call(
        discriminator_kernel,
        out_shape=jax.ShapeDtypeStruct((Bp, OUT), jnp.float32),
        grid=grid,
        in_specs=[
            pl.BlockSpec((TB, K), lambda i: (i, 0)),            # x: streamed / double-buffered
            pl.BlockSpec((K, H), lambda i: (0, 0)),             # W1 (bf16): resident across steps
            pl.BlockSpec((1, H), lambda i: (0, 0)),             # b1: resident
            pl.BlockSpec((1, H), lambda i: (0, 0)),             # W2 row: resident
            pl.BlockSpec(memory_space=pltpu.MemorySpace.SMEM),  # b2: SMEM scalar
        ],
        out_specs=pl.BlockSpec((TB, OUT), lambda i: (i, 0)),
        compiler_params=pltpu.CompilerParams(
            dimension_semantics=("parallel",),  # batch tiles are independent -> 2 TCs on v7x
        ),
    )(x, w1_bf16, b1_2d, w2_row, b2_s)
    return out[:B]


def init_params(key):
    """Deterministic PyTorch-style init: U(-1/sqrt(fan_in), 1/sqrt(fan_in))."""
    k1, k2, k3, k4 = jax.random.split(key, 4)
    lim1 = 1.0 / jnp.sqrt(jnp.float32(IMAGE_DIM))
    lim2 = 1.0 / jnp.sqrt(jnp.float32(HIDDEN))
    w1 = jax.random.uniform(k1, (IMAGE_DIM, HIDDEN), jnp.float32, -lim1, lim1)
    b1 = jax.random.uniform(k2, (1, HIDDEN), jnp.float32, -lim1, lim1)
    w2 = jax.random.uniform(k3, (HIDDEN, OUT), jnp.float32, -lim2, lim2)
    b2 = jax.random.uniform(k4, (1, OUT), jnp.float32, -lim2, lim2)
    return w1, b1, w2, b2


if __name__ == "__main__":
    key = jax.random.PRNGKey(0)
    kx, kp = jax.random.split(key)

    B = 1024  # two 512-row grid steps -> exercises the batch pipeline
    x = jax.random.normal(kx, (B, IMAGE_DIM), jnp.float32)
    w1, b1, w2, b2 = init_params(kp)

    out = discriminator_forward(x, w1, b1, w2, b2)
    out = jax.block_until_ready(out)

    # Reference check in plain f32 JAX (kernel uses bf16 inputs for the first
    # GEMM with f32 accumulation, so use a bf16-appropriate tolerance).
    h_ref = x @ w1 + b1
    h_ref = jnp.where(h_ref > 0, h_ref, 0.01 * h_ref)
    ref = jax.nn.sigmoid(h_ref @ w2 + b2)

    assert out.shape == (B, OUT)
    assert jnp.allclose(out, ref, atol=1e-2, rtol=0), float(jnp.max(jnp.abs(out - ref)))
    print("KERNEL_OK")
</pallas_src>

<mosaic_0001>
module attributes {stable_mosaic.version = 11 : i64} {
  func.func @discriminator_kernel(%arg0: i32, %arg1: memref<512x784xf32, #tpu.memory_space<vmem>>, %arg2: memref<784x128xbf16, #tpu.memory_space<vmem>>, %arg3: memref<1x128xf32, #tpu.memory_space<vmem>>, %arg4: memref<1x128xf32, #tpu.memory_space<vmem>>, %arg5: memref<1xf32, #tpu.memory_space<smem>>, %arg6: memref<512x1xf32, #tpu.memory_space<vmem>>) attributes {dimension_semantics = [#tpu.dimension_semantics<parallel>], iteration_bounds = array<i64: 2>, scalar_prefetch = 0 : i64, scratch_operands = 0 : i64, tpu.core_type = #tpu.core_type<tc>, window_params = [{transform_indices = @transform_0, window_bounds = array<i64: 512, 784>}, {pipeline_mode = #tpu.pipeline_mode<synchronous>, transform_indices = @transform_1, window_bounds = array<i64: 784, 128>}, {pipeline_mode = #tpu.pipeline_mode<synchronous>, transform_indices = @transform_2, window_bounds = array<i64: 1, 128>}, {pipeline_mode = #tpu.pipeline_mode<synchronous>, transform_indices = @transform_3, window_bounds = array<i64: 1, 128>}, {transform_indices = @transform_4, window_bounds = array<i64: 1>}, {transform_indices = @transform_5, window_bounds = array<i64: 512, 1>}]} {
    %c0 = arith.constant 0 : index
    %c0_0 = arith.constant 0 : index
    %0 = vector.load %arg1[%c0, %c0_0] : memref<512x784xf32, #tpu.memory_space<vmem>>, vector<512x784xf32>
    %1 = arith.truncf %0 : vector<512x784xf32> to vector<512x784xbf16>
    %c0_1 = arith.constant 0 : index
    %c0_2 = arith.constant 0 : index
    %2 = vector.load %arg2[%c0_1, %c0_2] : memref<784x128xbf16, #tpu.memory_space<vmem>>, vector<784x128xbf16>
    %cst = arith.constant dense<0.000000e+00> : vector<512x128xf32>
    %3 = tpu.matmul %1, %2, %cst {dimension_numbers = #tpu.dot_dimension_numbers<[1], [0], [0], [1], [0, 0, 1, 1], [], []>} : vector<512x784xbf16>, vector<784x128xbf16>, vector<512x128xf32> -> vector<512x128xf32>
    %c0_3 = arith.constant 0 : index
    %c0_4 = arith.constant 0 : index
    %4 = vector.load %arg3[%c0_3, %c0_4] : memref<1x128xf32, #tpu.memory_space<vmem>>, vector<1x128xf32>
    %5 = vector.broadcast %4 : vector<1x128xf32> to vector<512x128xf32>
    %6 = arith.addf %3, %5 : vector<512x128xf32>
    %cst_5 = arith.constant 0.000000e+00 : f32
    %7 = vector.broadcast %cst_5 : f32 to vector<512x128xf32>
    %8 = arith.cmpf ogt, %6, %7 : vector<512x128xf32>
    %cst_6 = arith.constant 0.00999999977 : f32
    %9 = vector.broadcast %cst_6 : f32 to vector<512x128xf32>
    %10 = arith.mulf %9, %6 : vector<512x128xf32>
    %11 = arith.select %8, %6, %10 : vector<512x128xi1>, vector<512x128xf32>
    %c0_7 = arith.constant 0 : index
    %c0_8 = arith.constant 0 : index
    %12 = vector.load %arg4[%c0_7, %c0_8] : memref<1x128xf32, #tpu.memory_space<vmem>>, vector<1x128xf32>
    %13 = vector.broadcast %12 : vector<1x128xf32> to vector<512x128xf32>
    %14 = arith.mulf %11, %13 : vector<512x128xf32>
    %cst_9 = arith.constant dense<0.000000e+00> : vector<512xf32>
    %15 = vector.multi_reduction <add>, %14, %cst_9 [1] : vector<512x128xf32> to vector<512xf32>
    %16 = vector.shape_cast %15 : vector<512xf32> to vector<512x1xf32>
    %c0_10 = arith.constant 0 : index
    %17 = memref.load %arg5[%c0_10] : memref<1xf32, #tpu.memory_space<smem>>
    %18 = vector.broadcast %17 : f32 to vector<512x1xf32>
    %19 = arith.addf %16, %18 : vector<512x1xf32>
    %cst_11 = arith.constant 0.000000e+00 : f32
    %20 = vector.broadcast %cst_11 : f32 to vector<512x1xf32>
    %21 = arith.subf %20, %19 : vector<512x1xf32>
    %22 = math.exp %21 : vector<512x1xf32>
    %cst_12 = arith.constant 1.000000e+00 : f32
    %23 = vector.broadcast %cst_12 : f32 to vector<512x1xf32>
    %24 = arith.addf %23, %22 : vector<512x1xf32>
    %25 = tpu.reciprocal %24 {approx = true} : vector<512x1xf32> -> vector<512x1xf32>
    %c0_13 = arith.constant 0 : index
    %c0_14 = arith.constant 0 : index
    %26 = vector.load %arg6[%c0_13, %c0_14] : memref<512x1xf32, #tpu.memory_space<vmem>>, vector<512x1xf32>
    tpu.vector_store %arg6[%c0_13, %c0_14], %25 {strides = array<i32>} : memref<512x1xf32, #tpu.memory_space<vmem>>, vector<512x1xf32>,
    return
  }
  func.func @transform_0(%arg0: i32) -> (i32, i32) {
    %c0_i32 = arith.constant 0 : i32
    %c0_i32_0 = arith.constant 0 : i32
    return %arg0, %c0_i32 : i32, i32
  }
  func.func @transform_1(%arg0: i32) -> (i32, i32) {
    %c0_i32 = arith.constant 0 : i32
    %c0_i32_0 = arith.constant 0 : i32
    %c0_i32_1 = arith.constant 0 : i32
    return %c0_i32, %c0_i32_0 : i32, i32
  }
  func.func @transform_2(%arg0: i32) -> (i32, i32) {
    %c0_i32 = arith.constant 0 : i32
    %c0_i32_0 = arith.constant 0 : i32
    %c0_i32_1 = arith.constant 0 : i32
    return %c0_i32, %c0_i32_0 : i32, i32
  }
  func.func @transform_3(%arg0: i32) -> (i32, i32) {
    %c0_i32 = arith.constant 0 : i32
    %c0_i32_0 = arith.constant 0 : i32
    %c0_i32_1 = arith.constant 0 : i32
    return %c0_i32, %c0_i32_0 : i32, i32
  }
  func.func @transform_4(%arg0: i32) -> i32 {
    %c0_i32 = arith.constant 0 : i32
    %c0_i32_0 = arith.constant 0 : i32
    return %c0_i32 : i32
  }
  func.func @transform_5(%arg0: i32) -> (i32, i32) {
    %c0_i32 = arith.constant 0 : i32
    %c0_i32_0 = arith.constant 0 : i32
    return %arg0, %c0_i32 : i32, i32
  }
}

</mosaic_0001>

<bundles_post_ra>
// kernel: tpu_custom_call.1
= control target key start
LH: loop header
LB: loop body
LE: loop exit
PB: predicated region body
PF: predicated region fallthrough
CT: control target
= control target key end

     0   :  { %s4295_s20 = smov 0   ;;  %s5779_s0 = inlined_call_operand.vmem [shape: f32[1024,784], index: 0, kind: input, shape index: {}]   ;;  %s5780_s1 = inlined_call_operand.vmem [shape: bf16[784,128], index: 1, kind: input, shape index: {}]   ;;  %s5781_s2 = inlined_call_operand.vmem [shape: f32[1,128], index: 2, kind: input, shape index: {}]   ;;  %s5782_s3 = inlined_call_operand.vmem [shape: f32[1,128], index: 3, kind: input, shape index: {}]   ;;  %s5783_s4 = inlined_call_operand.<no memory space> [shape: f32[1], index: 4, kind: input, shape index: {}]   ;;  %s5784_s5 = inlined_call_operand.vmem [shape: f32[1024,1], index: 5, kind: output, shape index: {}]  }
   0x1   :  { %10 = sst [smem:[#allocation2]] %s5783_s4 }
   0x2 LB: > { %s3455_s21 = sadd.s32 4294967295, %s4259_s20   ;;  %p3459_p0 = scmp.ge.s32.totalorder %s4259_s20, 1  ;;  %s4259_s20 = sphi %s4295_s20, %s16_s20  }
   0x3   : > { %p190_p1 = scmp.lt.s32.totalorder %s4259_s20, 3 }
   0x5   : > { %p191_p2 = pnand %p3459_p0, %p190_p1 }
   0x7   : > { %194 = sbr.rel (%p191_p2) target bundleno = 920 (0x398), region = 40 }
   0xe   : > { %v3946_v0 = vld [vmem:[%s5780_s1] sm:$0xff]   ;;  %v4261_v1 = vmov 0   ;;  %v3948_v3 = vld [vmem:[%s5780_s1 + $0x8] sm:$0xff]   ;;  %v3950_v5 = vld [vmem:[%s5780_s1 + $0x10] sm:$0xff]   ;;  %s3460_s14 = sshll.u32 %s3455_s21, 6  ;;  %vm1304_vm0 = vcmask 130048  }
   0xf   : > { %1401 = vmatprep.subr.bf16.mxu1 %v4261_v1  ;;  %1690 = vmatprep.subr.bf16.mxu0 %v4261_v1  ;;  %v4311_v2 = vld [vmem:[%s5780_s1 + $0x80] sm:$0xff]   ;;  %v4321_v4 = vld [vmem:[%s5780_s1 + $0x88] sm:$0xff]   ;;  %v4332_v6 = vld [vmem:[%s5780_s1 + $0x90] sm:$0xff]   ;;  %p220_p3 = scmp.lt.s32.totalorder %s3460_s14, 127  ;;  %s2948_s12 = sld [smem:[#allocation2]] }
  0x10   : > { %1402 = vmatpush1.bf16.msra.mxu1 %v3946_v0  ;;  %1691 = vmatpush1.bf16.msra.mxu0 %v4311_v2  ;;  %v3952_v7 = vld [vmem:[%s5780_s1 + $0x18] sm:$0xff]   ;;  %v3954_v9 = vld [vmem:[%s5780_s1 + $0x20] sm:$0xff]   ;;  %v3956_v11 = vld [vmem:[%s5780_s1 + $0x28] sm:$0xff]  }
  0x11   : > { %1403 = vmatprep.subr.bf16.mxu1 %v4261_v1  ;;  %1692 = vmatprep.subr.bf16.mxu0 %v4261_v1  ;;  %v4343_v8 = vld [vmem:[%s5780_s1 + $0x98] sm:$0xff]   ;;  %v4356_v10 = vld [vmem:[%s5780_s1 + $0xa0] sm:$0xff]   ;;  %v4367_v12 = vld [vmem:[%s5780_s1 + $0xa8] sm:$0xff]   ;;  %s5820_s14 = smov (!%p220_p3, %s3460_s14), 127 }
  0x12   : > { %v3958_v13 = vld [vmem:[%s5780_s1 + $0x30] sm:$0xff]   ;;  %s3936_s25 = smul.u32 56, %s5820_s14  ;;  %v3960_v15 = vld [vmem:[%s5780_s1 + $0x38] sm:$0xff]   ;;  %v3962_v17 = vld [vmem:[%s5780_s1 + $0x40] sm:$0xff]   ;;  %s3463_s13 = sshll.u32 %s5820_s14, 3 }
  0x13   : > { %v4380_v14 = vld [vmem:[%s5780_s1 + $0xb0] sm:$0xff]   ;;  %v4392_v16 = vld [vmem:[%s5780_s1 + $0xb8] sm:$0xff]   ;;  %v4408_v18 = vld [vmem:[%s5780_s1 + $0xc0] sm:$0xff]   ;;  %s5596_s17 = scalar_lea.vmem %s5784_s5, %s3463_s13 }
  0x14   : > { %1404 = vmatpush1.bf16.msra.mxu1 %v3948_v3  ;;  %1693 = vmatpush1.bf16.msra.mxu0 %v4321_v4  ;;  %s4398_s7 = scalar_lea.vmem %s5779_s0, %s3936_s25  ;;  %v3964_v24 = vld [vmem:[%s5780_s1 + $0x48] sm:$0xff]   ;;  %v3966_v27 = vld [vmem:[%s5780_s1 + $0x50] sm:$0xff]   ;;  %v3968_v29 = vld [vmem:[%s5780_s1 + $0x58] sm:$0xff]  }
  0x15   : > { %1405 = vmatprep.subr.bf16.mxu1 %v4261_v1  ;;  %1694 = vmatprep.subr.bf16.mxu0 %v4261_v1  ;;  %v234_v19 = vld [vmem:[%s4398_s7 + $0x8] sm:$0xff]  ;;  %v241_v20 = vld [vmem:[%s4398_s7 + $0x40] sm:$0xff]  ;;  %v236_v21 = vld [vmem:[%s4398_s7 + $0x18] sm:$0xff] }
  0x16   : > { %v682_v22 = vpack.c.bf16 %v241_v20, %v234_v19  ;;  %v243_v23 = vld [vmem:[%s4398_s7 + $0x50] sm:$0xff]  ;;  %v4423_v26 = vld [vmem:[%s5780_s1 + $0xc8] sm:$0xff]   ;;  %v4445_v30 = vld [vmem:[%s5780_s1 + $0xd8] sm:$0xff]  }
  0x17   : > { %v684_v25 = vpack.c.bf16 %v243_v23, %v236_v21  ;;  %v4434_v28 = vld [vmem:[%s5780_s1 + $0xd0] sm:$0xff]   ;;  %v3970_v31 = vld [vmem:[%s5780_s1 + $0x60] sm:$0xff]   ;;  %v3972_v33 = vld [vmem:[%s5780_s1 + $0x68] sm:$0xff]  }
  0x18   : > { %1406 = vmatpush1.bf16.msra.mxu1 %v3950_v5  ;;  %1695 = vmatpush1.bf16.msra.mxu0 %v4332_v6  ;;  %v4456_v32 = vld [vmem:[%s5780_s1 + $0xe0] sm:$0xff]   ;;  %v4467_v34 = vld [vmem:[%s5780_s1 + $0xe8] sm:$0xff]   ;;  %v3974_v35 = vld [vmem:[%s5780_s1 + $0x70] sm:$0xff]  }
  0x19   : > { %1407 = vmatprep.subr.bf16.mxu1 %v4261_v1  ;;  %1696 = vmatprep.subr.bf16.mxu0 %v4261_v1  ;;  %v4478_v36 = vld [vmem:[%s5780_s1 + $0xf0] sm:$0xff]   ;;  %v3976_v37 = vld [vmem:[%s5780_s1 + $0x78] sm:$0xff]   ;;  %v233_v38 = vld [vmem:[%s4398_s7] sm:$0xff] }
  0x1a   : > { %1433 = vmatprep.mubr.bf16.mxu1 %v682_v22  ;;  %1722 = vmatprep.mubr.bf16.mxu0 %v684_v25  ;;  %v240_v39 = vld [vmem:[%s4398_s7 + $0x38] sm:$0xff]  ;;  %v235_v41 = vld [vmem:[%s4398_s7 + $0x10] sm:$0xff]  ;;  %v242_v42 = vld [vmem:[%s4398_s7 + $0x48] sm:$0xff] }
  0x1b   : > { %v4491_v40 = vld [vmem:[%s5780_s1 + $0xf8] sm:$0xff]   ;;  %v255_v44 = vld [vmem:[%s4398_s7 + $0xb0] sm:$0xff]  ;;  %v250_v45 = vld [vmem:[%s4398_s7 + $0x88] sm:$0xff]  ;;  %v681_v46 = vpack.c.bf16 %v240_v39, %v233_v38  ;;  %v683_v48 = vpack.c.bf16 %v242_v42, %v235_v41 }
  0x1c   : > { %1408 = vmatpush1.bf16.msra.mxu1 %v3952_v7  ;;  %1697 = vmatpush1.bf16.msra.mxu0 %v4343_v8  ;;  %v248_v43 = vld [vmem:[%s4398_s7 + $0x78] sm:$0xff]  ;;  %v257_v47 = vld [vmem:[%s4398_s7 + $0xc0] sm:$0xff]  ;;  %v247_v52 = vld [vmem:[%s4398_s7 + $0x70] sm:$0xff] }
  0x1d   : > { %1409 = vmatprep.subr.bf16.mxu1 %v4261_v1  ;;  %1698 = vmatprep.subr.bf16.mxu0 %v4261_v1  ;;  %v3978_v49 = vld [vmem:[%s5780_s1 + $0x100] sm:$0xff]   ;;  %v689_v50 = vpack.c.bf16 %v255_v44, %v248_v43  ;;  %v691_v51 = vpack.c.bf16 %v257_v47, %v250_v45  ;;  %v254_v53 = vld [vmem:[%s4398_s7 + $0xa8] sm:$0xff]  ;;  %v256_v55 = vld [vmem:[%s4398_s7 + $0xb8] sm:$0xff] }
  0x1e   : > { %v249_v54 = vld [vmem:[%s4398_s7 + $0x80] sm:$0xff]  ;;  %v262_v56 = vld [vmem:[%s4398_s7 + $0xe8] sm:$0xff]  ;;  %v264_v59 = vld [vmem:[%s4398_s7 + $0xf8] sm:$0xff]  ;;  %v688_v61 = vpack.c.bf16 %v254_v53, %v247_v52 }
  0x1f   : > { %v269_v57 = vld [vmem:[%s4398_s7 + $0x120] sm:$0xff]  ;;  %v3979_v58 = vld [vmem:[%s5780_s1 + $0x108] sm:$0xff]   ;;  %v271_v60 = vld [vmem:[%s4398_s7 + $0x130] sm:$0xff]  ;;  %v690_v62 = vpack.c.bf16 %v256_v55, %v249_v54 }
  0x20   : > { %1410 = vmatpush1.bf16.msra.mxu1 %v3954_v9  ;;  %1699 = vmatpush1.bf16.msra.mxu0 %v4356_v10  ;;  %v696_v63 = vpack.c.bf16 %v269_v57, %v262_v56  ;;  %v698_v0 = vpack.c.bf16 %v271_v60, %v264_v59  ;;  %v261_v3 = vld [vmem:[%s4398_s7 + $0xe0] sm:$0xff]  ;;  %v268_v5 = vld [vmem:[%s4398_s7 + $0x118] sm:$0xff]  ;;  %v263_v7 = vld [vmem:[%s4398_s7 + $0xf0] sm:$0xff] }
  0x21   : > { %1411 = vmatprep.subr.bf16.mxu1 %v4261_v1  ;;  %1700 = vmatprep.subr.bf16.mxu0 %v4261_v1  ;;  %v270_v9 = vld [vmem:[%s4398_s7 + $0x128] sm:$0xff]  ;;  %v695_v19 = vpack.c.bf16 %v268_v5, %v261_v3  ;;  %v3982_v23 = vld [vmem:[%s5780_s1 + $0x120] sm:$0xff]   ;;  %v3984_v42 = vld [vmem:[%s5780_s1 + $0x130] sm:$0xff]  }
  0x22   : > { %v697_v20 = vpack.c.bf16 %v270_v9, %v263_v7  ;;  %v277_v25 = vld [vmem:[%s4398_s7 + $0x160] sm:$0xff]  ;;  %v296_v43 = vld [vmem:[%s4398_s7 + $0x1f8] sm:$0xff]  ;;  %v291_v44 = vld [vmem:[%s4398_s7 + $0x1d0] sm:$0xff] }
  0x23   : > { %v298_v45 = vld [vmem:[%s4398_s7 + $0x208] sm:$0xff]  ;;  %v311_v47 = vld [vmem:[%s4398_s7 + $0x270] sm:$0xff]  ;;  %v3986_v54 = vld [vmem:[%s5780_s1 + $0x140] sm:$0xff]  }
  0x24   : > { %1412 = vmatpush1.bf16.msra.mxu1 %v3956_v11  ;;  %1701 = vmatpush1.bf16.msra.mxu0 %v4367_v12  ;;  %v283_v11 = vld [vmem:[%s4398_s7 + $0x190] sm:$0xff]  ;;  %v310_v55 = vld [vmem:[%s4398_s7 + $0x268] sm:$0xff]  ;;  %v305_v56 = vld [vmem:[%s4398_s7 + $0x240] sm:$0xff] }
  0x25   : > { %1413 = vmatprep.subr.bf16.mxu1 %v4261_v1  ;;  %1702 = vmatprep.subr.bf16.mxu0 %v4261_v1  ;;  %v312_v57 = vld [vmem:[%s4398_s7 + $0x278] sm:$0xff]  ;;  %v325_v59 = vld [vmem:[%s4398_s7 + $0x2e0] sm:$0xff]  ;;  %v3987_v60 = vld [vmem:[%s5780_s1 + $0x148] sm:$0xff]  }
  0x26   : > { %v3988_v3 = vld [vmem:[%s5780_s1 + $0x150] sm:$0xff]   ;;  %v317_v5 = vld [vmem:[%s4398_s7 + $0x2a0] sm:$0xff]  ;;  %v324_v7 = vld [vmem:[%s4398_s7 + $0x2d8] sm:$0xff] }
  0x27   : > { %v326_v9 = vld [vmem:[%s4398_s7 + $0x2e8] sm:$0xff] }
  0x28   : > { %1414 = vmatpush1.bf16.msra.mxu1 %v3958_v13  ;;  %1703 = vmatpush1.bf16.msra.mxu0 %v4380_v14  ;;  %v3981_v13 = vld [vmem:[%s5780_s1 + $0x118] sm:$0xff]  }
  0x29   : > { %1415 = vmatprep.subr.bf16.mxu1 %v4261_v1  ;;  %1704 = vmatprep.subr.bf16.mxu0 %v4261_v1 }
  0x2c   : > { %1416 = vmatpush1.bf16.msra.mxu1 %v3960_v15  ;;  %1705 = vmatpush1.bf16.msra.mxu0 %v4392_v16  ;;  %v278_v15 = vld [vmem:[%s4398_s7 + $0x168] sm:$0xff] }
  0x2d   : > { %1417 = vmatprep.subr.bf16.mxu1 %v4261_v1  ;;  %1706 = vmatprep.subr.bf16.mxu0 %v4261_v1 }
  0x30   : > { %1418 = vmatpush1.bf16.msra.mxu1 %v3962_v17  ;;  %1707 = vmatpush1.bf16.msra.mxu0 %v4408_v18  ;;  %v285_v17 = vld [vmem:[%s4398_s7 + $0x1a0] sm:$0xff] }
  0x31   : > { %1419 = vmatprep.subr.bf16.mxu1 %v4261_v1  ;;  %1708 = vmatprep.subr.bf16.mxu0 %v4261_v1  ;;  %v705_v22 = vpack.c.bf16 %v285_v17, %v278_v15  ;;  %v3989_v15 = vld [vmem:[%s5780_s1 + $0x158] sm:$0xff]   ;;  %v341_v17 = vld [vmem:[%s4398_s7 + $0x360] sm:$0xff] }
  0x34   : > { %1420 = vmatpush1.bf16.msra.mxu1 %v3964_v24  ;;  %1709 = vmatpush1.bf16.msra.mxu0 %v4423_v26  ;;  %v282_v24 = vld [vmem:[%s4398_s7 + $0x188] sm:$0xff] }
  0x35   : > { %1421 = vmatprep.subr.bf16.mxu1 %v4261_v1  ;;  %1710 = vmatprep.subr.bf16.mxu0 %v4261_v1 }
  0x38   : > { %1422 = vmatpush1.bf16.msra.mxu1 %v3966_v27  ;;  %1711 = vmatpush1.bf16.msra.mxu0 %v4434_v28  ;;  %v284_v27 = vld [vmem:[%s4398_s7 + $0x198] sm:$0xff] }
  0x39   : > { %1423 = vmatprep.subr.bf16.mxu1 %v4261_v1  ;;  %1712 = vmatprep.subr.bf16.mxu0 %v4261_v1  ;;  %v704_v38 = vpack.c.bf16 %v284_v27, %v277_v25  ;;  %v346_v25 = vld [vmem:[%s4398_s7 + $0x388] sm:$0xff]  ;;  %v353_v27 = vld [vmem:[%s4398_s7 + $0x3c0] sm:$0xff] }
  0x3c   : > { %1424 = vmatpush1.bf16.msra.mxu1 %v3968_v29  ;;  %1713 = vmatpush1.bf16.msra.mxu0 %v4445_v30  ;;  %v290_v29 = vld [vmem:[%s4398_s7 + $0x1c8] sm:$0xff] }
  0x3d   : > { %1425 = vmatprep.subr.bf16.mxu1 %v4261_v1  ;;  %1714 = vmatprep.subr.bf16.mxu0 %v4261_v1 }
  0x40   : > { %1426 = vmatpush1.bf16.msra.mxu1 %v3970_v31  ;;  %1715 = vmatpush1.bf16.msra.mxu0 %v4456_v32  ;;  %v297_v31 = vld [vmem:[%s4398_s7 + $0x200] sm:$0xff] }
  0x41   : > { %1427 = vmatprep.subr.bf16.mxu1 %v4261_v1  ;;  %1716 = vmatprep.subr.bf16.mxu0 %v4261_v1  ;;  %v710_v39 = vpack.c.bf16 %v297_v31, %v290_v29  ;;  %v3991_v29 = vld [vmem:[%s5780_s1 + $0x168] sm:$0xff]   ;;  %v348_v31 = vld [vmem:[%s4398_s7 + $0x398] sm:$0xff] }
  0x44   : > { %1428 = vmatpush1.bf16.msra.mxu1 %v3972_v33  ;;  %1717 = vmatpush1.bf16.msra.mxu0 %v4467_v34  ;;  %v292_v33 = vld [vmem:[%s4398_s7 + $0x1d8] sm:$0xff] }
  0x45   : > { %1429 = vmatprep.subr.bf16.mxu1 %v4261_v1  ;;  %1718 = vmatprep.subr.bf16.mxu0 %v4261_v1 }
  0x48   : > { %1430 = vmatpush1.bf16.msra.mxu1 %v3974_v35  ;;  %1719 = vmatpush1.bf16.msra.mxu0 %v4478_v36  ;;  %v299_v35 = vld [vmem:[%s4398_s7 + $0x210] sm:$0xff] }
  0x49   : > { %1431 = vmatprep.subr.bf16.mxu1 %v4261_v1  ;;  %1720 = vmatprep.subr.bf16.mxu0 %v4261_v1  ;;  %v712_v41 = vpack.c.bf16 %v299_v35, %v292_v33  ;;  %v738_v35 = vpack.c.bf16 %v353_v27, %v346_v25  ;;  %v423_v25 = vld [vmem:[%s4398_s7 + $0x5f0] sm:$0xff]  ;;  %v418_v27 = vld [vmem:[%s4398_s7 + $0x5c8] sm:$0xff] }
  0x4c   : > { %1432 = vmatpush1.bf16.msra.mxu1 %v3976_v37  ;;  %1721 = vmatpush1.bf16.msra.mxu0 %v4491_v40 }
  0x4d   : > { %3648 = vmatprep.subr.bf16.mxu1 %v4261_v1  ;;  %1979 = vmatprep.subr.bf16.mxu0 %v4261_v1 }
  0x4f   : > { %1434 = vmatmul.mubr.bf16.vlgmr.msra.gmra.mrb[0].mxu1 %v681_v46  ;;  %1723 = vmatmul.mubr.bf16.vlgmr.msra.gmra.mrb[0].mxu0 %v683_v48  ;;  %v304_v46 = vld [vmem:[%s4398_s7 + $0x238] sm:$0xff] }
  0x50   : > { %3664 = vmatpush1.bf16.msra.mxu1 %v4311_v2  ;;  %1980 = vmatpush1.bf16.msra.mxu0 %v3978_v49  ;;  %v3980_v2 = vld [vmem:[%s5780_s1 + $0x110] sm:$0xff]   ;;  %v3985_v48 = vld [vmem:[%s5780_s1 + $0x138] sm:$0xff]   ;;  %v306_v49 = vld [vmem:[%s4398_s7 + $0x248] sm:$0xff]  ;;  %v717_v52 = vpack.c.bf16 %v311_v47, %v304_v46 }
  0x51   : > { %1441 = vmatprep.mubr.bf16.mxu1 %v689_v50  ;;  %1730 = vmatprep.mubr.bf16.mxu0 %v691_v51  ;;  %v711_v51 = vpack.c.bf16 %v298_v45, %v291_v44  ;;  %v3993_v44 = vld [vmem:[%s5780_s1 + $0x178] sm:$0xff]   ;;  %v369_v45 = vld [vmem:[%s4398_s7 + $0x440] sm:$0xff] }
  0x52   : > { %1981 = vmatprep.subr.bf16.mxu0 %v4261_v1  ;;  %3649 = vmatprep.subr.bf16.mxu1 %v4261_v1 }
  0x54   : > { %3665 = vmatpush1.bf16.msra.mxu1 %v4321_v4  ;;  %1982 = vmatpush1.bf16.msra.mxu0 %v3979_v58  ;;  %v276_v4 = vld [vmem:[%s4398_s7 + $0x158] sm:$0xff]  ;;  %v318_v58 = vld [vmem:[%s4398_s7 + $0x2a8] sm:$0xff] }
  0x55   : > { %3650 = vmatprep.subr.bf16.mxu1 %v4261_v1  ;;  %1983 = vmatprep.subr.bf16.mxu0 %v4261_v1  ;;  %v703_v21 = vpack.c.bf16 %v283_v11, %v276_v4  ;;  %v332_v4 = vld [vmem:[%s4398_s7 + $0x318] sm:$0xff]  ;;  %v339_v11 = vld [vmem:[%s4398_s7 + $0x350] sm:$0xff] }
  0x57   : > { %1442 = vmatmul.mubr.bf16.gmra.mrb[4].mxu1 %v688_v61  ;;  %1731 = vmatmul.mubr.bf16.gmra.mrb[4].mxu0 %v690_v62  ;;  %v327_v61 = vld [vmem:[%s4398_s7 + $0x2f0] sm:$0xff] }
  0x58   : > { %1449 = vmatprep.mubr.bf16.mxu1 %v696_v63  ;;  %1738 = vmatprep.mubr.bf16.mxu0 %v698_v0  ;;  %v718_v63 = vpack.c.bf16 %v312_v57, %v305_v56  ;;  %v724_v0 = vpack.c.bf16 %v325_v59, %v318_v58  ;;  %v373_v57 = vld [vmem:[%s4398_s7 + $0x460] sm:$0xff]  ;;  %v380_v58 = vld [vmem:[%s4398_s7 + $0x498] sm:$0xff]  ;;  %v375_v59 = vld [vmem:[%s4398_s7 + $0x470] sm:$0xff] }
  0x59   : > { %1984 = vmatpush1.bf16.msra.mxu0 %v3980_v2  ;;  %3666 = vmatpush1.bf16.msra.mxu1 %v4332_v6  ;;  %v275_v6 = vld [vmem:[%s4398_s7 + $0x150] sm:$0xff] }
  0x5a   : > { %1985 = vmatprep.subr.bf16.mxu0 %v4261_v1  ;;  %3651 = vmatprep.subr.bf16.mxu1 %v4261_v1  ;;  %v702_v37 = vpack.c.bf16 %v282_v24, %v275_v6  ;;  %v333_v6 = vld [vmem:[%s4398_s7 + $0x320] sm:$0xff]  ;;  %v340_v24 = vld [vmem:[%s4398_s7 + $0x358] sm:$0xff] }
  0x5b   : > { %v732_v33 = vpack.c.bf16 %v340_v24, %v333_v6  ;;  %v410_v6 = vld [vmem:[%s4398_s7 + $0x588] sm:$0xff]  ;;  %v416_v24 = vld [vmem:[%s4398_s7 + $0x5b8] sm:$0xff] }
  0x5d   : > { %1986 = vmatpush1.bf16.msra.mxu0 %v3981_v13  ;;  %3667 = vmatpush1.bf16.msra.mxu1 %v4343_v8  ;;  %v3983_v8 = vld [vmem:[%s5780_s1 + $0x128] sm:$0xff]  }
  0x5e   : > { %1987 = vmatprep.subr.bf16.mxu0 %v4261_v1  ;;  %3652 = vmatprep.subr.bf16.mxu1 %v4261_v1  ;;  %v334_v13 = vld [vmem:[%s4398_s7 + $0x328] sm:$0xff] }
  0x5f   : > { %1450 = vmatmul.mubr.bf16.gmra.mrb[8].mxu1 %v695_v19  ;;  %1739 = vmatmul.mubr.bf16.gmra.mrb[8].mxu0 %v697_v20  ;;  %v731_v20 = vpack.c.bf16 %v339_v11, %v332_v4  ;;  %v396_v4 = vld [vmem:[%s4398_s7 + $0x518] sm:$0xff]  ;;  %v402_v11 = vld [vmem:[%s4398_s7 + $0x548] sm:$0xff] }
  0x60   : > { %1457 = vmatprep.mubr.bf16.mxu1 %v703_v21  ;;  %1746 = vmatprep.mubr.bf16.mxu0 %v705_v22  ;;  %v733_v21 = vpack.c.bf16 %v341_v17, %v334_v13  ;;  %v3990_v22 = vld [vmem:[%s5780_s1 + $0x160] sm:$0xff]   ;;  %v411_v17 = vld [vmem:[%s4398_s7 + $0x590] sm:$0xff] }
  0x61   : > { %1988 = vmatpush1.bf16.msra.mxu0 %v3982_v23  ;;  %3668 = vmatpush1.bf16.msra.mxu1 %v4356_v10  ;;  %v289_v10 = vld [vmem:[%s4398_s7 + $0x1c0] sm:$0xff]  ;;  %v338_v23 = vld [vmem:[%s4398_s7 + $0x348] sm:$0xff] }
  0x62   : > { %1989 = vmatprep.subr.bf16.mxu0 %v4261_v1  ;;  %3653 = vmatprep.subr.bf16.mxu1 %v4261_v1  ;;  %v709_v50 = vpack.c.bf16 %v296_v43, %v289_v10  ;;  %v360_v10 = vld [vmem:[%s4398_s7 + $0x3f8] sm:$0xff]  ;;  %v367_v43 = vld [vmem:[%s4398_s7 + $0x430] sm:$0xff]  ;;  %v409_v13 = vld [vmem:[%s4398_s7 + $0x580] sm:$0xff] }
  0x65   : > { %1990 = vmatpush1.bf16.msra.mxu0 %v3983_v8  ;;  %3669 = vmatpush1.bf16.msra.mxu1 %v4367_v12  ;;  %v313_v12 = vld [vmem:[%s4398_s7 + $0x280] sm:$0xff] }
  0x66   : > { %1991 = vmatprep.subr.bf16.mxu0 %v4261_v1  ;;  %3654 = vmatprep.subr.bf16.mxu1 %v4261_v1  ;;  %v719_v53 = vpack.c.bf16 %v313_v12, %v306_v49  ;;  %v359_v12 = vld [vmem:[%s4398_s7 + $0x3f0] sm:$0xff] }
  0x67   : > { %1458 = vmatmul.mubr.bf16.gmra.mrb[12].mxu1 %v702_v37  ;;  %1747 = vmatmul.mubr.bf16.gmra.mrb[12].mxu0 %v704_v38  ;;  %v3992_v38 = vld [vmem:[%s5780_s1 + $0x170] sm:$0xff]  }
  0x68   : > { %1465 = vmatprep.mubr.bf16.mxu1 %v710_v39  ;;  %1754 = vmatprep.mubr.bf16.mxu0 %v712_v41  ;;  %v352_v39 = vld [vmem:[%s4398_s7 + $0x3b8] sm:$0xff]  ;;  %v347_v41 = vld [vmem:[%s4398_s7 + $0x390] sm:$0xff] }
  0x69   : > { %1992 = vmatpush1.bf16.msra.mxu0 %v3984_v42  ;;  %3670 = vmatpush1.bf16.msra.mxu1 %v4380_v14  ;;  %v303_v14 = vld [vmem:[%s4398_s7 + $0x230] sm:$0xff]  ;;  %v354_v42 = vld [vmem:[%s4398_s7 + $0x3c8] sm:$0xff] }
  0x6a   : > { %1993 = vmatprep.subr.bf16.mxu0 %v4261_v1  ;;  %3655 = vmatprep.subr.bf16.mxu1 %v4261_v1  ;;  %v716_v62 = vpack.c.bf16 %v310_v55, %v303_v14  ;;  %v739_v47 = vpack.c.bf16 %v354_v42, %v347_v41  ;;  %v437_v41 = vld [vmem:[%s4398_s7 + $0x660] sm:$0xff]  ;;  %v432_v42 = vld [vmem:[%s4398_s7 + $0x638] sm:$0xff] }
  0x6d   : > { %1994 = vmatpush1.bf16.msra.mxu0 %v3985_v48  ;;  %3671 = vmatpush1.bf16.msra.mxu1 %v4392_v16  ;;  %v320_v16 = vld [vmem:[%s4398_s7 + $0x2b8] sm:$0xff]  ;;  %v745_v48 = vpack.c.bf16 %v367_v43, %v360_v10  ;;  %v439_v10 = vld [vmem:[%s4398_s7 + $0x670] sm:$0xff] }
  0x6e   : > { %1995 = vmatprep.subr.bf16.mxu0 %v4261_v1  ;;  %3656 = vmatprep.subr.bf16.mxu1 %v4261_v1  ;;  %v726_v2 = vpack.c.bf16 %v327_v61, %v320_v16  ;;  %v388_v16 = vld [vmem:[%s4398_s7 + $0x4d8] sm:$0xff]  ;;  %v395_v61 = vld [vmem:[%s4398_s7 + $0x510] sm:$0xff] }
  0x6f   : > { %1466 = vmatmul.mubr.bf16.gmra.mrb[16].mxu1 %v709_v50  ;;  %1755 = vmatmul.mubr.bf16.gmra.mrb[16].mxu0 %v711_v51  ;;  %v366_v50 = vld [vmem:[%s4398_s7 + $0x428] sm:$0xff]  ;;  %v368_v51 = vld [vmem:[%s4398_s7 + $0x438] sm:$0xff] }
  0x70   : > { %1473 = vmatprep.mubr.bf16.mxu1 %v717_v52  ;;  %1762 = vmatprep.mubr.bf16.mxu0 %v719_v53  ;;  %v381_v52 = vld [vmem:[%s4398_s7 + $0x4a0] sm:$0xff]  ;;  %v376_v53 = vld [vmem:[%s4398_s7 + $0x478] sm:$0xff] }
  0x71   : > { %1996 = vmatpush1.bf16.msra.mxu0 %v3986_v54  ;;  %3672 = vmatpush1.bf16.msra.mxu1 %v4408_v18  ;;  %v319_v18 = vld [vmem:[%s4398_s7 + $0x2b0] sm:$0xff] }
  0x72   : > { %1997 = vmatprep.subr.bf16.mxu0 %v4261_v1  ;;  %3657 = vmatprep.subr.bf16.mxu1 %v4261_v1  ;;  %v725_v19 = vpack.c.bf16 %v326_v9, %v319_v18  ;;  %v383_v54 = vld [vmem:[%s4398_s7 + $0x4b0] sm:$0xff]  ;;  %v394_v18 = vld [vmem:[%s4398_s7 + $0x508] sm:$0xff]  ;;  %v389_v9 = vld [vmem:[%s4398_s7 + $0x4e0] sm:$0xff] }
  0x73   : > { %v754_v56 = vpack.c.bf16 %v383_v54, %v376_v53 }
  0x75   : > { %1998 = vmatpush1.bf16.msra.mxu0 %v3987_v60  ;;  %3673 = vmatpush1.bf16.msra.mxu1 %v4423_v26  ;;  %v723_v26 = vpack.c.bf16 %v324_v7, %v317_v5  ;;  %v382_v60 = vld [vmem:[%s4398_s7 + $0x4a8] sm:$0xff]  ;;  %v387_v7 = vld [vmem:[%s4398_s7 + $0x4d0] sm:$0xff] }
  0x76   : > { %1999 = vmatprep.subr.bf16.mxu0 %v4261_v1  ;;  %3658 = vmatprep.subr.bf16.mxu1 %v4261_v1 }
  0x77   : > { %1474 = vmatmul.mubr.bf16.gmra.mrb[20].mxu1 %v716_v62  ;;  %1763 = vmatmul.mubr.bf16.gmra.mrb[20].mxu0 %v718_v63  ;;  %v390_v62 = vld [vmem:[%s4398_s7 + $0x4e8] sm:$0xff]  ;;  %v397_v63 = vld [vmem:[%s4398_s7 + $0x520] sm:$0xff] }
  0x78   : > { %1481 = vmatprep.mubr.bf16.mxu1 %v724_v0  ;;  %1770 = vmatprep.mubr.bf16.mxu0 %v726_v2  ;;  %v751_v0 = vpack.c.bf16 %v380_v58, %v373_v57  ;;  %v753_v2 = vpack.c.bf16 %v382_v60, %v375_v59  ;;  %v761_v5 = vpack.c.bf16 %v397_v63, %v390_v62  ;;  %v458_v57 = vld [vmem:[%s4398_s7 + $0x708] sm:$0xff]  ;;  %v465_v58 = vld [vmem:[%s4398_s7 + $0x740] sm:$0xff]  ;;  %v460_v59 = vld [vmem:[%s4398_s7 + $0x718] sm:$0xff] }
  0x79   : > { %2000 = vmatpush1.bf16.msra.mxu0 %v3988_v3  ;;  %3674 = vmatpush1.bf16.msra.mxu1 %v4434_v28  ;;  %v331_v28 = vld [vmem:[%s4398_s7 + $0x310] sm:$0xff]  ;;  %v759_v3 = vpack.c.bf16 %v395_v61, %v388_v16  ;;  %v794_v62 = vpack.c.bf16 %v465_v58, %v458_v57  ;;  %v537_v57 = vld [vmem:[%s4398_s7 + $0x980] sm:$0xff] }
  0x7a   : > { %2001 = vmatprep.subr.bf16.mxu0 %v4261_v1  ;;  %3659 = vmatprep.subr.bf16.mxu1 %v4261_v1  ;;  %v730_v8 = vpack.c.bf16 %v338_v23, %v331_v28  ;;  %v408_v28 = vld [vmem:[%s4398_s7 + $0x578] sm:$0xff]  ;;  %v403_v23 = vld [vmem:[%s4398_s7 + $0x550] sm:$0xff] }
  0x7b   : > { %v467_v60 = vld [vmem:[%s4398_s7 + $0x750] sm:$0xff] }
  0x7c   : > { %v796_v63 = vpack.c.bf16 %v467_v60, %v460_v59 }
  0x7d   : > { %2002 = vmatpush1.bf16.msra.mxu0 %v3989_v15  ;;  %3675 = vmatpush1.bf16.msra.mxu1 %v4445_v30  ;;  %v355_v30 = vld [vmem:[%s4398_s7 + $0x3d0] sm:$0xff]  ;;  %v404_v15 = vld [vmem:[%s4398_s7 + $0x558] sm:$0xff] }
  0x7e   : > { %2003 = vmatprep.subr.bf16.mxu0 %v4261_v1  ;;  %3660 = vmatprep.subr.bf16.mxu1 %v4261_v1  ;;  %v740_v37 = vpack.c.bf16 %v355_v30, %v348_v31  ;;  %v767_v30 = vpack.c.bf16 %v410_v6, %v403_v23  ;;  %v493_v23 = vld [vmem:[%s4398_s7 + $0x820] sm:$0xff]  ;;  %v488_v6 = vld [vmem:[%s4398_s7 + $0x7f8] sm:$0xff] }
  0x7f   : > { %1482 = vmatmul.mubr.bf16.gmra.mrb[24].mxu1 %v723_v26  ;;  %1771 = vmatmul.mubr.bf16.gmra.mrb[24].mxu0 %v725_v19  ;;  %v758_v26 = vpack.c.bf16 %v394_v18, %v387_v7  ;;  %v760_v19 = vpack.c.bf16 %v396_v4, %v389_v9  ;;  %v472_v7 = vld [vmem:[%s4398_s7 + $0x778] sm:$0xff]  ;;  %v479_v18 = vld [vmem:[%s4398_s7 + $0x7b0] sm:$0xff]  ;;  %v474_v9 = vld [vmem:[%s4398_s7 + $0x788] sm:$0xff] }
  0x80   : > { %1489 = vmatprep.mubr.bf16.mxu1 %v731_v20  ;;  %1778 = vmatprep.mubr.bf16.mxu0 %v733_v21  ;;  %v766_v20 = vpack.c.bf16 %v409_v13, %v402_v11  ;;  %v768_v21 = vpack.c.bf16 %v411_v17, %v404_v15  ;;  %v481_v4 = vld [vmem:[%s4398_s7 + $0x7c0] sm:$0xff]  ;;  %v801_v15 = vpack.c.bf16 %v479_v18, %v472_v7  ;;  %v551_v7 = vld [vmem:[%s4398_s7 + $0x9f0] sm:$0xff] }
  0x81   : > { %2004 = vmatpush1.bf16.msra.mxu0 %v3990_v22  ;;  %3676 = vmatpush1.bf16.msra.mxu1 %v4456_v32  ;;  %v345_v32 = vld [vmem:[%s4398_s7 + $0x380] sm:$0xff]  ;;  %v803_v17 = vpack.c.bf16 %v481_v4, %v474_v9 }
  0x82   : > { %2005 = vmatprep.subr.bf16.mxu0 %v4261_v1  ;;  %3661 = vmatprep.subr.bf16.mxu1 %v4261_v1  ;;  %v737_v46 = vpack.c.bf16 %v352_v39, %v345_v32  ;;  %v401_v22 = vld [vmem:[%s4398_s7 + $0x540] sm:$0xff]  ;;  %v424_v32 = vld [vmem:[%s4398_s7 + $0x5f8] sm:$0xff]  ;;  %v430_v39 = vld [vmem:[%s4398_s7 + $0x628] sm:$0xff] }
  0x83   : > { %v765_v31 = vpack.c.bf16 %v408_v28, %v401_v22  ;;  %v480_v22 = vld [vmem:[%s4398_s7 + $0x7b8] sm:$0xff]  ;;  %v486_v28 = vld [vmem:[%s4398_s7 + $0x7e8] sm:$0xff] }
  0x85   : > { %2006 = vmatpush1.bf16.msra.mxu0 %v3991_v29  ;;  %3677 = vmatpush1.bf16.msra.mxu1 %v4467_v34  ;;  %v362_v34 = vld [vmem:[%s4398_s7 + $0x408] sm:$0xff]  ;;  %v425_v29 = vld [vmem:[%s4398_s7 + $0x600] sm:$0xff] }
  0x86   : > { %2007 = vmatprep.subr.bf16.mxu0 %v4261_v1  ;;  %3662 = vmatprep.subr.bf16.mxu1 %v4261_v1  ;;  %v747_v49 = vpack.c.bf16 %v369_v45, %v362_v34  ;;  %v780_v34 = vpack.c.bf16 %v437_v41, %v430_v39  ;;  %v782_v45 = vpack.c.bf16 %v439_v10, %v432_v42  ;;  %v509_v39 = vld [vmem:[%s4398_s7 + $0x8a0] sm:$0xff] }
  0x87   : > { %1490 = vmatmul.mubr.bf16.gmra.mrb[28].mxu1 %v730_v8  ;;  %1779 = vmatmul.mubr.bf16.gmra.mrb[28].mxu0 %v732_v33  ;;  %v773_v8 = vpack.c.bf16 %v423_v25, %v416_v24  ;;  %v775_v33 = vpack.c.bf16 %v425_v29, %v418_v27  ;;  %v495_v24 = vld [vmem:[%s4398_s7 + $0x830] sm:$0xff]  ;;  %v808_v29 = vpack.c.bf16 %v493_v23, %v486_v28  ;;  %v565_v28 = vld [vmem:[%s4398_s7 + $0xa60] sm:$0xff] }
  0x88   : > { %1497 = vmatprep.mubr.bf16.mxu1 %v738_v35  ;;  %1786 = vmatprep.mubr.bf16.mxu0 %v740_v37  ;;  %v415_v35 = vld [vmem:[%s4398_s7 + $0x5b0] sm:$0xff]  ;;  %v422_v37 = vld [vmem:[%s4398_s7 + $0x5e8] sm:$0xff] }
  0x89   : > { %2008 = vmatpush1.bf16.msra.mxu0 %v3992_v38  ;;  %3678 = vmatpush1.bf16.msra.mxu1 %v4478_v36  ;;  %v361_v36 = vld [vmem:[%s4398_s7 + $0x400] sm:$0xff]  ;;  %v772_v43 = vpack.c.bf16 %v422_v37, %v415_v35  ;;  %v494_v35 = vld [vmem:[%s4398_s7 + $0x828] sm:$0xff]  ;;  %v500_v37 = vld [vmem:[%s4398_s7 + $0x858] sm:$0xff] }
  0x8a   : > { %2009 = vmatprep.subr.bf16.mxu0 %v4261_v1  ;;  %3663 = vmatprep.subr.bf16.mxu1 %v4261_v1  ;;  %v374_v1 = vld [vmem:[%s4398_s7 + $0x468] sm:$0xff]  ;;  %v746_v14 = vpack.c.bf16 %v368_v51, %v361_v36  ;;  %v417_v38 = vld [vmem:[%s4398_s7 + $0x5c0] sm:$0xff] }
  0x8b   : > { %v752_v55 = vpack.c.bf16 %v381_v52, %v374_v1  ;;  %v446_v36 = vld [vmem:[%s4398_s7 + $0x6a8] sm:$0xff]  ;;  %v453_v51 = vld [vmem:[%s4398_s7 + $0x6e0] sm:$0xff] }
  0x8c   : > { %v789_v54 = vpack.c.bf16 %v453_v51, %v446_v36 }
  0x8d   : > { %2010 = vmatpush1.bf16.msra.mxu0 %v3993_v44  ;;  %3679 = vmatpush1.bf16.msra.mxu1 %v4491_v40  ;;  %v744_v40 = vpack.c.bf16 %v366_v50, %v359_v12  ;;  %v774_v44 = vpack.c.bf16 %v424_v32, %v417_v38  ;;  %v444_v12 = vld [vmem:[%s4398_s7 + $0x698] sm:$0xff]  ;;  %v451_v50 = vld [vmem:[%s4398_s7 + $0x6d0] sm:$0xff]  ;;  %v502_v32 = vld [vmem:[%s4398_s7 + $0x868] sm:$0xff] }
  0x8e   : > { %v787_v53 = vpack.c.bf16 %v451_v50, %v444_v12  ;;  %v507_v38 = vld [vmem:[%s4398_s7 + $0x890] sm:$0xff] }
  0x8f   : > { %1498 = vmatmul.mubr.bf16.gmra.mrb[32].mxu1 %v737_v46  ;;  %1787 = vmatmul.mubr.bf16.gmra.mrb[32].mxu0 %v739_v47  ;;  %v429_v46 = vld [vmem:[%s4398_s7 + $0x620] sm:$0xff]  ;;  %v436_v47 = vld [vmem:[%s4398_s7 + $0x658] sm:$0xff]  ;;  %v815_v10 = vpack.c.bf16 %v507_v38, %v500_v37  ;;  %v523_v12 = vld [vmem:[%s4398_s7 + $0x910] sm:$0xff] }
  0x90   : > { %1505 = vmatprep.mubr.bf16.mxu1 %v745_v48  ;;  %1794 = vmatprep.mubr.bf16.mxu0 %v747_v49  ;;  %v431_v48 = vld [vmem:[%s4398_s7 + $0x630] sm:$0xff]  ;;  %v438_v49 = vld [vmem:[%s4398_s7 + $0x668] sm:$0xff]  ;;  %v779_v1 = vpack.c.bf16 %v436_v47, %v429_v46  ;;  %v508_v46 = vld [vmem:[%s4398_s7 + $0x898] sm:$0xff] }
  0x91   : > { %v781_v52 = vpack.c.bf16 %v438_v49, %v431_v48  ;;  %v514_v47 = vld [vmem:[%s4398_s7 + $0x8c8] sm:$0xff]  ;;  %v521_v48 = vld [vmem:[%s4398_s7 + $0x900] sm:$0xff]  ;;  %v516_v49 = vld [vmem:[%s4398_s7 + $0x8d8] sm:$0xff] }
  0x92   : > { %v822_v51 = vpack.c.bf16 %v521_v48, %v514_v47  ;;  %v245_v37 = vld [vmem:[%s4398_s7 + $0x60] sm:$0xff]  ;;  %v259_v47 = vld [vmem:[%s4398_s7 + $0xd0] sm:$0xff] }
  0x97   : > { %1506 = vmatmul.mubr.bf16.gmra.mrb[36].mxu1 %v744_v40  ;;  %1795 = vmatmul.mubr.bf16.gmra.mrb[36].mxu0 %v746_v14  ;;  %v443_v40 = vld [vmem:[%s4398_s7 + $0x690] sm:$0xff]  ;;  %v450_v14 = vld [vmem:[%s4398_s7 + $0x6c8] sm:$0xff] }
  0x98   : > { %1513 = vmatprep.mubr.bf16.mxu1 %v752_v55  ;;  %1802 = vmatprep.mubr.bf16.mxu0 %v754_v56  ;;  %v445_v55 = vld [vmem:[%s4398_s7 + $0x6a0] sm:$0xff]  ;;  %v452_v56 = vld [vmem:[%s4398_s7 + $0x6d8] sm:$0xff]  ;;  %v786_v16 = vpack.c.bf16 %v450_v14, %v443_v40  ;;  %v522_v40 = vld [vmem:[%s4398_s7 + $0x908] sm:$0xff] }
  0x99   : > { %v788_v61 = vpack.c.bf16 %v452_v56, %v445_v55  ;;  %v528_v14 = vld [vmem:[%s4398_s7 + $0x938] sm:$0xff]  ;;  %v535_v55 = vld [vmem:[%s4398_s7 + $0x970] sm:$0xff]  ;;  %v530_v56 = vld [vmem:[%s4398_s7 + $0x948] sm:$0xff] }
  0x9a   : > { %v829_v60 = vpack.c.bf16 %v535_v55, %v528_v14  ;;  %v273_v14 = vld [vmem:[%s4398_s7 + $0x140] sm:$0xff] }
  0x9f   : > { %1514 = vmatmul.mubr.bf16.gmra.mrb[40].mxu1 %v751_v0  ;;  %1803 = vmatmul.mubr.bf16.gmra.mrb[40].mxu0 %v753_v2  ;;  %v457_v0 = vld [vmem:[%s4398_s7 + $0x700] sm:$0xff]  ;;  %v464_v2 = vld [vmem:[%s4398_s7 + $0x738] sm:$0xff] }
  0xa0   : > { %1521 = vmatprep.mubr.bf16.mxu1 %v759_v3  ;;  %1810 = vmatprep.mubr.bf16.mxu0 %v761_v5  ;;  %v459_v3 = vld [vmem:[%s4398_s7 + $0x710] sm:$0xff]  ;;  %v466_v5 = vld [vmem:[%s4398_s7 + $0x748] sm:$0xff]  ;;  %v793_v11 = vpack.c.bf16 %v464_v2, %v457_v0  ;;  %v536_v0 = vld [vmem:[%s4398_s7 + $0x978] sm:$0xff] }
  0xa1   : > { %v795_v13 = vpack.c.bf16 %v466_v5, %v459_v3  ;;  %v542_v2 = vld [vmem:[%s4398_s7 + $0x9a8] sm:$0xff]  ;;  %v549_v3 = vld [vmem:[%s4398_s7 + $0x9e0] sm:$0xff]  ;;  %v544_v5 = vld [vmem:[%s4398_s7 + $0x9b8] sm:$0xff] }
  0xa2   : > { %v836_v4 = vpack.c.bf16 %v549_v3, %v542_v2  ;;  %v287_v2 = vld [vmem:[%s4398_s7 + $0x1b0] sm:$0xff] }
  0xa7   : > { %1522 = vmatmul.mubr.bf16.gmra.mrb[44].mxu1 %v758_v26  ;;  %1811 = vmatmul.mubr.bf16.gmra.mrb[44].mxu0 %v760_v19  ;;  %v471_v26 = vld [vmem:[%s4398_s7 + $0x770] sm:$0xff]  ;;  %v478_v19 = vld [vmem:[%s4398_s7 + $0x7a8] sm:$0xff] }
  0xa8   : > { %1529 = vmatprep.mubr.bf16.mxu1 %v766_v20  ;;  %1818 = vmatprep.mubr.bf16.mxu0 %v768_v21  ;;  %v473_v20 = vld [vmem:[%s4398_s7 + $0x780] sm:$0xff]  ;;  %v800_v25 = vpack.c.bf16 %v478_v19, %v471_v26  ;;  %v550_v26 = vld [vmem:[%s4398_s7 + $0x9e8] sm:$0xff]  ;;  %v556_v19 = vld [vmem:[%s4398_s7 + $0xa18] sm:$0xff] }
  0xa9   : > { %v4731_v21 = vld [vmem:[%s5780_s1 + $0x180] sm:$0xff]   ;;  %v802_v27 = vpack.c.bf16 %v480_v22, %v473_v20  ;;  %v563_v20 = vld [vmem:[%s4398_s7 + $0xa50] sm:$0xff]  ;;  %v558_v22 = vld [vmem:[%s4398_s7 + $0xa28] sm:$0xff] }
  0xaa   : > { %3582 = vmatprep.subr.bf16.mxu1 %v4731_v21 }
  0xaf   : > { %1530 = vmatmul.mubr.bf16.gmra.mrb[48].mxu1 %v765_v31  ;;  %1819 = vmatmul.mubr.bf16.gmra.mrb[48].mxu0 %v767_v30  ;;  %v810_v31 = vpack.c.bf16 %v495_v24, %v488_v6  ;;  %v485_v30 = vld [vmem:[%s4398_s7 + $0x7e0] sm:$0xff]  ;;  %v843_v24 = vpack.c.bf16 %v563_v20, %v556_v19  ;;  %v294_v19 = vld [vmem:[%s4398_s7 + $0x1e8] sm:$0xff] }
  0xb0   : > { %1537 = vmatprep.mubr.bf16.mxu1 %v773_v8  ;;  %1826 = vmatprep.mubr.bf16.mxu0 %v775_v33  ;;  %v492_v8 = vld [vmem:[%s4398_s7 + $0x818] sm:$0xff]  ;;  %v487_v33 = vld [vmem:[%s4398_s7 + $0x7f0] sm:$0xff]  ;;  %v301_v20 = vld [vmem:[%s4398_s7 + $0x220] sm:$0xff] }
  0xb1   : > { %v807_v41 = vpack.c.bf16 %v492_v8, %v485_v30  ;;  %v809_v42 = vpack.c.bf16 %v494_v35, %v487_v33  ;;  %v564_v30 = vld [vmem:[%s4398_s7 + $0xa58] sm:$0xff]  ;;  %v570_v8 = vld [vmem:[%s4398_s7 + $0xa88] sm:$0xff]  ;;  %v577_v33 = vld [vmem:[%s4398_s7 + $0xac0] sm:$0xff] }
  0xb2   : > { %v238_v35 = vld [vmem:[%s4398_s7 + $0x28] sm:$0xff] }
  0xb7   : > { %1538 = vmatmul.mubr.bf16.gmra.mrb[52].mxu1 %v772_v43  ;;  %1827 = vmatmul.mubr.bf16.gmra.mrb[52].mxu0 %v774_v44  ;;  %v817_v43 = vpack.c.bf16 %v509_v39, %v502_v32  ;;  %v499_v44 = vld [vmem:[%s4398_s7 + $0x850] sm:$0xff]  ;;  %v850_v39 = vpack.c.bf16 %v577_v33, %v570_v8  ;;  %v300_v8 = vld [vmem:[%s4398_s7 + $0x218] sm:$0xff] }
  0xb8   : > { %1545 = vmatprep.mubr.bf16.mxu1 %v780_v34  ;;  %1834 = vmatprep.mubr.bf16.mxu0 %v782_v45  ;;  %v506_v34 = vld [vmem:[%s4398_s7 + $0x888] sm:$0xff]  ;;  %v501_v45 = vld [vmem:[%s4398_s7 + $0x860] sm:$0xff]  ;;  %v640_v33 = vld [vmem:[%s4398_s7 + $0xcb8] sm:$0xff] }
  0xb9   : > { %v814_v50 = vpack.c.bf16 %v506_v34, %v499_v44  ;;  %v816_v36 = vpack.c.bf16 %v508_v46, %v501_v45  ;;  %v244_v44 = vld [vmem:[%s4398_s7 + $0x58] sm:$0xff]  ;;  %v591_v45 = vld [vmem:[%s4398_s7 + $0xb30] sm:$0xff] }
  0xba   : > { %v584_v34 = vld [vmem:[%s4398_s7 + $0xaf8] sm:$0xff] }
  0xbb   : > { %v252_v46 = vld [vmem:[%s4398_s7 + $0x98] sm:$0xff] }
  0xbf   : > { %1546 = vmatmul.mubr.bf16.gmra.mrb[56].mxu1 %v779_v1  ;;  %1835 = vmatmul.mubr.bf16.gmra.mrb[56].mxu0 %v781_v52  ;;  %v824_v1 = vpack.c.bf16 %v523_v12, %v516_v49  ;;  %v513_v52 = vld [vmem:[%s4398_s7 + $0x8c0] sm:$0xff]  ;;  %v857_v12 = vpack.c.bf16 %v591_v45, %v584_v34  ;;  %v639_v45 = vld [vmem:[%s4398_s7 + $0xcb0] sm:$0xff] }
  0xc0   : > { %1553 = vmatprep.mubr.bf16.mxu1 %v787_v53  ;;  %1842 = vmatprep.mubr.bf16.mxu0 %v789_v54  ;;  %v520_v53 = vld [vmem:[%s4398_s7 + $0x8f8] sm:$0xff]  ;;  %v515_v54 = vld [vmem:[%s4398_s7 + $0x8d0] sm:$0xff] }
  0xc1   : > { %v821_v58 = vpack.c.bf16 %v520_v53, %v513_v52  ;;  %v823_v59 = vpack.c.bf16 %v522_v40, %v515_v54  ;;  %v258_v52 = vld [vmem:[%s4398_s7 + $0xc8] sm:$0xff]  ;;  %v605_v54 = vld [vmem:[%s4398_s7 + $0xba0] sm:$0xff] }
  0xc2   : > { %v598_v53 = vld [vmem:[%s4398_s7 + $0xb68] sm:$0xff] }
  0xc3   : > { %v266_v40 = vld [vmem:[%s4398_s7 + $0x108] sm:$0xff] }
  0xc7   : > { %1554 = vmatmul.mubr.bf16.gmra.mrb[60].mxu1 %v786_v16  ;;  %1843 = vmatmul.mubr.bf16.gmra.mrb[60].mxu0 %v788_v61  ;;  %v831_v16 = vpack.c.bf16 %v537_v57, %v530_v56  ;;  %v527_v61 = vld [vmem:[%s4398_s7 + $0x930] sm:$0xff]  ;;  %v864_v57 = vpack.c.bf16 %v605_v54, %v598_v53 }
  0xc8   : > { %1561 = vmatprep.mubr.bf16.mxu1 %v794_v62  ;;  %1850 = vmatprep.mubr.bf16.mxu0 %v796_v63  ;;  %v534_v62 = vld [vmem:[%s4398_s7 + $0x968] sm:$0xff]  ;;  %v529_v63 = vld [vmem:[%s4398_s7 + $0x940] sm:$0xff] }
  0xc9   : > { %v828_v18 = vpack.c.bf16 %v534_v62, %v527_v61  ;;  %v830_v9 = vpack.c.bf16 %v536_v0, %v529_v63  ;;  %v272_v61 = vld [vmem:[%s4398_s7 + $0x138] sm:$0xff]  ;;  %v619_v63 = vld [vmem:[%s4398_s7 + $0xc10] sm:$0xff] }
  0xca   : > { %v612_v62 = vld [vmem:[%s4398_s7 + $0xbd8] sm:$0xff] }
  0xcb   : > { %v280_v0 = vld [vmem:[%s4398_s7 + $0x178] sm:$0xff] }
  0xcf   : > { %1562 = vmatmul.mubr.bf16.gmra.mrb[64].mxu1 %v793_v11  ;;  %1851 = vmatmul.mubr.bf16.gmra.mrb[64].mxu0 %v795_v13  ;;  %v838_v11 = vpack.c.bf16 %v551_v7, %v544_v5  ;;  %v541_v13 = vld [vmem:[%s4398_s7 + $0x9a0] sm:$0xff]  ;;  %v871_v7 = vpack.c.bf16 %v619_v63, %v612_v62  ;;  %v336_v62 = vld [vmem:[%s4398_s7 + $0x338] sm:$0xff]  ;;  %v343_v63 = vld [vmem:[%s4398_s7 + $0x370] sm:$0xff] }
  0xd0   : > { %1569 = vmatprep.mubr.bf16.mxu1 %v801_v15  ;;  %1858 = vmatprep.mubr.bf16.mxu0 %v803_v17  ;;  %v548_v15 = vld [vmem:[%s4398_s7 + $0x9d8] sm:$0xff]  ;;  %v543_v17 = vld [vmem:[%s4398_s7 + $0x9b0] sm:$0xff] }
  0xd1   : > { %v835_v23 = vpack.c.bf16 %v548_v15, %v541_v13  ;;  %v837_v6 = vpack.c.bf16 %v550_v26, %v543_v17  ;;  %v286_v13 = vld [vmem:[%s4398_s7 + $0x1a8] sm:$0xff]  ;;  %v633_v17 = vld [vmem:[%s4398_s7 + $0xc80] sm:$0xff] }
  0xd2   : > { %v626_v15 = vld [vmem:[%s4398_s7 + $0xc48] sm:$0xff] }
  0xd7   : > { %1570 = vmatmul.mubr.bf16.gmra.mrb[68].mxu1 %v800_v25  ;;  %1859 = vmatmul.mubr.bf16.gmra.mrb[68].mxu0 %v802_v27  ;;  %v845_v25 = vpack.c.bf16 %v565_v28, %v558_v22  ;;  %v555_v27 = vld [vmem:[%s4398_s7 + $0xa10] sm:$0xff] }
  0xd8   : > { %1577 = vmatprep.mubr.bf16.mxu1 %v808_v29  ;;  %1866 = vmatprep.mubr.bf16.mxu0 %v810_v31  ;;  %v562_v29 = vld [vmem:[%s4398_s7 + $0xa48] sm:$0xff]  ;;  %v557_v31 = vld [vmem:[%s4398_s7 + $0xa20] sm:$0xff] }
  0xd9   : > { %v842_v38 = vpack.c.bf16 %v562_v29, %v555_v27  ;;  %v844_v32 = vpack.c.bf16 %v564_v30, %v557_v31  ;;  %v714_v27 = vpack.c.bf16 %v301_v20, %v294_v19  ;;  %v625_v29 = vld [vmem:[%s4398_s7 + $0xc40] sm:$0xff]  ;;  %v632_v31 = vld [vmem:[%s4398_s7 + $0xc78] sm:$0xff]  ;;  %v579_v19 = vld [vmem:[%s4398_s7 + $0xad0] sm:$0xff] }
  0xda   : > { %v293_v30 = vld [vmem:[%s4398_s7 + $0x1e0] sm:$0xff] }
  0xdf   : > { %1578 = vmatmul.mubr.bf16.gmra.mrb[72].mxu1 %v807_v41  ;;  %1867 = vmatmul.mubr.bf16.gmra.mrb[72].mxu0 %v809_v42  ;;  %v686_v41 = vpack.c.bf16 %v245_v37, %v238_v35  ;;  %v569_v42 = vld [vmem:[%s4398_s7 + $0xa80] sm:$0xff]  ;;  %v647_v35 = vld [vmem:[%s4398_s7 + $0xcf0] sm:$0xff] }
  0xe0   : > { %1585 = vmatprep.mubr.bf16.mxu1 %v815_v10  ;;  %1874 = vmatprep.mubr.bf16.mxu0 %v817_v43  ;;  %v576_v10 = vld [vmem:[%s4398_s7 + $0xab8] sm:$0xff]  ;;  %v237_v43 = vld [vmem:[%s4398_s7 + $0x20] sm:$0xff] }
  0xe1   : > { %v849_v48 = vpack.c.bf16 %v576_v10, %v569_v42  ;;  %v685_v49 = vpack.c.bf16 %v244_v44, %v237_v43  ;;  %v713_v10 = vpack.c.bf16 %v300_v8, %v293_v30  ;;  %v885_v43 = vpack.c.bf16 %v647_v35, %v640_v33  ;;  %v571_v8 = vld [vmem:[%s4398_s7 + $0xa90] sm:$0xff]  ;;  %v578_v33 = vld [vmem:[%s4398_s7 + $0xac8] sm:$0xff]  ;;  %v349_v35 = vld [vmem:[%s4398_s7 + $0x3a0] sm:$0xff] }
  0xe7   : > { %1586 = vmatmul.mubr.bf16.gmra.mrb[76].mxu1 %v814_v50  ;;  %1875 = vmatmul.mubr.bf16.gmra.mrb[76].mxu0 %v816_v36  ;;  %v693_v50 = vpack.c.bf16 %v259_v47, %v252_v46  ;;  %v583_v36 = vld [vmem:[%s4398_s7 + $0xaf0] sm:$0xff]  ;;  %v646_v46 = vld [vmem:[%s4398_s7 + $0xce8] sm:$0xff] }
  0xe8   : > { %1593 = vmatprep.mubr.bf16.mxu1 %v822_v51  ;;  %1882 = vmatprep.mubr.bf16.mxu0 %v824_v1  ;;  %v590_v51 = vld [vmem:[%s4398_s7 + $0xb28] sm:$0xff]  ;;  %v251_v1 = vld [vmem:[%s4398_s7 + $0x90] sm:$0xff] }
  0xe9   : > { %v856_v55 = vpack.c.bf16 %v590_v51, %v583_v36  ;;  %v692_v56 = vpack.c.bf16 %v258_v52, %v251_v1  ;;  %v307_v47 = vld [vmem:[%s4398_s7 + $0x250] sm:$0xff]  ;;  %v322_v36 = vld [vmem:[%s4398_s7 + $0x2c8] sm:$0xff]  ;;  %v329_v51 = vld [vmem:[%s4398_s7 + $0x300] sm:$0xff]  ;;  %v884_v52 = vpack.c.bf16 %v646_v46, %v639_v45 }
  0xef   : > { %1594 = vmatmul.mubr.bf16.gmra.mrb[80].mxu1 %v821_v58  ;;  %1883 = vmatmul.mubr.bf16.gmra.mrb[80].mxu0 %v823_v59  ;;  %v700_v58 = vpack.c.bf16 %v273_v14, %v266_v40  ;;  %v597_v59 = vld [vmem:[%s4398_s7 + $0xb60] sm:$0xff] }
  0xf0   : > { %1601 = vmatprep.mubr.bf16.mxu1 %v829_v60  ;;  %1890 = vmatprep.mubr.bf16.mxu0 %v831_v16  ;;  %v604_v60 = vld [vmem:[%s4398_s7 + $0xb98] sm:$0xff]  ;;  %v265_v16 = vld [vmem:[%s4398_s7 + $0x100] sm:$0xff] }
  0xf1   : > { %v863_v3 = vpack.c.bf16 %v604_v60, %v597_v59  ;;  %v699_v5 = vpack.c.bf16 %v272_v61, %v265_v16  ;;  %v328_v59 = vld [vmem:[%s4398_s7 + $0x2f8] sm:$0xff]  ;;  %v675_v16 = vld [vmem:[%s4398_s7 + $0xdd0] sm:$0xff] }
  0xf2   : > { %v668_v60 = vld [vmem:[%s4398_s7 + $0xd98] sm:$0xff] }
  0xf7   : > { %1602 = vmatmul.mubr.bf16.gmra.mrb[84].mxu1 %v828_v18  ;;  %1891 = vmatmul.mubr.bf16.gmra.mrb[84].mxu0 %v830_v9  ;;  %v707_v18 = vpack.c.bf16 %v287_v2, %v280_v0  ;;  %v611_v9 = vld [vmem:[%s4398_s7 + $0xbd0] sm:$0xff] }
  0xf8   : > { %1609 = vmatprep.mubr.bf16.mxu1 %v836_v4  ;;  %1898 = vmatprep.mubr.bf16.mxu0 %v838_v11  ;;  %v618_v4 = vld [vmem:[%s4398_s7 + $0xc08] sm:$0xff]  ;;  %v279_v11 = vld [vmem:[%s4398_s7 + $0x170] sm:$0xff] }
  0xf9   : > { %v870_v28 = vpack.c.bf16 %v618_v4, %v611_v9  ;;  %v735_v9 = vpack.c.bf16 %v343_v63, %v336_v62  ;;  %v667_v4 = vld [vmem:[%s4398_s7 + $0xd90] sm:$0xff]  ;;  %v606_v63 = vld [vmem:[%s4398_s7 + $0xba8] sm:$0xff] }
  0xfa   : > { %v599_v62 = vld [vmem:[%s4398_s7 + $0xb70] sm:$0xff] }
  0xff   : > { %1610 = vmatmul.mubr.bf16.gmra.mrb[88].mxu1 %v835_v23  ;;  %1899 = vmatmul.mubr.bf16.gmra.mrb[88].mxu0 %v837_v6  ;;  %v706_v6 = vpack.c.bf16 %v286_v13, %v279_v11  ;;  %v674_v11 = vld [vmem:[%s4398_s7 + $0xdc8] sm:$0xff]  ;;  %v335_v13 = vld [vmem:[%s4398_s7 + $0x330] sm:$0xff] }
 0x100   : > { %1617 = vmatprep.mubr.bf16.mxu1 %v843_v24  ;;  %1906 = vmatprep.mubr.bf16.mxu0 %v845_v25  ;;  %v878_v24 = vpack.c.bf16 %v633_v17, %v626_v15  ;;  %v342_v15 = vld [vmem:[%s4398_s7 + $0x368] sm:$0xff]  ;;  %v572_v17 = vld [vmem:[%s4398_s7 + $0xa98] sm:$0xff] }
 0x107   : > { %1618 = vmatmul.mubr.bf16.gmra.mrb[92].mxu1 %v842_v38  ;;  %1907 = vmatmul.mubr.bf16.gmra.mrb[92].mxu0 %v844_v32  ;;  %v308_v38 = vld [vmem:[%s4398_s7 + $0x258] sm:$0xff]  ;;  %v315_v32 = vld [vmem:[%s4398_s7 + $0x290] sm:$0xff] }
 0x108   : > { %1625 = vmatprep.mubr.bf16.mxu1 %v850_v39  ;;  %2011 = vmatprep.mubr.bf16.mxu0 %v686_v41  ;;  %v877_v41 = vpack.c.bf16 %v632_v31, %v625_v29  ;;  %v721_v34 = vpack.c.bf16 %v315_v32, %v308_v38  ;;  %v852_v29 = vpack.c.bf16 %v579_v19, %v572_v17  ;;  %v356_v38 = vld [vmem:[%s4398_s7 + $0x3d8] sm:$0xff]  ;;  %v586_v32 = vld [vmem:[%s4398_s7 + $0xb08] sm:$0xff] }
 0x109   : > { %v741_v46 = vpack.c.bf16 %v356_v38, %v349_v35  ;;  %v413_v35 = vld [vmem:[%s4398_s7 + $0x5a0] sm:$0xff] }
 0x10f   : > { %1626 = vmatmul.mubr.bf16.gmra.mrb[96].mxu1 %v849_v48  ;;  %2012 = vmatmul.mubr.bf16.vlgmr.msra.gmra.mrb[0].mxu0 %v685_v49  ;;  %v314_v48 = vld [vmem:[%s4398_s7 + $0x288] sm:$0xff] }
 0x110   : > { %1633 = vmatprep.mubr.bf16.mxu1 %v857_v12  ;;  %2019 = vmatprep.mubr.bf16.mxu0 %v693_v50  ;;  %v654_v49 = vld [vmem:[%s4398_s7 + $0xd28] sm:$0xff]  ;;  %v661_v12 = vld [vmem:[%s4398_s7 + $0xd60] sm:$0xff]  ;;  %v720_v54 = vpack.c.bf16 %v314_v48, %v307_v47 }
 0x111   : > { %v892_v40 = vpack.c.bf16 %v661_v12, %v654_v49  ;;  %v585_v12 = vld [vmem:[%s4398_s7 + $0xb00] sm:$0xff] }
 0x117   : > { %1634 = vmatmul.mubr.bf16.gmra.mrb[100].mxu1 %v856_v55  ;;  %2020 = vmatmul.mubr.bf16.gmra.mrb[4].mxu0 %v692_v56  ;;  %v728_v55 = vpack.c.bf16 %v329_v51, %v322_v36  ;;  %v653_v56 = vld [vmem:[%s4398_s7 + $0xd20] sm:$0xff]  ;;  %v592_v36 = vld [vmem:[%s4398_s7 + $0xb38] sm:$0xff]  ;;  %v363_v51 = vld [vmem:[%s4398_s7 + $0x410] sm:$0xff] }
 0x118   : > { %1641 = vmatprep.mubr.bf16.mxu1 %v864_v57  ;;  %2027 = vmatprep.mubr.bf16.mxu0 %v700_v58  ;;  %v660_v57 = vld [vmem:[%s4398_s7 + $0xd58] sm:$0xff]  ;;  %v321_v58 = vld [vmem:[%s4398_s7 + $0x2c0] sm:$0xff] }
 0x119   : > { %v891_v2 = vpack.c.bf16 %v660_v57, %v653_v56 }
 0x11f   : > { %1642 = vmatmul.mubr.bf16.gmra.mrb[104].mxu1 %v863_v3  ;;  %2028 = vmatmul.mubr.bf16.gmra.mrb[8].mxu0 %v699_v5  ;;  %v727_v5 = vpack.c.bf16 %v328_v59, %v321_v58 }
 0x120   : > { %1649 = vmatprep.mubr.bf16.mxu1 %v871_v7  ;;  %2035 = vmatprep.mubr.bf16.mxu0 %v707_v18  ;;  %v899_v7 = vpack.c.bf16 %v675_v16, %v668_v60 }
 0x122   : > { %v4817_v26 = vpop.f32.mrb[0].mxu1 }
 0x123   : > { %v1437_v22 = vpop.f32.mrb[1].mxu1 }
 0x124   : > { %v4821_v23 = vpop.f32.mrb[2].mxu1  ;;  %v350_v22 = vld [vmem:[%s4398_s7 + $0x3a8] sm:$0xff] }
 0x125   : > { %v1440_v25 = vpop.f32.mrb[3].mxu1 }
 0x127   : > { %1650 = vmatmul.mubr.bf16.gmra.mrb[108].mxu1 %v870_v28  ;;  %2036 = vmatmul.mubr.bf16.gmra.mrb[12].mxu0 %v706_v6  ;;  %v357_v28 = vld [vmem:[%s4398_s7 + $0x3e0] sm:$0xff] }
 0x128   : > { %1657 = vmatprep.mubr.bf16.mxu1 %v878_v24  ;;  %2043 = vmatprep.mubr.bf16.mxu0 %v714_v27  ;;  %v898_v24 = vpack.c.bf16 %v674_v11, %v667_v4  ;;  %v734_v27 = vpack.c.bf16 %v342_v15, %v335_v13  ;;  %v742_v30 = vpack.c.bf16 %v357_v28, %v350_v22  ;;  %v399_v4 = vld [vmem:[%s4398_s7 + $0x530] sm:$0xff] }
 0x129   : > { %v865_v13 = vpack.c.bf16 %v606_v63, %v599_v62  ;;  %v419_v62 = vld [vmem:[%s4398_s7 + $0x5d0] sm:$0xff]  ;;  %v426_v63 = vld [vmem:[%s4398_s7 + $0x608] sm:$0xff] }
 0x12a   : > { %v4829_v37 = vpop.f32.mrb[4].mxu1 }
 0x12b   : > { %v1445_v39 = vpop.f32.mrb[5].mxu1 }
 0x12c   : > { %v4833_v42 = vpop.f32.mrb[6].mxu1 }
 0x12d   : > { %v1448_v44 = vpop.f32.mrb[7].mxu1 }
 0x12f   : > { %1658 = vmatmul.mubr.bf16.gmra.mrb[112].mxu1 %v877_v41  ;;  %2044 = vmatmul.mubr.bf16.gmra.mrb[16].mxu0 %v713_v10  ;;  %v593_v41 = vld [vmem:[%s4398_s7 + $0xb40] sm:$0xff]  ;;  %v364_v10 = vld [vmem:[%s4398_s7 + $0x418] sm:$0xff] }
 0x130   : > { %1665 = vmatprep.mubr.bf16.mxu1 %v885_v43  ;;  %2051 = vmatprep.mubr.bf16.mxu0 %v721_v34  ;;  %v371_v43 = vld [vmem:[%s4398_s7 + $0x450] sm:$0xff]  ;;  %v851_v34 = vpack.c.bf16 %v578_v33, %v571_v8  ;;  %v859_v48 = vpack.c.bf16 %v593_v41, %v586_v32  ;;  %v406_v33 = vld [vmem:[%s4398_s7 + $0x568] sm:$0xff] }
 0x131   : > { %v749_v49 = vpack.c.bf16 %v371_v43, %v364_v10 }
 0x132   : > { %v4841_v50 = vpop.f32.mrb[8].mxu1 }
 0x133   : > { %v1453_v1 = vpop.f32.mrb[9].mxu1 }
 0x134   : > { %v4845_v53 = vpop.f32.mrb[10].mxu1  ;;  %v370_v1 = vld [vmem:[%s4398_s7 + $0x448] sm:$0xff] }
 0x135   : > { %v1456_v14 = vpop.f32.mrb[11].mxu1  ;;  %v748_v58 = vpack.c.bf16 %v370_v1, %v363_v51  ;;  %v420_v1 = vld [vmem:[%s4398_s7 + $0x5d8] sm:$0xff] }
 0x136   : > { %v378_v14 = vld [vmem:[%s4398_s7 + $0x488] sm:$0xff] }
 0x137   : > { %1666 = vmatmul.mubr.bf16.gmra.mrb[116].mxu1 %v884_v52  ;;  %2052 = vmatmul.mubr.bf16.gmra.mrb[20].mxu0 %v720_v54  ;;  %v600_v52 = vld [vmem:[%s4398_s7 + $0xb78] sm:$0xff]  ;;  %v607_v54 = vld [vmem:[%s4398_s7 + $0xbb0] sm:$0xff] }
 0x138   : > { %1673 = vmatprep.mubr.bf16.mxu1 %v892_v40  ;;  %2059 = vmatprep.mubr.bf16.mxu0 %v728_v55  ;;  %v385_v55 = vld [vmem:[%s4398_s7 + $0x4c0] sm:$0xff]  ;;  %v866_v59 = vpack.c.bf16 %v607_v54, %v600_v52  ;;  %v427_v52 = vld [vmem:[%s4398_s7 + $0x610] sm:$0xff] }
 0x139   : > { %v756_v16 = vpack.c.bf16 %v385_v55, %v378_v14 }
 0x13a   : > { %v4853_v61 = vpop.f32.mrb[12].mxu1 }
 0x13b   : > { %v1461_v0 = vpop.f32.mrb[13].mxu1 }
 0x13c   : > { %v4857_v3 = vpop.f32.mrb[14].mxu1  ;;  %v377_v0 = vld [vmem:[%s4398_s7 + $0x480] sm:$0xff] }
 0x13d   : > { %v1464_v18 = vpop.f32.mrb[15].mxu1 }
 0x13f   : > { %1674 = vmatmul.mubr.bf16.gmra.mrb[120].mxu1 %v891_v2  ;;  %2060 = vmatmul.mubr.bf16.gmra.mrb[24].mxu0 %v727_v5  ;;  %v384_v2 = vld [vmem:[%s4398_s7 + $0x4b8] sm:$0xff]  ;;  %v614_v5 = vld [vmem:[%s4398_s7 + $0xbe8] sm:$0xff] }
 0x140   : > { %1681 = vmatprep.mubr.bf16.mxu1 %v899_v7  ;;  %2067 = vmatprep.mubr.bf16.mxu0 %v735_v9  ;;  %v621_v7 = vld [vmem:[%s4398_s7 + $0xc20] sm:$0xff]  ;;  %v392_v9 = vld [vmem:[%s4398_s7 + $0x4f8] sm:$0xff]  ;;  %v755_v17 = vpack.c.bf16 %v384_v2, %v377_v0  ;;  %v663_v2 = vld [vmem:[%s4398_s7 + $0xd70] sm:$0xff] }
 0x141   : > { %v873_v19 = vpack.c.bf16 %v621_v7, %v614_v5  ;;  %v763_v28 = vpack.c.bf16 %v399_v4, %v392_v9  ;;  %v656_v0 = vld [vmem:[%s4398_s7 + $0xd38] sm:$0xff]  ;;  %v434_v7 = vld [vmem:[%s4398_s7 + $0x648] sm:$0xff]  ;;  %v441_v9 = vld [vmem:[%s4398_s7 + $0x680] sm:$0xff] }
 0x142   : > { %v4865_v20 = vpop.f32.mrb[16].mxu1 }
 0x143   : > { %v1469_v6 = vpop.f32.mrb[17].mxu1 }
 0x144   : > { %v4869_v25 = vpop.f32.mrb[18].mxu1  ;;  %v613_v6 = vld [vmem:[%s4398_s7 + $0xbe0] sm:$0xff] }
 0x145   : > { %v1472_v31 = vpop.f32.mrb[19].mxu1 }
 0x146   : > { %v628_v31 = vld [vmem:[%s4398_s7 + $0xc58] sm:$0xff] }
 0x147   : > { %1682 = vmatmul.mubr.bf16.gmra.mrb[124].mxu1 %v898_v24  ;;  %2068 = vmatmul.mubr.bf16.gmra.mrb[28].mxu0 %v734_v27  ;;  %v620_v24 = vld [vmem:[%s4398_s7 + $0xc18] sm:$0xff]  ;;  %v391_v27 = vld [vmem:[%s4398_s7 + $0x4f0] sm:$0xff] }
 0x148   : > { %1914 = vmatprep.mubr.bf16.mxu1 %v852_v29  ;;  %2075 = vmatprep.mubr.bf16.mxu0 %v742_v30  ;;  %v398_v29 = vld [vmem:[%s4398_s7 + $0x528] sm:$0xff]  ;;  %v635_v30 = vld [vmem:[%s4398_s7 + $0xc90] sm:$0xff]  ;;  %v872_v32 = vpack.c.bf16 %v620_v24, %v613_v6 }
 0x149   : > { %v762_v10 = vpack.c.bf16 %v398_v29, %v391_v27  ;;  %v880_v43 = vpack.c.bf16 %v635_v30, %v628_v31  ;;  %v655_v6 = vld [vmem:[%s4398_s7 + $0xd30] sm:$0xff]  ;;  %v662_v24 = vld [vmem:[%s4398_s7 + $0xd68] sm:$0xff]  ;;  %v433_v27 = vld [vmem:[%s4398_s7 + $0x640] sm:$0xff] }
 0x14a   : > { %v4876_v39 = vpop.f32.mrb[20].mxu1  ;;  %v440_v29 = vld [vmem:[%s4398_s7 + $0x678] sm:$0xff]  ;;  %v670_v31 = vld [vmem:[%s4398_s7 + $0xda8] sm:$0xff]  ;;  %v677_v30 = vld [vmem:[%s4398_s7 + $0xde0] sm:$0xff] }
 0x14b   : > { %v1477_v44 = vpop.f32.mrb[21].mxu1 }
 0x14c   : > { %v4881_v45 = vpop.f32.mrb[22].mxu1 }
 0x14d   : > { %v1480_v47 = vpop.f32.mrb[23].mxu1 }
 0x14e   : > { %v634_v47 = vld [vmem:[%s4398_s7 + $0xc88] sm:$0xff] }
 0x14f   : > { %1915 = vmatmul.mubr.bf16.vlgmr.msra.gmra.mrb[96].mxu1 %v851_v34  ;;  %2076 = vmatmul.mubr.bf16.gmra.mrb[32].mxu0 %v741_v46  ;;  %v770_v34 = vpack.c.bf16 %v413_v35, %v406_v33  ;;  %v627_v46 = vld [vmem:[%s4398_s7 + $0xc50] sm:$0xff]  ;;  %v448_v35 = vld [vmem:[%s4398_s7 + $0x6b8] sm:$0xff] }
 0x150   : > { %3583 = vmatpush3.bf16.msra.mxu1 %v4731_v21  ;;  %1922 = vmatprep.mubr.bf16.mxu1 %v859_v48  ;;  %v858_v21 = vpack.c.bf16 %v592_v36, %v585_v12  ;;  %v405_v48 = vld [vmem:[%s4398_s7 + $0x560] sm:$0xff]  ;;  %v642_v12 = vld [vmem:[%s4398_s7 + $0xcc8] sm:$0xff]  ;;  %v879_v14 = vpack.c.bf16 %v634_v47, %v627_v46 }
 0x151   : > { %2083 = vmatprep.mubr.bf16.mxu0 %v749_v49  ;;  %v412_v49 = vld [vmem:[%s4398_s7 + $0x598] sm:$0xff]  ;;  %v649_v36 = vld [vmem:[%s4398_s7 + $0xd00] sm:$0xff] }
 0x152   : > { %v4890_v40 = vpop.f32.mrb[24].mxu1 }
 0x153   : > { %v1485_v56 = vpop.f32.mrb[25].mxu1 }
 0x154   : > { %v4894_v57 = vpop.f32.mrb[26].mxu1  ;;  %v769_v56 = vpack.c.bf16 %v412_v49, %v405_v48  ;;  %v669_v48 = vld [vmem:[%s4398_s7 + $0xda0] sm:$0xff]  ;;  %v676_v49 = vld [vmem:[%s4398_s7 + $0xdd8] sm:$0xff] }
 0x155   : > { %v1488_v60 = vpop.f32.mrb[27].mxu1 }
 0x156   : > { %v641_v60 = vld [vmem:[%s4398_s7 + $0xcc0] sm:$0xff] }
 0x157   : > { %1923 = vmatmul.mubr.bf16.gmra.mrb[100].mxu1 %v858_v21  ;;  %2084 = vmatmul.mubr.bf16.gmra.mrb[36].mxu0 %v748_v58  ;;  %v887_v21 = vpack.c.bf16 %v649_v36, %v642_v12  ;;  %v447_v12 = vld [vmem:[%s4398_s7 + $0x6b0] sm:$0xff]  ;;  %v454_v36 = vld [vmem:[%s4398_s7 + $0x6e8] sm:$0xff] }
 0x158   : > { %1930 = vmatprep.mubr.bf16.mxu1 %v866_v59  ;;  %2091 = vmatprep.mubr.bf16.mxu0 %v756_v16  ;;  %v777_v59 = vpack.c.bf16 %v427_v52, %v420_v1  ;;  %v648_v16 = vld [vmem:[%s4398_s7 + $0xcf8] sm:$0xff]  ;;  %v239_v1 = vld [vmem:[%s4398_s7 + $0x30] sm:$0xff]  ;;  %v246_v52 = vld [vmem:[%s4398_s7 + $0x68] sm:$0xff] }
 0x15a   : > { %v4902_v18 = vpop.f32.mrb[28].mxu1 }
 0x15b   : > { %v1493_v11 = vpop.f32.mrb[29].mxu1 }
 0x15c   : > { %v4906_v15 = vpop.f32.mrb[30].mxu1  ;;  %v886_v11 = vpack.c.bf16 %v648_v16, %v641_v60  ;;  %v790_v60 = vpack.c.bf16 %v454_v36, %v447_v12  ;;  %v687_v16 = vpack.c.bf16 %v246_v52, %v239_v1 }
 0x15d   : > { %v1496_v22 = vpop.f32.mrb[31].mxu1 }
 0x15f   : > { %1931 = vmatmul.mubr.bf16.gmra.mrb[104].mxu1 %v865_v13  ;;  %2092 = vmatmul.mubr.bf16.gmra.mrb[40].mxu0 %v755_v17  ;;  %v776_v17 = vpack.c.bf16 %v426_v63, %v419_v62 }
 0x160   : > { %1938 = vmatprep.mubr.bf16.mxu1 %v873_v19  ;;  %2099 = vmatprep.mubr.bf16.mxu0 %v763_v28  ;;  %v894_v19 = vpack.c.bf16 %v663_v2, %v656_v0  ;;  %v784_v28 = vpack.c.bf16 %v441_v9, %v434_v7  ;;  %v461_v0 = vld [vmem:[%s4398_s7 + $0x720] sm:$0xff]  ;;  %v260_v7 = vld [vmem:[%s4398_s7 + $0xd8] sm:$0xff] }
 0x161   : > { %v253_v2 = vld [vmem:[%s4398_s7 + $0xa0] sm:$0xff]  ;;  %v468_v9 = vld [vmem:[%s4398_s7 + $0x758] sm:$0xff] }
 0x162   : > { %v4914_v8 = vpop.f32.mrb[32].mxu1 }
 0x163   : > { %v1501_v38 = vpop.f32.mrb[33].mxu1 }
 0x164   : > { %v4918_v41 = vpop.f32.mrb[34].mxu1  ;;  %v455_v38 = vld [vmem:[%s4398_s7 + $0x6f0] sm:$0xff] }
 0x165   : > { %v1504_v44 = vpop.f32.mrb[35].mxu1  ;;  %v791_v47 = vpack.c.bf16 %v455_v38, %v448_v35  ;;  %v475_v35 = vld [vmem:[%s4398_s7 + $0x790] sm:$0xff]  ;;  %v281_v38 = vld [vmem:[%s4398_s7 + $0x180] sm:$0xff] }
 0x166   : > { %v783_v44 = vpack.c.bf16 %v440_v29, %v433_v27  ;;  %v797_v27 = vpack.c.bf16 %v468_v9, %v461_v0 }
 0x167   : > { %1939 = vmatmul.mubr.bf16.gmra.mrb[108].mxu1 %v872_v32  ;;  %2100 = vmatmul.mubr.bf16.gmra.mrb[44].mxu0 %v762_v10  ;;  %v893_v10 = vpack.c.bf16 %v662_v24, %v655_v6  ;;  %v694_v6 = vpack.c.bf16 %v260_v7, %v253_v2  ;;  %v504_v2 = vld [vmem:[%s4398_s7 + $0x878] sm:$0xff]  ;;  %v511_v7 = vld [vmem:[%s4398_s7 + $0x8b0] sm:$0xff] }
 0x168   : > { %1946 = vmatprep.mubr.bf16.mxu1 %v880_v43  ;;  %2107 = vmatprep.mubr.bf16.mxu0 %v770_v34  ;;  %v901_v34 = vpack.c.bf16 %v677_v30, %v670_v31 }
 0x16a   : > { %v4926_v51 = vpop.f32.mrb[36].mxu1 }
 0x16b   : > { %v1509_v54 = vpop.f32.mrb[37].mxu1 }
 0x16c   : > { %v4930_v55 = vpop.f32.mrb[38].mxu1 }
 0x16d   : > { %v1512_v58 = vpop.f32.mrb[39].mxu1 }
 0x16e   : > { %v900_v58 = vpack.c.bf16 %v676_v49, %v669_v48  ;;  %v497_v48 = vld [vmem:[%s4398_s7 + $0x840] sm:$0xff] }
 0x16f   : > { %1947 = vmatmul.mubr.bf16.gmra.mrb[112].mxu1 %v879_v14  ;;  %2108 = vmatmul.mubr.bf16.gmra.mrb[48].mxu0 %v769_v56  ;;  %v462_v14 = vld [vmem:[%s4398_s7 + $0x728] sm:$0xff]  ;;  %v469_v56 = vld [vmem:[%s4398_s7 + $0x760] sm:$0xff] }
 0x170   : > { %1954 = vmatprep.mubr.bf16.mxu1 %v887_v21  ;;  %2115 = vmatprep.mubr.bf16.mxu0 %v777_v59  ;;  %v798_v63 = vpack.c.bf16 %v469_v56, %v462_v14 }
 0x172   : > { %v4938_v5 = vpop.f32.mrb[40].mxu1 }
 0x173   : > { %v1517_v4 = vpop.f32.mrb[41].mxu1 }
 0x174   : > { %v4942_v13 = vpop.f32.mrb[42].mxu1  ;;  %v267_v4 = vld [vmem:[%s4398_s7 + $0x110] sm:$0xff] }
 0x175   : > { %v1520_v22 = vpop.f32.mrb[43].mxu1 }
 0x176   : > { %v483_v22 = vld [vmem:[%s4398_s7 + $0x7d0] sm:$0xff] }
 0x177   : > { %1955 = vmatmul.mubr.bf16.gmra.mrb[116].mxu1 %v886_v11  ;;  %2116 = vmatmul.mubr.bf16.gmra.mrb[52].mxu0 %v776_v17  ;;  %v274_v11 = vld [vmem:[%s4398_s7 + $0x148] sm:$0xff] }
 0x178   : > { %1962 = vmatprep.mubr.bf16.mxu1 %v894_v19  ;;  %2123 = vmatprep.mubr.bf16.mxu0 %v784_v28  ;;  %v476_v19 = vld [vmem:[%s4398_s7 + $0x798] sm:$0xff]  ;;  %v701_v29 = vpack.c.bf16 %v274_v11, %v267_v4 }
 0x179   : > { %v805_v30 = vpack.c.bf16 %v483_v22, %v476_v19 }
 0x17a   : > { %v4950_v33 = vpop.f32.mrb[44].mxu1 }
 0x17b   : > { %v1525_v32 = vpop.f32.mrb[45].mxu1 }
 0x17c   : > { %v4954_v43 = vpop.f32.mrb[46].mxu1  ;;  %v288_v32 = vld [vmem:[%s4398_s7 + $0x1b8] sm:$0xff] }
 0x17d   : > { %v1528_v46 = vpop.f32.mrb[47].mxu1  ;;  %v708_v12 = vpack.c.bf16 %v288_v32, %v281_v38  ;;  %v358_v38 = vld [vmem:[%s4398_s7 + $0x3e8] sm:$0xff] }
 0x17f   : > { %1963 = vmatmul.mubr.bf16.gmra.mrb[120].mxu1 %v893_v10  ;;  %2124 = vmatmul.mubr.bf16.gmra.mrb[56].mxu0 %v783_v44  ;;  %v482_v10 = vld [vmem:[%s4398_s7 + $0x7c8] sm:$0xff]  ;;  %v295_v44 = vld [vmem:[%s4398_s7 + $0x1f0] sm:$0xff] }
 0x180   : > { %1970 = vmatprep.mubr.bf16.mxu1 %v901_v34  ;;  %2131 = vmatprep.mubr.bf16.mxu0 %v791_v47  ;;  %v302_v34 = vld [vmem:[%s4398_s7 + $0x228] sm:$0xff]  ;;  %v804_v1 = vpack.c.bf16 %v482_v10, %v475_v35  ;;  %v351_v35 = vld [vmem:[%s4398_s7 + $0x3b0] sm:$0xff] }
 0x181   : > { %v490_v47 = vld [vmem:[%s4398_s7 + $0x808] sm:$0xff]  ;;  %v715_v52 = vpack.c.bf16 %v302_v34, %v295_v44  ;;  %v525_v44 = vld [vmem:[%s4398_s7 + $0x920] sm:$0xff] }
 0x182   : > { %v4962_v54 = vpop.f32.mrb[48].mxu1  ;;  %v812_v56 = vpack.c.bf16 %v497_v48, %v490_v47  ;;  %v518_v10 = vld [vmem:[%s4398_s7 + $0x8e8] sm:$0xff] }
 0x183   : > { %v1533_v21 = vpop.f32.mrb[49].mxu1 }
 0x184   : > { %v4966_v59 = vpop.f32.mrb[50].mxu1  ;;  %v489_v21 = vld [vmem:[%s4398_s7 + $0x800] sm:$0xff] }
 0x185   : > { %v1536_v62 = vpop.f32.mrb[51].mxu1 }
 0x186   : > { %v323_v62 = vld [vmem:[%s4398_s7 + $0x2d0] sm:$0xff] }
 0x187   : > { %1971 = vmatmul.mubr.bf16.gmra.mrb[124].mxu1 %v900_v58  ;;  %2132 = vmatmul.mubr.bf16.gmra.mrb[60].mxu0 %v790_v60  ;;  %v309_v58 = vld [vmem:[%s4398_s7 + $0x260] sm:$0xff]  ;;  %v316_v60 = vld [vmem:[%s4398_s7 + $0x298] sm:$0xff] }
 0x188   : > { %3584 = vmatprep.mubr.msk.bf16.mxu1 %vm1304_vm0, %v687_v16  ;;  %2139 = vmatprep.mubr.bf16.mxu0 %v798_v63  ;;  %v496_v16 = vld [vmem:[%s4398_s7 + $0x838] sm:$0xff]  ;;  %v330_v63 = vld [vmem:[%s4398_s7 + $0x308] sm:$0xff]  ;;  %v722_v4 = vpack.c.bf16 %v316_v60, %v309_v58  ;;  %v379_v60 = vld [vmem:[%s4398_s7 + $0x490] sm:$0xff] }
 0x189   : > { %v811_v19 = vpack.c.bf16 %v496_v16, %v489_v21  ;;  %v729_v22 = vpack.c.bf16 %v330_v63, %v323_v62  ;;  %v372_v21 = vld [vmem:[%s4398_s7 + $0x458] sm:$0xff]  ;;  %v386_v16 = vld [vmem:[%s4398_s7 + $0x4c8] sm:$0xff] }
 0x18a   : > { %v4975_v17 = vpop.f32.mrb[52].mxu1  ;;  %v524_v58 = vld [vmem:[%s4398_s7 + $0x918] sm:$0xff] }
 0x18b   : > { %v1541_v28 = vpop.f32.mrb[53].mxu1  ;;  %v532_v63 = vld [vmem:[%s4398_s7 + $0x958] sm:$0xff] }
 0x18c   : > { %v4979_v24 = vpop.f32.mrb[54].mxu1 }
 0x18d   : > { %v1544_v31 = vpop.f32.mrb[55].mxu1 }
 0x18e   : > { %v344_v31 = vld [vmem:[%s4398_s7 + $0x378] sm:$0xff] }
 0x18f   : > { %3585 = vmatmul.mubr.msk.bf16.vlgmr.msra.gmra.mrb[128].mxu1 %vm1304_vm0, %v694_v6  ;;  %2140 = vmatmul.mubr.bf16.gmra.mrb[64].mxu0 %v797_v27  ;;  %v819_v6 = vpack.c.bf16 %v511_v7, %v504_v2  ;;  %v503_v27 = vld [vmem:[%s4398_s7 + $0x870] sm:$0xff] }
 0x190   : > { %3588 = vmatprep.mubr.msk.bf16.mxu1 %vm1304_vm0, %v701_v29  ;;  %2147 = vmatprep.mubr.bf16.mxu0 %v805_v30  ;;  %v337_v29 = vld [vmem:[%s4398_s7 + $0x340] sm:$0xff]  ;;  %v510_v30 = vld [vmem:[%s4398_s7 + $0x8a8] sm:$0xff]  ;;  %v539_v2 = vld [vmem:[%s4398_s7 + $0x990] sm:$0xff] }
 0x191   : > { %v736_v47 = vpack.c.bf16 %v344_v31, %v337_v29  ;;  %v393_v29 = vld [vmem:[%s4398_s7 + $0x500] sm:$0xff]  ;;  %v400_v31 = vld [vmem:[%s4398_s7 + $0x538] sm:$0xff] }
 0x192   : > { %v4989_v46 = vpop.f32.mrb[56].mxu1 }
 0x193   : > { %v1549_v49 = vpop.f32.mrb[57].mxu1 }
 0x194   : > { %v4993_v36 = vpop.f32.mrb[58].mxu1  ;;  %v818_v49 = vpack.c.bf16 %v510_v30, %v503_v27  ;;  %v531_v27 = vld [vmem:[%s4398_s7 + $0x950] sm:$0xff]  ;;  %v538_v30 = vld [vmem:[%s4398_s7 + $0x988] sm:$0xff] }
 0x195   : > { %v1552_v14 = vpop.f32.mrb[59].mxu1 }
 0x196   : > { %v517_v14 = vld [vmem:[%s4398_s7 + $0x8e0] sm:$0xff] }
 0x197   : > { %3589 = vmatmul.mubr.msk.bf16.gmra.mrb[132].mxu1 %vm1304_vm0, %v708_v12  ;;  %2148 = vmatmul.mubr.bf16.gmra.mrb[68].mxu0 %v804_v1  ;;  %v743_v12 = vpack.c.bf16 %v358_v38, %v351_v35  ;;  %v407_v35 = vld [vmem:[%s4398_s7 + $0x570] sm:$0xff]  ;;  %v414_v38 = vld [vmem:[%s4398_s7 + $0x5a8] sm:$0xff] }
 0x198   : > { %3592 = vmatprep.mubr.msk.bf16.mxu1 %vm1304_vm0, %v715_v52  ;;  %2155 = vmatprep.mubr.bf16.mxu0 %v812_v56  ;;  %v826_v52 = vpack.c.bf16 %v525_v44, %v518_v10  ;;  %v365_v56 = vld [vmem:[%s4398_s7 + $0x420] sm:$0xff]  ;;  %v546_v44 = vld [vmem:[%s4398_s7 + $0x9c8] sm:$0xff] }
 0x19a   : > { %v5003_v0 = vpop.f32.mrb[60].mxu1 }
 0x19b   : > { %v1557_v9 = vpop.f32.mrb[61].mxu1 }
 0x19c   : > { %v5007_v11 = vpop.f32.mrb[62].mxu1  ;;  %v750_v9 = vpack.c.bf16 %v372_v21, %v365_v56  ;;  %v545_v21 = vld [vmem:[%s4398_s7 + $0x9c0] sm:$0xff] }
 0x19d   : > { %v1560_v28 = vpop.f32.mrb[63].mxu1 }
 0x19f   : > { %3593 = vmatmul.mubr.msk.bf16.gmra.mrb[136].mxu1 %vm1304_vm0, %v722_v4  ;;  %2156 = vmatmul.mubr.bf16.gmra.mrb[72].mxu0 %v811_v19  ;;  %v825_v19 = vpack.c.bf16 %v524_v58, %v517_v14  ;;  %v421_v58 = vld [vmem:[%s4398_s7 + $0x5e0] sm:$0xff] }
 0x1a0   : > { %3596 = vmatprep.mubr.msk.bf16.mxu1 %vm1304_vm0, %v729_v22  ;;  %2163 = vmatprep.mubr.bf16.mxu0 %v819_v6  ;;  %v757_v22 = vpack.c.bf16 %v386_v16, %v379_v60  ;;  %v833_v6 = vpack.c.bf16 %v539_v2, %v532_v63  ;;  %v428_v60 = vld [vmem:[%s4398_s7 + $0x618] sm:$0xff]  ;;  %v435_v63 = vld [vmem:[%s4398_s7 + $0x650] sm:$0xff]  ;;  %v442_v2 = vld [vmem:[%s4398_s7 + $0x688] sm:$0xff] }
 0x1a1   : > { %v552_v16 = vld [vmem:[%s4398_s7 + $0x9f8] sm:$0xff] }
 0x1a2   : > { %v5017_v32 = vpop.f32.mrb[64].mxu1 }
 0x1a3   : > { %v1565_v34 = vpop.f32.mrb[65].mxu1 }
 0x1a4   : > { %v5021_v48 = vpop.f32.mrb[66].mxu1  ;;  %v553_v34 = vld [vmem:[%s4398_s7 + $0xa00] sm:$0xff] }
 0x1a5   : > { %v1568_v1 = vpop.f32.mrb[67].mxu1  ;;  %v840_v56 = vpack.c.bf16 %v553_v34, %v546_v44  ;;  %v456_v44 = vld [vmem:[%s4398_s7 + $0x6f8] sm:$0xff]  ;;  %v566_v34 = vld [vmem:[%s4398_s7 + $0xa68] sm:$0xff] }
 0x1a6   : > { %v832_v1 = vpack.c.bf16 %v538_v30, %v531_v27  ;;  %v839_v27 = vpack.c.bf16 %v552_v16, %v545_v21 }
 0x1a7   : > { %3597 = vmatmul.mubr.msk.bf16.gmra.mrb[140].mxu1 %vm1304_vm0, %v736_v47  ;;  %2164 = vmatmul.mubr.bf16.gmra.mrb[76].mxu0 %v818_v49  ;;  %v764_v49 = vpack.c.bf16 %v400_v31, %v393_v29  ;;  %v785_v29 = vpack.c.bf16 %v442_v2, %v435_v63 }
 0x1a8   : > { %3600 = vmatprep.mubr.msk.bf16.mxu1 %vm1304_vm0, %v743_v12  ;;  %2171 = vmatprep.mubr.bf16.mxu0 %v826_v52  ;;  %v771_v52 = vpack.c.bf16 %v414_v38, %v407_v35  ;;  %v559_v35 = vld [vmem:[%s4398_s7 + $0xa30] sm:$0xff]  ;;  %v449_v38 = vld [vmem:[%s4398_s7 + $0x6c0] sm:$0xff] }
 0x1a9   : > { %v792_v21 = vpack.c.bf16 %v456_v44, %v449_v38 }
 0x1aa   : > { %v5031_v62 = vpop.f32.mrb[68].mxu1 }
 0x1ab   : > { %v1573_v7 = vpop.f32.mrb[69].mxu1 }
 0x1ac   : > { %v5035_v4 = vpop.f32.mrb[70].mxu1 }
 0x1ad   : > { %v1576_v28 = vpop.f32.mrb[71].mxu1 }
 0x1ae   : > { %v778_v28 = vpack.c.bf16 %v428_v60, %v421_v58  ;;  %v846_v60 = vpack.c.bf16 %v566_v34, %v559_v35  ;;  %v595_v35 = vld [vmem:[%s4398_s7 + $0xb50] sm:$0xff] }
 0x1af   : > { %3601 = vmatmul.mubr.msk.bf16.gmra.mrb[144].mxu1 %vm1304_vm0, %v750_v9  ;;  %2172 = vmatmul.mubr.bf16.gmra.mrb[80].mxu0 %v825_v19  ;;  %v560_v9 = vld [vmem:[%s4398_s7 + $0xa38] sm:$0xff]  ;;  %v567_v19 = vld [vmem:[%s4398_s7 + $0xa70] sm:$0xff] }
 0x1b0   : > { %3604 = vmatprep.mubr.msk.bf16.mxu1 %vm1304_vm0, %v757_v22  ;;  %2179 = vmatprep.mubr.bf16.mxu0 %v833_v6  ;;  %v847_v30 = vpack.c.bf16 %v567_v19, %v560_v9  ;;  %v573_v9 = vld [vmem:[%s4398_s7 + $0xaa0] sm:$0xff] }
 0x1b1   : > { %v477_v19 = vld [vmem:[%s4398_s7 + $0x7a0] sm:$0xff] }
 0x1b2   : > { %v5045_v10 = vpop.f32.mrb[72].mxu1 }
 0x1b3   : > { %v1581_v47 = vpop.f32.mrb[73].mxu1 }
 0x1b4   : > { %v5049_v12 = vpop.f32.mrb[74].mxu1  ;;  %v463_v47 = vld [vmem:[%s4398_s7 + $0x730] sm:$0xff] }
 0x1b5   : > { %v1584_v14 = vpop.f32.mrb[75].mxu1 }
 0x1b6   : > { %v581_v14 = vld [vmem:[%s4398_s7 + $0xae0] sm:$0xff] }
 0x1b7   : > { %3605 = vmatmul.mubr.msk.bf16.gmra.mrb[148].mxu1 %vm1304_vm0, %v764_v49  ;;  %2180 = vmatmul.mubr.bf16.gmra.mrb[84].mxu0 %v832_v1  ;;  %v470_v49 = vld [vmem:[%s4398_s7 + $0x768] sm:$0xff] }
 0x1b8   : > { %3608 = vmatprep.mubr.msk.bf16.mxu1 %vm1304_vm0, %v771_v52  ;;  %2187 = vmatprep.mubr.bf16.mxu0 %v840_v56  ;;  %v574_v52 = vld [vmem:[%s4398_s7 + $0xaa8] sm:$0xff]  ;;  %v799_v16 = vpack.c.bf16 %v470_v49, %v463_v47 }
 0x1b9   : > { %v854_v2 = vpack.c.bf16 %v581_v14, %v574_v52 }
 0x1ba   : > { %v5059_v7 = vpop.f32.mrb[76].mxu1 }
 0x1bb   : > { %v1589_v22 = vpop.f32.mrb[77].mxu1 }
 0x1bc   : > { %v5063_v6 = vpop.f32.mrb[78].mxu1  ;;  %v484_v22 = vld [vmem:[%s4398_s7 + $0x7d8] sm:$0xff] }
 0x1bd   : > { %v1592_v31 = vpop.f32.mrb[79].mxu1  ;;  %v806_v44 = vpack.c.bf16 %v484_v22, %v477_v19  ;;  %v602_v19 = vld [vmem:[%s4398_s7 + $0xb88] sm:$0xff]  ;;  %v609_v22 = vld [vmem:[%s4398_s7 + $0xbc0] sm:$0xff] }
 0x1bf   : > { %3609 = vmatmul.mubr.msk.bf16.gmra.mrb[152].mxu1 %vm1304_vm0, %v778_v28  ;;  %2188 = vmatmul.mubr.bf16.gmra.mrb[88].mxu0 %v839_v27  ;;  %v580_v28 = vld [vmem:[%s4398_s7 + $0xad8] sm:$0xff]  ;;  %v491_v27 = vld [vmem:[%s4398_s7 + $0x810] sm:$0xff] }
 0x1c0   : > { %3612 = vmatprep.mubr.msk.bf16.mxu1 %vm1304_vm0, %v785_v29  ;;  %2195 = vmatprep.mubr.bf16.mxu0 %v847_v30  ;;  %v498_v29 = vld [vmem:[%s4398_s7 + $0x848] sm:$0xff]  ;;  %v588_v30 = vld [vmem:[%s4398_s7 + $0xb18] sm:$0xff]  ;;  %v853_v47 = vpack.c.bf16 %v580_v28, %v573_v9 }
 0x1c1   : > { %v813_v49 = vpack.c.bf16 %v498_v29, %v491_v27  ;;  %v861_v14 = vpack.c.bf16 %v595_v35, %v588_v30 }
 0x1c2   : > { %v5073_v1 = vpop.f32.mrb[80].mxu1 }
 0x1c3   : > { %v1597_v56 = vpop.f32.mrb[81].mxu1 }
 0x1c4   : > { %v5077_v58 = vpop.f32.mrb[82].mxu1  ;;  %v587_v56 = vld [vmem:[%s4398_s7 + $0xb10] sm:$0xff] }
 0x1c5   : > { %v1600_v63 = vpop.f32.mrb[83].mxu1 }
 0x1c6   : > { %v519_v63 = vld [vmem:[%s4398_s7 + $0x8f0] sm:$0xff] }
 0x1c7   : > { %3613 = vmatmul.mubr.msk.bf16.gmra.mrb[156].mxu1 %vm1304_vm0, %v792_v21  ;;  %2196 = vmatmul.mubr.bf16.gmra.mrb[92].mxu0 %v846_v60  ;;  %v505_v21 = vld [vmem:[%s4398_s7 + $0x880] sm:$0xff]  ;;  %v512_v60 = vld [vmem:[%s4398_s7 + $0x8b8] sm:$0xff] }
 0x1c8   : > { %3616 = vmatprep.mubr.msk.bf16.mxu1 %vm1304_vm0, %v799_v16  ;;  %2203 = vmatprep.mubr.bf16.mxu0 %v854_v2  ;;  %v594_v16 = vld [vmem:[%s4398_s7 + $0xb48] sm:$0xff]  ;;  %v820_v27 = vpack.c.bf16 %v512_v60, %v505_v21 }
 0x1c9   : > { %v526_v2 = vld [vmem:[%s4398_s7 + $0x928] sm:$0xff]  ;;  %v860_v30 = vpack.c.bf16 %v594_v16, %v587_v56  ;;  %v616_v56 = vld [vmem:[%s4398_s7 + $0xbf8] sm:$0xff]  ;;  %v623_v16 = vld [vmem:[%s4398_s7 + $0xc30] sm:$0xff] }
 0x1ca   : > { %v5087_v31 = vpop.f32.mrb[84].mxu1  ;;  %v827_v35 = vpack.c.bf16 %v526_v2, %v519_v63  ;;  %v554_v21 = vld [vmem:[%s4398_s7 + $0xa08] sm:$0xff] }
 0x1cb   : > { %v1605_v38 = vpop.f32.mrb[85].mxu1 }
 0x1cc   : > { %v5091_v34 = vpop.f32.mrb[86].mxu1 }
 0x1cd   : > { %5785 = vst [vmem:[#allocation3_spill] sm:$0xff] %v5091_v34  ;;  %v1608_v52 = vpop.f32.mrb[87].mxu1  ;;  %v678_v34 = vld [vmem:[%s4398_s7 + $0xde8] sm:$0xff] }
 0x1ce   : > { %v540_v52 = vld [vmem:[%s4398_s7 + $0x998] sm:$0xff] }
 0x1cf   : > { %3617 = vmatmul.mubr.msk.bf16.gmra.mrb[160].mxu1 %vm1304_vm0, %v806_v44  ;;  %2204 = vmatmul.mubr.bf16.gmra.mrb[96].mxu0 %v853_v47  ;;  %v868_v44 = vpack.c.bf16 %v609_v22, %v602_v19  ;;  %v601_v47 = vld [vmem:[%s4398_s7 + $0xb80] sm:$0xff] }
 0x1d0   : > { %3620 = vmatprep.mubr.msk.bf16.mxu1 %vm1304_vm0, %v813_v49  ;;  %2211 = vmatprep.mubr.bf16.mxu0 %v861_v14  ;;  %v533_v49 = vld [vmem:[%s4398_s7 + $0x960] sm:$0xff]  ;;  %v608_v14 = vld [vmem:[%s4398_s7 + $0xbb8] sm:$0xff] }
 0x1d1   : > { %v834_v2 = vpack.c.bf16 %v540_v52, %v533_v49  ;;  %v867_v22 = vpack.c.bf16 %v608_v14, %v601_v47  ;;  %v561_v49 = vld [vmem:[%s4398_s7 + $0xa40] sm:$0xff]  ;;  %v568_v52 = vld [vmem:[%s4398_s7 + $0xa78] sm:$0xff]  ;;  %v622_v47 = vld [vmem:[%s4398_s7 + $0xc28] sm:$0xff] }
 0x1d2   : > { %v5101_v9 = vpop.f32.mrb[88].mxu1  ;;  %v575_v14 = vld [vmem:[%s4398_s7 + $0xab0] sm:$0xff] }
 0x1d3   : > { %5786 = vst [vmem:[#allocation4_spill] sm:$0xff] %v5101_v9  ;;  %v1613_v28 = vpop.f32.mrb[89].mxu1 }
 0x1d4   : > { %v5105_v29 = vpop.f32.mrb[90].mxu1  ;;  %v547_v28 = vld [vmem:[%s4398_s7 + $0x9d0] sm:$0xff] }
 0x1d5   : > { %5787 = vst [vmem:[#allocation5_spill] sm:$0xff] %v5105_v29  ;;  %v1616_v38 = vpop.f32.mrb[91].mxu1 }
 0x1d6   : > { %v5124_v38 = vld [vmem:[%s5781_s2] ss:$0 sm:$0xff] }
 0x1d7   : > { %3621 = vmatmul.mubr.msk.bf16.gmra.mrb[164].mxu1 %vm1304_vm0, %v820_v27  ;;  %2212 = vmatmul.mubr.bf16.gmra.mrb[100].mxu0 %v860_v30  ;;  %v841_v27 = vpack.c.bf16 %v554_v21, %v547_v28  ;;  %v582_v28 = vld [vmem:[%s4398_s7 + $0xae8] sm:$0xff]  ;;  %v1436_v21 = vadd.f32 %v5124_v38, %v4817_v26 }
 0x1d8   : > { %3624 = vmatprep.mubr.msk.bf16.mxu1 %vm1304_vm0, %v827_v35  ;;  %2219 = vmatprep.mubr.bf16.mxu0 %v868_v44  ;;  %v875_v35 = vpack.c.bf16 %v623_v16, %v616_v56  ;;  %v615_v44 = vld [vmem:[%s4398_s7 + $0xbf0] sm:$0xff]  ;;  %v630_v56 = vld [vmem:[%s4398_s7 + $0xc68] sm:$0xff]  ;;  %v637_v16 = vld [vmem:[%s4398_s7 + $0xca0] sm:$0xff] }
 0x1da   : > { %v5115_v60 = vpop.f32.mrb[92].mxu1 }
 0x1db   : > { %5788 = vst [vmem:[#allocation6_spill] sm:$0xff] %v5115_v60  ;;  %v1621_v63 = vpop.f32.mrb[93].mxu1  ;;  %v882_v60 = vpack.c.bf16 %v637_v16, %v630_v56 }
 0x1dc   : > { %v5119_v19 = vpop.f32.mrb[94].mxu1 }
 0x1dd   : > { %5789 = vst [vmem:[#allocation7_spill] sm:$0xff] %v5119_v19  ;;  %v1624_v30 = vpop.f32.mrb[95].mxu1  ;;  %v855_v19 = vpack.c.bf16 %v582_v28, %v575_v14  ;;  %v644_v14 = vld [vmem:[%s4398_s7 + $0xcd8] sm:$0xff]  ;;  %v651_v28 = vld [vmem:[%s4398_s7 + $0xd10] sm:$0xff] }
 0x1df   : > { %3625 = vmatmul.mubr.msk.bf16.gmra.mrb[168].mxu1 %vm1304_vm0, %v834_v2  ;;  %2220 = vmatmul.mubr.bf16.gmra.mrb[104].mxu0 %v867_v22  ;;  %v848_v2 = vpack.c.bf16 %v568_v52, %v561_v49  ;;  %v1439_v22 = vadd.f32 %v5124_v38, %v4821_v23  ;;  %v629_v23 = vld [vmem:[%s4398_s7 + $0xc60] sm:$0xff]  ;;  %v596_v52 = vld [vmem:[%s4398_s7 + $0xb58] sm:$0xff] }
 0x1e0   : > { %3628 = vmatprep.mubr.msk.bf16.mxu1 %vm1304_vm0, %v841_v27  ;;  %2227 = vmatprep.mubr.bf16.mxu0 %v875_v35  ;;  %v874_v35 = vpack.c.bf16 %v622_v47, %v615_v44  ;;  %v589_v49 = vld [vmem:[%s4398_s7 + $0xb20] sm:$0xff]  ;;  %v610_v44 = vld [vmem:[%s4398_s7 + $0xbc8] sm:$0xff]  ;;  %v1444_v47 = vadd.f32 %v5124_v38, %v4829_v37 }
 0x1e1   : > { %v862_v56 = vpack.c.bf16 %v596_v52, %v589_v49  ;;  %v617_v49 = vld [vmem:[%s4398_s7 + $0xc00] sm:$0xff]  ;;  %v624_v52 = vld [vmem:[%s4398_s7 + $0xc38] sm:$0xff] }
 0x1e2   : > { %v2013_v63 = vpop.f32.mrb[0].mxu0 }
 0x1e3   : > { %v5140_v27 = vadd.f32 %v2013_v63, %v1436_v21  ;;  %v2015_v30 = vpop.f32.mrb[1].mxu0  ;;  %v636_v21 = vld [vmem:[%s4398_s7 + $0xc98] sm:$0xff]  ;;  %v603_v63 = vld [vmem:[%s4398_s7 + $0xb90] sm:$0xff] }
 0x1e4   : > { %v2016_v26 = vpop.f32.mrb[2].mxu0  ;;  %v889_v30 = vpack.c.bf16 %v651_v28, %v644_v14  ;;  %v876_v28 = vpack.c.bf16 %v624_v52, %v617_v49  ;;  %v645_v49 = vld [vmem:[%s4398_s7 + $0xce0] sm:$0xff]  ;;  %v652_v52 = vld [vmem:[%s4398_s7 + $0xd18] sm:$0xff] }
 0x1e5   : > { %v5142_v29 = vadd.f32 %v2016_v26, %v1439_v22  ;;  %v2018_v9 = vpop.f32.mrb[3].mxu0  ;;  %v869_v22 = vpack.c.bf16 %v610_v44, %v603_v63  ;;  %v658_v63 = vld [vmem:[%s4398_s7 + $0xd48] sm:$0xff]  ;;  %v665_v44 = vld [vmem:[%s4398_s7 + $0xd80] sm:$0xff] }
 0x1e7   : > { %3629 = vmatmul.mubr.msk.bf16.gmra.mrb[172].mxu1 %vm1304_vm0, %v848_v2  ;;  %2228 = vmatmul.mubr.bf16.gmra.mrb[108].mxu0 %v874_v35  ;;  %v881_v2 = vpack.c.bf16 %v636_v21, %v629_v23  ;;  %v638_v23 = vld [vmem:[%s4398_s7 + $0xca8] sm:$0xff]  ;;  %v1452_v21 = vadd.f32 %v5124_v38, %v4841_v50 }
 0x1e8   : > { %3632 = vmatprep.mubr.msk.bf16.mxu1 %vm1304_vm0, %v855_v19  ;;  %2235 = vmatprep.mubr.bf16.mxu0 %v882_v60  ;;  %v1447_v19 = vadd.f32 %v5124_v38, %v4833_v42  ;;  %v643_v42 = vld [vmem:[%s4398_s7 + $0xcd0] sm:$0xff] }
 0x1ea   : > { %v2021_v9 = vpop.f32.mrb[4].mxu0 }
 0x1eb   : > { %v5158_v16 = vadd.f32 %v2021_v9, %v1444_v47  ;;  %v2023_v60 = vpop.f32.mrb[5].mxu0  ;;  %v650_v47 = vld [vmem:[%s4398_s7 + $0xd08] sm:$0xff]  ;;  %v631_v9 = vld [vmem:[%s4398_s7 + $0xc70] sm:$0xff] }
 0x1ec   : > { %v2024_v37 = vpop.f32.mrb[6].mxu0 }
 0x1ed   : > { %v5160_v35 = vadd.f32 %v2024_v37, %v1447_v19  ;;  %v2026_v26 = vpop.f32.mrb[7].mxu0  ;;  %v896_v37 = vpack.c.bf16 %v665_v44, %v658_v63  ;;  %v890_v44 = vpack.c.bf16 %v652_v52, %v645_v49  ;;  %v673_v49 = vld [vmem:[%s4398_s7 + $0xdc0] sm:$0xff]  ;;  %v680_v52 = vld [vmem:[%s4398_s7 + $0xdf8] sm:$0xff] }
 0x1ef   : > { %3633 = vmatmul.mubr.msk.bf16.gmra.mrb[176].mxu1 %vm1304_vm0, %v862_v56  ;;  %2236 = vmatmul.mubr.bf16.gmra.mrb[112].mxu0 %v881_v2  ;;  %v1455_v56 = vadd.f32 %v5124_v38, %v4845_v53  ;;  %v888_v2 = vpack.c.bf16 %v650_v47, %v643_v42  ;;  %v657_v53 = vld [vmem:[%s4398_s7 + $0xd40] sm:$0xff]  ;;  %v666_v42 = vld [vmem:[%s4398_s7 + $0xd88] sm:$0xff]  ;;  %v1460_v47 = vadd.f32 %v5124_v38, %v4853_v61 }
 0x1f0   : > { %3636 = vmatprep.mubr.msk.bf16.mxu1 %vm1304_vm0, %v869_v22  ;;  %2243 = vmatprep.mubr.bf16.mxu0 %v889_v30  ;;  %v883_v22 = vpack.c.bf16 %v638_v23, %v631_v9  ;;  %v672_v9 = vld [vmem:[%s4398_s7 + $0xdb8] sm:$0xff]  ;;  %v679_v23 = vld [vmem:[%s4398_s7 + $0xdf0] sm:$0xff] }
 0x1f2   : > { %v2029_v14 = vpop.f32.mrb[8].mxu0 }
 0x1f3   : > { %v5176_v19 = vadd.f32 %v2029_v14, %v1452_v21  ;;  %v2031_v60 = vpop.f32.mrb[9].mxu0  ;;  %v664_v21 = vld [vmem:[%s4398_s7 + $0xd78] sm:$0xff]  ;;  %v659_v14 = vld [vmem:[%s4398_s7 + $0xd50] sm:$0xff] }
 0x1f4   : > { %v2032_v50 = vpop.f32.mrb[10].mxu0 }
 0x1f5   : > { %v5178_v30 = vadd.f32 %v2032_v50, %v1455_v56  ;;  %v2034_v26 = vpop.f32.mrb[11].mxu0 }
 0x1f7   : > { %3637 = vmatmul.mubr.msk.bf16.gmra.mrb[180].mxu1 %vm1304_vm0, %v876_v28  ;;  %2244 = vmatmul.mubr.bf16.gmra.mrb[116].mxu0 %v888_v2  ;;  %v1463_v28 = vadd.f32 %v5124_v38, %v4857_v3  ;;  %v895_v2 = vpack.c.bf16 %v664_v21, %v657_v53  ;;  %v671_v3 = vld [vmem:[%s4398_s7 + $0xdb0] sm:$0xff]  ;;  %v904_v21 = vpack.c.bf16 %v680_v52, %v673_v49 }
 0x1f8   : > { %3640 = vmatprep.mubr.msk.bf16.mxu1 %vm1304_vm0, %v883_v22  ;;  %2251 = vmatprep.mubr.bf16.mxu0 %v896_v37  ;;  %v897_v22 = vpack.c.bf16 %v666_v42, %v659_v14  ;;  %v903_v37 = vpack.c.bf16 %v679_v23, %v672_v9  ;;  %v1471_v14 = vadd.f32 %v5124_v38, %v4869_v25 }
 0x1f9   : > { %v902_v23 = vpack.c.bf16 %v678_v34, %v671_v3  ;;  %v1487_v52 = vadd.f32 %v5124_v38, %v4894_v57 }
 0x1fa   : > { %v2037_v63 = vpop.f32.mrb[12].mxu0 }
 0x1fb   : > { %v5194_v56 = vadd.f32 %v2037_v63, %v1460_v47  ;;  %v2039_v60 = vpop.f32.mrb[13].mxu0  ;;  %v1468_v47 = vadd.f32 %v5124_v38, %v4865_v20 }
 0x1fc   : > { %v2040_v50 = vpop.f32.mrb[14].mxu0  ;;  %v1476_v60 = vadd.f32 %v5124_v38, %v4876_v39 }
 0x1fd   : > { %v5196_v26 = vadd.f32 %v2040_v50, %v1463_v28  ;;  %v2042_v61 = vpop.f32.mrb[15].mxu0 }
 0x1fe   : > { %v1484_v61 = vadd.f32 %v5124_v38, %v4890_v40 }
 0x1ff   : > { %3641 = vmatmul.mubr.msk.bf16.gmra.mrb[184].mxu1 %vm1304_vm0, %v890_v44  ;;  %2252 = vmatmul.mubr.bf16.gmra.mrb[120].mxu0 %v895_v2  ;;  %v1479_v2 = vadd.f32 %v5124_v38, %v4881_v45 }
 0x200   : > { %3644 = vmatprep.mubr.msk.bf16.mxu1 %vm1304_vm0, %v897_v22  ;;  %2259 = vmatprep.mubr.bf16.mxu0 %v903_v37 }
 0x202   : > { %v2045_v53 = vpop.f32.mrb[16].mxu0 }
 0x203   : > { %v5208_v42 = vadd.f32 %v2045_v53, %v1468_v47  ;;  %v2047_v9 = vpop.f32.mrb[17].mxu0 }
 0x204   : > { %v2048_v63 = vpop.f32.mrb[18].mxu0  ;;  %v1495_v9 = vadd.f32 %v5124_v38, %v4906_v15 }
 0x205   : > { %v5210_v44 = vadd.f32 %v2048_v63, %v1471_v14  ;;  %v2050_v28 = vpop.f32.mrb[19].mxu0 }
 0x207   : > { %3645 = vmatmul.mubr.msk.bf16.gmra.mrb[188].mxu1 %vm1304_vm0, %v904_v21  ;;  %2260 = vmatmul.mubr.bf16.gmra.mrb[124].mxu0 %v902_v23  ;;  %v1492_v21 = vadd.f32 %v5124_v38, %v4902_v18  ;;  %v1503_v18 = vadd.f32 %v5124_v38, %v4918_v41  ;;  %v1511_v41 = vadd.f32 %v5124_v38, %v4930_v55 }
 0x208   : > { %v1519_v55 = vadd.f32 %v5124_v38, %v4942_v13  ;;  %v1527_v13 = vadd.f32 %v5124_v38, %v4954_v43  ;;  %v1535_v43 = vadd.f32 %v5124_v38, %v4966_v59  ;;  %v1543_v59 = vadd.f32 %v5124_v38, %v4979_v24 }
 0x209   : > { %v1551_v24 = vadd.f32 %v5124_v38, %v4993_v36  ;;  %v1559_v36 = vadd.f32 %v5124_v38, %v5007_v11  ;;  %v1567_v11 = vadd.f32 %v5124_v38, %v5021_v48 }
 0x20a   : > { %v2053_v20 = vpop.f32.mrb[20].mxu0 }
 0x20b   : > { %v5217_v22 = vadd.f32 %v2053_v20, %v1476_v60  ;;  %v2055_v25 = vpop.f32.mrb[21].mxu0  ;;  %v1500_v60 = vadd.f32 %v5124_v38, %v4914_v8  ;;  %v1508_v8 = vadd.f32 %v5124_v38, %v4926_v51  ;;  %v1516_v51 = vadd.f32 %v5124_v38, %v4938_v5 }
 0x20c   : > { %v2056_v50 = vpop.f32.mrb[22].mxu0  ;;  %v1524_v5 = vadd.f32 %v5124_v38, %v4950_v33  ;;  %v1532_v33 = vadd.f32 %v5124_v38, %v4962_v54  ;;  %v1540_v54 = vadd.f32 %v5124_v38, %v4975_v17  ;;  %v1548_v17 = vadd.f32 %v5124_v38, %v4989_v46 }
 0x20d   : > { %v5219_v37 = vadd.f32 %v2056_v50, %v1479_v2  ;;  %v2058_v34 = vpop.f32.mrb[23].mxu0  ;;  %v1556_v46 = vadd.f32 %v5124_v38, %v5003_v0  ;;  %v1564_v0 = vadd.f32 %v5124_v38, %v5017_v32 }
 0x212   : > { %v2061_v49 = vpop.f32.mrb[24].mxu0 }
 0x213   : > { %v5225_v3 = vadd.f32 %v2061_v49, %v1484_v61  ;;  %v2063_v39 = vpop.f32.mrb[25].mxu0 }
 0x214   : > { %v2064_v47 = vpop.f32.mrb[26].mxu0 }
 0x215   : > { %v5227_v53 = vadd.f32 %v2064_v47, %v1487_v52  ;;  %v2066_v45 = vpop.f32.mrb[27].mxu0 }
 0x21a   : > { %v2069_v14 = vpop.f32.mrb[28].mxu0 }
 0x21b   : > { %v5233_v23 = vadd.f32 %v2069_v14, %v1492_v21  ;;  %v2071_v40 = vpop.f32.mrb[29].mxu0 }
 0x21c   : > { %v2072_v63 = vpop.f32.mrb[30].mxu0 }
 0x21d   : > { %v5235_v28 = vadd.f32 %v2072_v63, %v1495_v9  ;;  %v2074_v57 = vpop.f32.mrb[31].mxu0 }
 0x222   : > { %v5239_v20 = vpop.f32.mrb[96].mxu1  ;;  %v2077_v2 = vpop.f32.mrb[32].mxu0 }
 0x223   : > { %v1918_v25 = vpop.f32.mrb[97].mxu1  ;;  %v5243_v50 = vadd.f32 %v2077_v2, %v1500_v60  ;;  %v2079_v15 = vpop.f32.mrb[33].mxu0 }
 0x224   : > { %v5245_v34 = vpop.f32.mrb[98].mxu1  ;;  %v2080_v61 = vpop.f32.mrb[34].mxu0 }
 0x225   : > { %v1921_v49 = vpop.f32.mrb[99].mxu1  ;;  %v5247_v52 = vadd.f32 %v2080_v61, %v1503_v18  ;;  %v2082_v39 = vpop.f32.mrb[35].mxu0 }
 0x22a   : > { %v5251_v47 = vpop.f32.mrb[100].mxu1  ;;  %v2085_v45 = vpop.f32.mrb[36].mxu0 }
 0x22b   : > { %v1926_v21 = vpop.f32.mrb[101].mxu1  ;;  %v5255_v14 = vadd.f32 %v2085_v45, %v1508_v8  ;;  %v2087_v9 = vpop.f32.mrb[37].mxu0 }
 0x22c   : > { %v5257_v40 = vpop.f32.mrb[102].mxu1  ;;  %v2088_v63 = vpop.f32.mrb[38].mxu0 }
 0x22d   : > { %v1929_v57 = vpop.f32.mrb[103].mxu1  ;;  %v5259_v60 = vadd.f32 %v2088_v63, %v1511_v41  ;;  %v2090_v2 = vpop.f32.mrb[39].mxu0 }
 0x232   : > { %v5263_v25 = vpop.f32.mrb[104].mxu1  ;;  %v2093_v18 = vpop.f32.mrb[40].mxu0 }
 0x233   : > { %5790 = vst [vmem:[#allocation8_spill] sm:$0xff] %v5263_v25  ;;  %v1934_v15 = vpop.f32.mrb[105].mxu1  ;;  %v5267_v61 = vadd.f32 %v2093_v18, %v1516_v51  ;;  %v2095_v49 = vpop.f32.mrb[41].mxu0 }
 0x234   : > { %v5269_v39 = vpop.f32.mrb[106].mxu1  ;;  %v2096_v8 = vpop.f32.mrb[42].mxu0 }
 0x235   : > { %5791 = vst [vmem:[#allocation9_spill] sm:$0xff] %v5269_v39  ;;  %v1937_v45 = vpop.f32.mrb[107].mxu1  ;;  %v5271_v21 = vadd.f32 %v2096_v8, %v1519_v55  ;;  %v2098_v41 = vpop.f32.mrb[43].mxu0 }
 0x23a   : > { %v5275_v9 = vpop.f32.mrb[108].mxu1  ;;  %v2101_v63 = vpop.f32.mrb[44].mxu0 }
 0x23b   : > { %5792 = vst [vmem:[#allocation10_spill] sm:$0xff] %v5275_v9  ;;  %v1942_v57 = vpop.f32.mrb[109].mxu1  ;;  %v5279_v2 = vadd.f32 %v2101_v63, %v1524_v5  ;;  %v2103_v51 = vpop.f32.mrb[45].mxu0 }
 0x23c   : > { %v5281_v18 = vpop.f32.mrb[110].mxu1  ;;  %v2104_v15 = vpop.f32.mrb[46].mxu0 }
 0x23d   : > { %5793 = vst [vmem:[#allocation11_spill] sm:$0xff] %v5281_v18  ;;  %v1945_v49 = vpop.f32.mrb[111].mxu1  ;;  %v5283_v55 = vadd.f32 %v2104_v15, %v1527_v13  ;;  %v2106_v8 = vpop.f32.mrb[47].mxu0 }
 0x242   : > { %v5287_v45 = vpop.f32.mrb[112].mxu1  ;;  %v2109_v41 = vpop.f32.mrb[48].mxu0 }
 0x243   : > { %5794 = vst [vmem:[#allocation12_spill] sm:$0xff] %v5287_v45  ;;  %v1950_v57 = vpop.f32.mrb[113].mxu1  ;;  %v5291_v5 = vadd.f32 %v2109_v41, %v1532_v33  ;;  %v2111_v63 = vpop.f32.mrb[49].mxu0 }
 0x244   : > { %v5293_v51 = vpop.f32.mrb[114].mxu1  ;;  %v2112_v18 = vpop.f32.mrb[50].mxu0 }
 0x245   : > { %5795 = vst [vmem:[#allocation13_spill] sm:$0xff] %v5293_v51  ;;  %v1953_v49 = vpop.f32.mrb[115].mxu1  ;;  %v5295_v13 = vadd.f32 %v2112_v18, %v1535_v43  ;;  %v2114_v15 = vpop.f32.mrb[51].mxu0 }
 0x24a   : > { %v5299_v8 = vpop.f32.mrb[116].mxu1  ;;  %v2117_v45 = vpop.f32.mrb[52].mxu0 }
 0x24b   : > { %5796 = vst [vmem:[#allocation14_spill] sm:$0xff] %v5299_v8  ;;  %v1958_v57 = vpop.f32.mrb[117].mxu1  ;;  %v5303_v33 = vadd.f32 %v2117_v45, %v1540_v54  ;;  %v2119_v41 = vpop.f32.mrb[53].mxu0 }
 0x24c   : > { %v5305_v63 = vpop.f32.mrb[118].mxu1  ;;  %v2120_v51 = vpop.f32.mrb[54].mxu0 }
 0x24d   : > { %5797 = vst [vmem:[#allocation15_spill] sm:$0xff] %v5305_v63  ;;  %v1961_v49 = vpop.f32.mrb[119].mxu1  ;;  %v5307_v18 = vadd.f32 %v2120_v51, %v1543_v59  ;;  %v2122_v43 = vpop.f32.mrb[55].mxu0 }
 0x252   : > { %v5311_v15 = vpop.f32.mrb[120].mxu1  ;;  %v2125_v8 = vpop.f32.mrb[56].mxu0 }
 0x253   : > { %5798 = vst [vmem:[#allocation16_spill] sm:$0xff] %v5311_v15  ;;  %v1966_v57 = vpop.f32.mrb[121].mxu1  ;;  %v5315_v45 = vadd.f32 %v2125_v8, %v1548_v17  ;;  %v2127_v54 = vpop.f32.mrb[57].mxu0 }
 0x254   : > { %v5317_v41 = vpop.f32.mrb[122].mxu1  ;;  %v2128_v63 = vpop.f32.mrb[58].mxu0 }
 0x255   : > { %5799 = vst [vmem:[#allocation17_spill] sm:$0xff] %v5317_v41  ;;  %v1969_v49 = vpop.f32.mrb[123].mxu1  ;;  %v5319_v51 = vadd.f32 %v2128_v63, %v1551_v24  ;;  %v2130_v59 = vpop.f32.mrb[59].mxu0 }
 0x25a   : > { %v5323_v43 = vpop.f32.mrb[124].mxu1  ;;  %v2133_v15 = vpop.f32.mrb[60].mxu0 }
 0x25b   : > { %5800 = vst [vmem:[#allocation18_spill] sm:$0xff] %v5323_v43  ;;  %v1974_v57 = vpop.f32.mrb[125].mxu1  ;;  %v5327_v8 = vadd.f32 %v2133_v15, %v1556_v46  ;;  %v2135_v17 = vpop.f32.mrb[61].mxu0 }
 0x25c   : > { %v5329_v54 = vpop.f32.mrb[126].mxu1  ;;  %v2136_v41 = vpop.f32.mrb[62].mxu0 }
 0x25d   : > { %5801 = vst [vmem:[#allocation19_spill] sm:$0xff] %v5329_v54  ;;  %v1977_v49 = vpop.f32.mrb[127].mxu1  ;;  %v5331_v63 = vadd.f32 %v2136_v41, %v1559_v36  ;;  %v2138_v24 = vpop.f32.mrb[63].mxu0  ;;  %v5344_v41 = vld [vmem:[%s5782_s3] ss:$0 sm:$0xff] }
 0x262   : > { %v3586_v59 = vpop.f32.mrb[128].mxu1  ;;  %v2141_v43 = vpop.f32.mrb[64].mxu0 }
 0x263   : > { %v2311_v57 = vadd.f32 %v5158_v16, %v3586_v59  ;;  %v2302_v9 = vpop.f32.mrb[129].mxu1  ;;  %v5338_v15 = vadd.f32 %v2141_v43, %v1564_v0  ;;  %v2143_v46 = vpop.f32.mrb[65].mxu0 }
 0x264   : > { %v2303_v17 = vadd.f32 %v5140_v27, %v2302_v9  ;;  %v3587_v49 = vpop.f32.mrb[130].mxu1  ;;  %v2144_v36 = vpop.f32.mrb[66].mxu0 }
 0x265   : > { %v2623_v32 = vmul.f32 0.01, %v2311_v57  ;;  %v2314_v24 = vadd.f32 %v5160_v35, %v3587_v49  ;;  %v2305_v16 = vpop.f32.mrb[131].mxu1  ;;  %vm2559_vm1 = vcmp.gt.f32.partialorder %v2311_v57, 0.0  ;;  %v5347_v54 = vadd.f32 %v2144_v36, %v1567_v11  ;;  %v2146_v48 = vpop.f32.mrb[67].mxu0 }
 0x266   : > { %v2621_v59 = vmul.f32 0.01, %v2303_v17  ;;  %v2306_v43 = vadd.f32 %v5142_v29, %v2305_v16  ;;  %vm2557_vm2 = vcmp.gt.f32.partialorder %v2303_v17, 0.0  ;;  %v1572_v49 = vadd.f32 %v5124_v38, %v5031_v62 }
 0x267   : > { %v2624_v27 = vmul.f32 0.01, %v2314_v24  ;;  %v2687_v9 = vsel %vm2559_vm1, %v2311_v57, %v2623_v32  ;;  %vm2560_vm3 = vcmp.gt.f32.partialorder %v2314_v24, 0.0  ;;  %v1575_v57 = vadd.f32 %v5124_v38, %v5035_v4 }
 0x268   : > { %v2622_v0 = vmul.f32 0.01, %v2306_v43  ;;  %v2758_v46 = vmul.f32 %v5344_v41, %v2687_v9  ;;  %v2685_v39 = vsel %vm2557_vm2, %v2303_v17, %v2621_v59  ;;  %vm2558_vm4 = vcmp.gt.f32.partialorder %v2306_v43, 0.0 }
 0x269   : > { %v2756_v25 = vmul.f32 %v5344_v41, %v2685_v39  ;;  %v2688_v35 = vsel %vm2560_vm3, %v2314_v24, %v2624_v27 }
 0x26a   : > { %v3590_v11 = vpop.f32.mrb[132].mxu1  ;;  %2824 = vadd.xlane.f32.xlu1 %v2758_v46  ;;  %v2686_v36 = vsel %vm2558_vm4, %v2306_v43, %v2622_v0  ;;  %v2149_v48 = vpop.f32.mrb[68].mxu0  ;;  %v2759_v59 = vmul.f32 %v5344_v41, %v2688_v35 }
 0x26b   : > { %v2327_v29 = vadd.f32 %v5194_v56, %v3590_v11  ;;  %v2318_v16 = vpop.f32.mrb[133].mxu1  ;;  %2820 = vadd.xlane.f32.xlu0 %v2756_v25  ;;  %v5357_v32 = vadd.f32 %v2149_v48, %v1572_v49  ;;  %v2151_v17 = vpop.f32.mrb[69].mxu0  ;;  %v2757_v56 = vmul.f32 %v5344_v41, %v2686_v36  ;;  %v1580_v36 = vadd.f32 %v5124_v38, %v5045_v10 }
 0x26c   : > { %v2319_v39 = vadd.f32 %v5176_v19, %v2318_v16  ;;  %v3591_v24 = vpop.f32.mrb[134].mxu1  ;;  %v2152_v27 = vpop.f32.mrb[70].mxu0 }
 0x26d   : > { %v2627_v62 = vmul.f32 0.01, %v2327_v29  ;;  %v2330_v43 = vadd.f32 %v5196_v26, %v3591_v24  ;;  %v2321_v9 = vpop.f32.mrb[135].mxu1  ;;  %vm2563_vm5 = vcmp.gt.f32.partialorder %v2327_v29, 0.0  ;;  %v5363_v0 = vadd.f32 %v2152_v27, %v1575_v57  ;;  %v2154_v4 = vpop.f32.mrb[71].mxu0 }
 0x26e   : > { %v2625_v25 = vmul.f32 0.01, %v2319_v39  ;;  %v2322_v46 = vadd.f32 %v5178_v30, %v2321_v9  ;;  %2826 = vadd.xlane.f32.xlu1 %v2759_v59  ;;  %vm2561_vm7 = vcmp.gt.f32.partialorder %v2319_v39, 0.0  ;;  %v1583_v59 = vadd.f32 %v5124_v38, %v5049_v12 }
 0x26f   : > { %v2628_v49 = vmul.f32 0.01, %v2330_v43  ;;  %2822 = vadd.xlane.f32.xlu0 %v2757_v56  ;;  %v2691_v19 = vsel %vm2563_vm5, %v2327_v29, %v2627_v62  ;;  %vm2564_vm6 = vcmp.gt.f32.partialorder %v2330_v43, 0.0 }
 0x270   : > { %v2626_v35 = vmul.f32 0.01, %v2322_v46  ;;  %v2762_v11 = vmul.f32 %v5344_v41, %v2691_v19  ;;  %vm2562_vm8 = vcmp.gt.f32.partialorder %v2322_v46, 0.0  ;;  %v2689_v57 = vsel %vm2561_vm7, %v2319_v39, %v2625_v25 }
 0x271   : > { %v2692_v26 = vsel %vm2564_vm6, %v2330_v43, %v2628_v49 }
 0x272   : > { %v3594_v48 = vpop.f32.mrb[136].mxu1  ;;  %v2763_v16 = vmul.f32 %v5344_v41, %v2692_v26  ;;  %v2157_v17 = vpop.f32.mrb[72].mxu0  ;;  %v2690_v29 = vsel %vm2562_vm8, %v2322_v46, %v2626_v35 }
 0x273   : > { %v2343_v30 = vadd.f32 %v5217_v22, %v3594_v48  ;;  %v2334_v24 = vpop.f32.mrb[137].mxu1  ;;  %2832 = vadd.xlane.f32.xlu0 %v2762_v11  ;;  %v5373_v62 = vadd.f32 %v2157_v17, %v1580_v36  ;;  %v2159_v27 = vpop.f32.mrb[73].mxu0  ;;  %v2760_v22 = vmul.f32 %v5344_v41, %v2689_v57  ;;  %v2761_v19 = vmul.f32 %v5344_v41, %v2690_v29 }
 0x274   : > { %v2335_v43 = vadd.f32 %v5208_v42, %v2334_v24  ;;  %v3595_v9 = vpop.f32.mrb[138].mxu1  ;;  %2834 = vadd.xlane.f32.xlu1 %v2763_v16  ;;  %v2160_v56 = vpop.f32.mrb[74].mxu0  ;;  %v1588_v36 = vadd.f32 %v5124_v38, %v5059_v7  ;;  %v1591_v29 = vadd.f32 %v5124_v38, %v5063_v6 }
 0x275   : > { %v2631_v10 = vmul.f32 0.01, %v2343_v30  ;;  %v2346_v39 = vadd.f32 %v5219_v37, %v3595_v9  ;;  %v2337_v25 = vpop.f32.mrb[139].mxu1  ;;  %vm2567_vm9 = vcmp.gt.f32.partialorder %v2343_v30, 0.0  ;;  %v5378_v46 = vadd.f32 %v2160_v56, %v1583_v59  ;;  %v2162_v49 = vpop.f32.mrb[75].mxu0 }
 0x276   : > { %v2629_v4 = vmul.f32 0.01, %v2335_v43  ;;  %v2338_v12 = vadd.f32 %v5210_v44, %v2337_v25  ;;  %vm2565_vm11 = vcmp.gt.f32.partialorder %v2335_v43, 0.0 }
 0x277   : > { %v2632_v35 = vmul.f32 0.01, %v2346_v39  ;;  %2828 = vadd.xlane.f32.xlu0 %v2760_v22  ;;  %v2695_v42 = vsel %vm2567_vm9, %v2343_v30, %v2631_v10  ;;  %vm2568_vm10 = vcmp.gt.f32.partialorder %v2346_v39, 0.0 }
 0x278   : > { %v2630_v11 = vmul.f32 0.01, %v2338_v12  ;;  %2830 = vadd.xlane.f32.xlu1 %v2761_v19  ;;  %v2766_v37 = vmul.f32 %v5344_v41, %v2695_v42  ;;  %vm2566_vm12 = vcmp.gt.f32.partialorder %v2338_v12, 0.0  ;;  %v2693_v44 = vsel %vm2565_vm11, %v2335_v43, %v2629_v4 }
 0x279   : > { %v2696_v26 = vsel %vm2568_vm10, %v2346_v39, %v2632_v35  ;;  %v1596_v42 = vadd.f32 %v5124_v38, %v5073_v1 }
 0x27a   : > { %v3598_v48 = vpop.f32.mrb[140].mxu1  ;;  %v2767_v16 = vmul.f32 %v5344_v41, %v2696_v26  ;;  %v2165_v57 = vpop.f32.mrb[76].mxu0  ;;  %v2694_v30 = vsel %vm2566_vm12, %v2338_v12, %v2630_v11 }
 0x27b   : > { %v2359_v17 = vadd.f32 %v5233_v23, %v3598_v48  ;;  %v2350_v24 = vpop.f32.mrb[141].mxu1  ;;  %2840 = vadd.xlane.f32.xlu0 %v2766_v37  ;;  %v5389_v59 = vadd.f32 %v2165_v57, %v1588_v36  ;;  %v2167_v27 = vpop.f32.mrb[77].mxu0  ;;  %v2764_v23 = vmul.f32 %v5344_v41, %v2693_v44  ;;  %v2765_v49 = vmul.f32 %v5344_v41, %v2694_v30 }
 0x27c   : > { %v2351_v9 = vadd.f32 %v5225_v3, %v2350_v24  ;;  %v3599_v10 = vpop.f32.mrb[142].mxu1  ;;  %2842 = vadd.xlane.f32.xlu1 %v2767_v16  ;;  %v2168_v56 = vpop.f32.mrb[78].mxu0  ;;  %v1599_v44 = vadd.f32 %v5124_v38, %v5077_v58 }
 0x27d   : > { %v2635_v7 = vmul.f32 0.01, %v2359_v17  ;;  %v2362_v43 = vadd.f32 %v5235_v28, %v3599_v10  ;;  %v2353_v39 = vpop.f32.mrb[143].mxu1  ;;  %vm2571_vm13 = vcmp.gt.f32.partialorder %v2359_v17, 0.0  ;;  %v5394_v22 = vadd.f32 %v2168_v56, %v1591_v29  ;;  %v2170_v4 = vpop.f32.mrb[79].mxu0 }
 0x27e   : > { %v2633_v25 = vmul.f32 0.01, %v2351_v9  ;;  %v2354_v6 = vadd.f32 %v5227_v53, %v2353_v39  ;;  %vm2569_vm15 = vcmp.gt.f32.partialorder %v2351_v9, 0.0  ;;  %v1604_v4 = vadd.f32 %v5124_v38, %v5087_v31 }
 0x27f   : > { %v2636_v12 = vmul.f32 0.01, %v2362_v43  ;;  %2836 = vadd.xlane.f32.xlu0 %v2764_v23  ;;  %v2699_v3 = vsel %vm2571_vm13, %v2359_v17, %v2635_v7  ;;  %vm2572_vm14 = vcmp.gt.f32.partialorder %v2362_v43, 0.0 }
 0x280   : > { %v2634_v19 = vmul.f32 0.01, %v2354_v6  ;;  %2838 = vadd.xlane.f32.xlu1 %v2765_v49  ;;  %v2770_v28 = vmul.f32 %v5344_v41, %v2699_v3  ;;  %vm2570_vm0 = vcmp.gt.f32.partialorder %v2354_v6, 0.0  ;;  %v2697_v53 = vsel %vm2569_vm15, %v2351_v9, %v2633_v25 }
 0x281   : > { %v2700_v35 = vsel %vm2572_vm14, %v2362_v43, %v2636_v12 }
 0x282   : > { %v3602_v11 = vpop.f32.mrb[144].mxu1  ;;  %v2771_v37 = vmul.f32 %v5344_v41, %v2700_v35  ;;  %v2173_v26 = vpop.f32.mrb[80].mxu0  ;;  %v2698_v16 = vsel %vm2570_vm0, %v2354_v6, %v2634_v19  ;;  %v5802_v35 = vld [vmem:[#allocation3_spill] sm:$0xff] }
 0x283   : > { %v2375_v36 = vadd.f32 %v5255_v14, %v3602_v11  ;;  %v2366_v48 = vpop.f32.mrb[145].mxu1  ;;  %2848 = vadd.xlane.f32.xlu0 %v2770_v28  ;;  %v5405_v57 = vadd.f32 %v2173_v26, %v1596_v42  ;;  %v2175_v17 = vpop.f32.mrb[81].mxu0  ;;  %v2768_v14 = vmul.f32 %v5344_v41, %v2697_v53  ;;  %v2769_v43 = vmul.f32 %v5344_v41, %v2698_v16 }
 0x284   : > { %v2367_v24 = vadd.f32 %v5243_v50, %v2366_v48  ;;  %v3603_v30 = vpop.f32.mrb[146].mxu1  ;;  %2850 = vadd.xlane.f32.xlu1 %v2771_v37  ;;  %v2176_v29 = vpop.f32.mrb[82].mxu0  ;;  %v1607_v42 = vadd.f32 %v5124_v38, %v5802_v35 }
 0x285   : > { %v2639_v1 = vmul.f32 0.01, %v2375_v36  ;;  %v2378_v27 = vadd.f32 %v5259_v60, %v3603_v30  ;;  %v2369_v9 = vpop.f32.mrb[147].mxu1  ;;  %vm2575_vm1 = vcmp.gt.f32.partialorder %v2375_v36, 0.0  ;;  %v5410_v7 = vadd.f32 %v2176_v29, %v1599_v44  ;;  %v2178_v56 = vpop.f32.mrb[83].mxu0 }
 0x286   : > { %v2637_v10 = vmul.f32 0.01, %v2367_v24  ;;  %v2370_v58 = vadd.f32 %v5247_v52, %v2369_v9  ;;  %vm2573_vm3 = vcmp.gt.f32.partialorder %v2367_v24, 0.0 }
 0x287   : > { %v2640_v39 = vmul.f32 0.01, %v2378_v27  ;;  %2844 = vadd.xlane.f32.xlu0 %v2768_v14  ;;  %v2703_v50 = vsel %vm2575_vm1, %v2375_v36, %v2639_v1  ;;  %vm2576_vm2 = vcmp.gt.f32.partialorder %v2378_v27, 0.0  ;;  %v5803_v14 = vld [vmem:[#allocation4_spill] sm:$0xff] }
 0x288   : > { %v2638_v23 = vmul.f32 0.01, %v2370_v58  ;;  %2846 = vadd.xlane.f32.xlu1 %v2769_v43  ;;  %v2774_v60 = vmul.f32 %v5344_v41, %v2703_v50  ;;  %vm2574_vm4 = vcmp.gt.f32.partialorder %v2370_v58, 0.0  ;;  %v2701_v52 = vsel %vm2573_vm3, %v2367_v24, %v2637_v10 }
 0x289   : > { %v2704_v25 = vsel %vm2576_vm2, %v2378_v27, %v2640_v39  ;;  %v1612_v10 = vadd.f32 %v5124_v38, %v5803_v14 }
 0x28a   : > { %v3606_v6 = vpop.f32.mrb[148].mxu1  ;;  %v2775_v49 = vmul.f32 %v5344_v41, %v2704_v25  ;;  %v2181_v12 = vpop.f32.mrb[84].mxu0  ;;  %v2702_v28 = vsel %vm2574_vm4, %v2370_v58, %v2638_v23 }
 0x28b   : > { %v2391_v3 = vadd.f32 %v5279_v2, %v3606_v6  ;;  %v2382_v19 = vpop.f32.mrb[149].mxu1  ;;  %2856 = vadd.xlane.f32.xlu0 %v2774_v60  ;;  %v5421_v11 = vadd.f32 %v2181_v12, %v1604_v4  ;;  %v2183_v37 = vpop.f32.mrb[85].mxu0  ;;  %v2772_v2 = vmul.f32 %v5344_v41, %v2701_v52  ;;  %v2773_v1 = vmul.f32 %v5344_v41, %v2702_v28  ;;  %v5804_v60 = vld [vmem:[#allocation5_spill] sm:$0xff] }
 0x28c   : > { %v2383_v53 = vadd.f32 %v5267_v61, %v2382_v19  ;;  %v3607_v26 = vpop.f32.mrb[150].mxu1  ;;  %2858 = vadd.xlane.f32.xlu1 %v2775_v49  ;;  %v2184_v36 = vpop.f32.mrb[86].mxu0  ;;  %v1615_v25 = vadd.f32 %v5124_v38, %v5804_v60 }
 0x28d   : > { %v2643_v31 = vmul.f32 0.01, %v2391_v3  ;;  %v2394_v48 = vadd.f32 %v5283_v55, %v3607_v26  ;;  %v2385_v16 = vpop.f32.mrb[151].mxu1  ;;  %vm2579_vm5 = vcmp.gt.f32.partialorder %v2391_v3, 0.0  ;;  %v5426_v17 = vadd.f32 %v2184_v36, %v1607_v42  ;;  %v2186_v24 = vpop.f32.mrb[87].mxu0 }
 0x28e   : > { %v2641_v44 = vmul.f32 0.01, %v2383_v53  ;;  %v2386_v30 = vadd.f32 %v5271_v21, %v2385_v16  ;;  %vm2577_vm7 = vcmp.gt.f32.partialorder %v2383_v53, 0.0  ;;  %v5805_v16 = vld [vmem:[#allocation6_spill] sm:$0xff] }
 0x28f   : > { %v2644_v29 = vmul.f32 0.01, %v2394_v48  ;;  %2852 = vadd.xlane.f32.xlu0 %v2772_v2  ;;  %v2707_v61 = vsel %vm2579_vm5, %v2391_v3, %v2643_v31  ;;  %vm2580_vm6 = vcmp.gt.f32.partialorder %v2394_v48, 0.0  ;;  %v1620_v2 = vadd.f32 %v5124_v38, %v5805_v16 }
 0x290   : > { %v2642_v27 = vmul.f32 0.01, %v2386_v30  ;;  %2854 = vadd.xlane.f32.xlu1 %v2773_v1  ;;  %v2778_v55 = vmul.f32 %v5344_v41, %v2707_v61  ;;  %vm2578_vm8 = vcmp.gt.f32.partialorder %v2386_v30, 0.0  ;;  %v2705_v21 = vsel %vm2577_vm7, %v2383_v53, %v2641_v44 }
 0x291   : > { %v2708_v9 = vsel %vm2580_vm6, %v2394_v48, %v2644_v29 }
 0x292   : > { %v3610_v56 = vpop.f32.mrb[152].mxu1  ;;  %v2779_v58 = vmul.f32 %v5344_v41, %v2708_v9  ;;  %v2189_v43 = vpop.f32.mrb[88].mxu0  ;;  %v2706_v23 = vsel %vm2578_vm8, %v2386_v30, %v2642_v27  ;;  %v5806_v27 = vld [vmem:[#allocation7_spill] sm:$0xff] }
 0x293   : > { %v2407_v39 = vadd.f32 %v5303_v33, %v3610_v56  ;;  %v2398_v50 = vpop.f32.mrb[153].mxu1  ;;  %2864 = vadd.xlane.f32.xlu0 %v2778_v55  ;;  %v5437_v4 = vadd.f32 %v2189_v43, %v1612_v10  ;;  %v2191_v6 = vpop.f32.mrb[89].mxu0  ;;  %v2776_v33 = vmul.f32 %v5344_v41, %v2705_v21  ;;  %v2777_v26 = vmul.f32 %v5344_v41, %v2706_v23 }
 0x294   : > { %v2399_v49 = vadd.f32 %v5291_v5, %v2398_v50  ;;  %v3611_v52 = vpop.f32.mrb[154].mxu1  ;;  %2866 = vadd.xlane.f32.xlu1 %v2779_v58  ;;  %v2192_v3 = vpop.f32.mrb[90].mxu0  ;;  %v1623_v55 = vadd.f32 %v5124_v38, %v5806_v27 }
 0x295   : > { %v2647_v12 = vmul.f32 0.01, %v2407_v39  ;;  %v2410_v19 = vadd.f32 %v5307_v18, %v3611_v52  ;;  %v2401_v28 = vpop.f32.mrb[155].mxu1  ;;  %vm2583_vm9 = vcmp.gt.f32.partialorder %v2407_v39, 0.0  ;;  %v5442_v42 = vadd.f32 %v2192_v3, %v1615_v25  ;;  %v2194_v37 = vpop.f32.mrb[91].mxu0 }
 0x296   : > { %v2645_v35 = vmul.f32 0.01, %v2399_v49  ;;  %v2402_v53 = vadd.f32 %v5295_v13, %v2401_v28  ;;  %vm2581_vm11 = vcmp.gt.f32.partialorder %v2399_v49, 0.0 }
 0x297   : > { %v2648_v31 = vmul.f32 0.01, %v2410_v19  ;;  %2860 = vadd.xlane.f32.xlu0 %v2776_v33  ;;  %v2711_v5 = vsel %vm2583_vm9, %v2407_v39, %v2647_v12  ;;  %vm2584_vm10 = vcmp.gt.f32.partialorder %v2410_v19, 0.0  ;;  %v5466_v12 = vld [vmem:[%s5781_s2] ss:$0 sm:$0xff] }
 0x298   : > { %v2646_v36 = vmul.f32 0.01, %v2402_v53  ;;  %2862 = vadd.xlane.f32.xlu1 %v2777_v26  ;;  %v2782_v18 = vmul.f32 %v5344_v41, %v2711_v5  ;;  %vm2582_vm12 = vcmp.gt.f32.partialorder %v2402_v53, 0.0  ;;  %v2709_v13 = vsel %vm2581_vm11, %v2399_v49, %v2645_v35 }
 0x299   : > { %v2712_v48 = vsel %vm2584_vm10, %v2410_v19, %v2648_v31  ;;  %v3778_v26 = vadd.f32 %v5466_v12, %v5245_v34  ;;  %v3780_v27 = vadd.f32 %v5466_v12, %v5251_v47 }
 0x29a   : > { %v3614_v44 = vpop.f32.mrb[156].mxu1  ;;  %v2783_v24 = vmul.f32 %v5344_v41, %v2712_v48  ;;  %v2197_v30 = vpop.f32.mrb[92].mxu0  ;;  %v2710_v61 = vsel %vm2582_vm12, %v2402_v53, %v2646_v36 }
 0x29b   : > { %v2423_v1 = vadd.f32 %v5327_v8, %v3614_v44  ;;  %v2414_v29 = vpop.f32.mrb[157].mxu1  ;;  %2872 = vadd.xlane.f32.xlu0 %v2782_v18  ;;  %v5453_v9 = vadd.f32 %v2197_v30, %v1620_v2  ;;  %v2199_v14 = vpop.f32.mrb[93].mxu0  ;;  %v2780_v8 = vmul.f32 %v5344_v41, %v2709_v13  ;;  %v2781_v25 = vmul.f32 %v5344_v41, %v2710_v61 }
 0x29c   : > { %v2415_v10 = vadd.f32 %v5315_v45, %v2414_v29  ;;  %v3615_v56 = vpop.f32.mrb[158].mxu1  ;;  %2874 = vadd.xlane.f32.xlu1 %v2783_v24  ;;  %v2200_v21 = vpop.f32.mrb[94].mxu0 }
 0x29d   : > { %v2651_v58 = vmul.f32 0.01, %v2423_v1  ;;  %v2426_v43 = vadd.f32 %v5331_v63, %v3615_v56  ;;  %v2417_v39 = vpop.f32.mrb[159].mxu1  ;;  %vm2587_vm13 = vcmp.gt.f32.partialorder %v2423_v1, 0.0  ;;  %v5458_v23 = vadd.f32 %v2200_v21, %v1623_v55  ;;  %v2202_v60 = vpop.f32.mrb[95].mxu0 }
 0x29e   : > { %v2649_v50 = vmul.f32 0.01, %v2415_v10  ;;  %v2418_v38 = vadd.f32 %v5319_v51, %v2417_v39  ;;  %vm2585_vm15 = vcmp.gt.f32.partialorder %v2415_v10, 0.0  ;;  %v3776_v51 = vadd.f32 %v5466_v12, %v5239_v20 }
 0x29f   : > { %v2652_v6 = vmul.f32 0.01, %v2426_v43  ;;  %2868 = vadd.xlane.f32.xlu0 %v2780_v8  ;;  %v2715_v45 = vsel %vm2587_vm13, %v2423_v1, %v2651_v58  ;;  %vm2588_vm14 = vcmp.gt.f32.partialorder %v2426_v43, 0.0 }
 0x2a0   : > { %v2650_v49 = vmul.f32 0.01, %v2418_v38  ;;  %2870 = vadd.xlane.f32.xlu1 %v2781_v25  ;;  %v2786_v63 = vmul.f32 %v5344_v41, %v2715_v45  ;;  %vm2586_vm0 = vcmp.gt.f32.partialorder %v2418_v38, 0.0  ;;  %v2713_v28 = vsel %vm2585_vm15, %v2415_v10, %v2649_v50 }
 0x2a1   : > { %v2716_v52 = vsel %vm2588_vm14, %v2426_v43, %v2652_v6  ;;  %v3782_v43 = vadd.f32 %v5466_v12, %v5257_v40 }
 0x2a2   : > { %v3618_v3 = vpop.f32.mrb[160].mxu1  ;;  %v2787_v19 = vmul.f32 %v5344_v41, %v2716_v52  ;;  %v2205_v33 = vpop.f32.mrb[96].mxu0  ;;  %v2714_v53 = vsel %vm2586_vm0, %v2418_v38, %v2650_v49 }
 0x2a3   : > { %v2439_v35 = vadd.f32 %v5357_v32, %v3618_v3  ;;  %v2430_v37 = vpop.f32.mrb[161].mxu1  ;;  %2880 = vadd.xlane.f32.xlu0 %v2786_v63  ;;  %v5474_v31 = vadd.f32 %v3776_v51, %v2205_v33  ;;  %v2207_v5 = vpop.f32.mrb[97].mxu0  ;;  %v2784_v32 = vmul.f32 %v5344_v41, %v2713_v28  ;;  %v2785_v30 = vmul.f32 %v5344_v41, %v2714_v53  ;;  %v5807_v28 = vld [vmem:[#allocation8_spill] sm:$0xff] }
 0x2a4   : > { %v2431_v36 = vadd.f32 %v5338_v15, %v2430_v37  ;;  %v3619_v18 = vpop.f32.mrb[162].mxu1  ;;  %2882 = vadd.xlane.f32.xlu1 %v2787_v19  ;;  %v2208_v48 = vpop.f32.mrb[98].mxu0  ;;  %v3784_v33 = vadd.f32 %v5466_v12, %v5807_v28 }
 0x2a5   : > { %v2655_v20 = vmul.f32 0.01, %v2439_v35  ;;  %v2442_v16 = vadd.f32 %v5363_v0, %v3619_v18  ;;  %v2433_v2 = vpop.f32.mrb[163].mxu1  ;;  %vm2591_vm1 = vcmp.gt.f32.partialorder %v2439_v35, 0.0  ;;  %v5479_v24 = vadd.f32 %v3778_v26, %v2208_v48  ;;  %v2210_v13 = vpop.f32.mrb[99].mxu0  ;;  %v5808_v18 = vld [vmem:[#allocation9_spill] sm:$0xff] }
 0x2a6   : > { %v2653_v44 = vmul.f32 0.01, %v2431_v36  ;;  %v2434_v34 = vadd.f32 %v5347_v54, %v2433_v2  ;;  %vm2589_vm3 = vcmp.gt.f32.partialorder %v2431_v36, 0.0 }
 0x2a7   : > { %v2656_v1 = vmul.f32 0.01, %v2442_v16  ;;  %2876 = vadd.xlane.f32.xlu0 %v2784_v32  ;;  %v2719_v15 = vsel %vm2591_vm1, %v2439_v35, %v2655_v20  ;;  %vm2592_vm2 = vcmp.gt.f32.partialorder %v2442_v16, 0.0  ;;  %v3786_v20 = vadd.f32 %v5466_v12, %v5808_v18 }
 0x2a8   : > { %v2654_v29 = vmul.f32 0.01, %v2434_v34  ;;  %2878 = vadd.xlane.f32.xlu1 %v2785_v30  ;;  %v2790_v0 = vmul.f32 %v5344_v41, %v2719_v15  ;;  %vm2590_vm4 = vcmp.gt.f32.partialorder %v2434_v34, 0.0  ;;  %v2717_v14 = vsel %vm2589_vm3, %v2431_v36, %v2653_v44 }
 0x2a9   : > { %v2720_v61 = vsel %vm2592_vm2, %v2442_v16, %v2656_v1 }
 0x2aa   : > { %v3622_v55 = vpop.f32.mrb[164].mxu1  ;;  %v2791_v54 = vmul.f32 %v5344_v41, %v2720_v61  ;;  %v2213_v10 = vpop.f32.mrb[100].mxu0  ;;  %v2718_v21 = vsel %vm2590_vm4, %v2434_v34, %v2654_v29 }
 0x2ab   : > { %v2455_v56 = vadd.f32 %v5389_v59, %v3622_v55  ;;  %v2446_v58 = vpop.f32.mrb[165].mxu1  ;;  %2888 = vadd.xlane.f32.xlu0 %v2790_v0  ;;  %v5490_v39 = vadd.f32 %v3780_v27, %v2213_v10  ;;  %v2215_v8 = vpop.f32.mrb[101].mxu0  ;;  %v2788_v59 = vmul.f32 %v5344_v41, %v2717_v14  ;;  %v2789_v52 = vmul.f32 %v5344_v41, %v2718_v21  ;;  %v5809_v14 = vld [vmem:[#allocation10_spill] sm:$0xff] }
 0x2ac   : > { %v2447_v50 = vadd.f32 %v5373_v62, %v2446_v58  ;;  %v3623_v60 = vpop.f32.mrb[166].mxu1  ;;  %2890 = vadd.xlane.f32.xlu1 %v2791_v54  ;;  %v2216_v38 = vpop.f32.mrb[102].mxu0  ;;  %v3788_v10 = vadd.f32 %v5466_v12, %v5809_v14 }
 0x2ad   : > { %v2659_v47 = vmul.f32 0.01, %v2455_v56  ;;  %v2458_v25 = vadd.f32 %v5394_v22, %v3623_v60  ;;  %v2449_v6 = vpop.f32.mrb[167].mxu1  ;;  %vm2595_vm5 = vcmp.gt.f32.partialorder %v2455_v56, 0.0  ;;  %v5495_v49 = vadd.f32 %v3782_v43, %v2216_v38  ;;  %v2218_v63 = vpop.f32.mrb[103].mxu0  ;;  %v5810_v60 = vld [vmem:[#allocation11_spill] sm:$0xff] }
 0x2ae   : > { %v2657_v45 = vmul.f32 0.01, %v2447_v50  ;;  %v2450_v40 = vadd.f32 %v5378_v46, %v2449_v6  ;;  %vm2593_vm7 = vcmp.gt.f32.partialorder %v2447_v50, 0.0 }
 0x2af   : > { %v2660_v51 = vmul.f32 0.01, %v2458_v25  ;;  %2884 = vadd.xlane.f32.xlu0 %v2788_v59  ;;  %v2723_v62 = vsel %vm2595_vm5, %v2455_v56, %v2659_v47  ;;  %vm2596_vm6 = vcmp.gt.f32.partialorder %v2458_v25, 0.0  ;;  %v3790_v47 = vadd.f32 %v5466_v12, %v5810_v60  ;;  %v5814_v60 = vld [vmem:[#allocation15_spill] sm:$0xff] }
 0x2b0   : > { %v2658_v3 = vmul.f32 0.01, %v2450_v40  ;;  %2886 = vadd.xlane.f32.xlu1 %v2789_v52  ;;  %v2794_v22 = vmul.f32 %v5344_v41, %v2723_v62  ;;  %vm2594_vm8 = vcmp.gt.f32.partialorder %v2450_v40, 0.0  ;;  %v2721_v37 = vsel %vm2593_vm7, %v2447_v50, %v2657_v45 }
 0x2b1   : > { %v2724_v19 = vsel %vm2596_vm6, %v2458_v25, %v2660_v51 }
 0x2b2   : > { %v3626_v35 = vpop.f32.mrb[168].mxu1  ;;  %v2795_v46 = vmul.f32 %v5344_v41, %v2724_v19  ;;  %v2221_v53 = vpop.f32.mrb[104].mxu0  ;;  %v2722_v36 = vsel %vm2594_vm8, %v2450_v40, %v2658_v3 }
 0x2b3   : > { %v2471_v26 = vadd.f32 %v5421_v11, %v3626_v35  ;;  %v2462_v5 = vpop.f32.mrb[169].mxu1  ;;  %2896 = vadd.xlane.f32.xlu0 %v2794_v22  ;;  %v5506_v48 = vadd.f32 %v3784_v33, %v2221_v53  ;;  %v2223_v16 = vpop.f32.mrb[105].mxu0  ;;  %v2792_v11 = vmul.f32 %v5344_v41, %v2721_v37  ;;  %v2793_v61 = vmul.f32 %v5344_v41, %v2722_v36 }
 0x2b4   : > { %v2463_v2 = vadd.f32 %v5405_v57, %v2462_v5  ;;  %v3627_v32 = vpop.f32.mrb[170].mxu1  ;;  %2898 = vadd.xlane.f32.xlu1 %v2795_v46  ;;  %v2224_v34 = vpop.f32.mrb[106].mxu0  ;;  %v5811_v46 = vld [vmem:[#allocation12_spill] sm:$0xff]  ;;  %v5812_v16 = vld [vmem:[#allocation13_spill] sm:$0xff] }
 0x2b5   : > { %v2663_v44 = vmul.f32 0.01, %v2471_v26  ;;  %v2474_v13 = vadd.f32 %v5426_v17, %v3627_v32  ;;  %v2465_v30 = vpop.f32.mrb[171].mxu1  ;;  %vm2599_vm9 = vcmp.gt.f32.partialorder %v2471_v26, 0.0  ;;  %v5511_v15 = vadd.f32 %v3786_v20, %v2224_v34  ;;  %v2226_v0 = vpop.f32.mrb[107].mxu0 }
 0x2b6   : > { %v2661_v1 = vmul.f32 0.01, %v2463_v2  ;;  %v2466_v29 = vadd.f32 %v5410_v7, %v2465_v30  ;;  %vm2597_vm11 = vcmp.gt.f32.partialorder %v2463_v2, 0.0  ;;  %v3792_v37 = vadd.f32 %v5466_v12, %v5811_v46 }
 0x2b7   : > { %v2664_v27 = vmul.f32 0.01, %v2474_v13  ;;  %2892 = vadd.xlane.f32.xlu0 %v2792_v11  ;;  %v2727_v57 = vsel %vm2599_vm9, %v2471_v26, %v2663_v44  ;;  %vm2600_vm10 = vcmp.gt.f32.partialorder %v2474_v13, 0.0 }
 0x2b8   : > { %v2662_v55 = vmul.f32 0.01, %v2466_v29  ;;  %2894 = vadd.xlane.f32.xlu1 %v2793_v61  ;;  %v2798_v17 = vmul.f32 %v5344_v41, %v2727_v57  ;;  %vm2598_vm12 = vcmp.gt.f32.partialorder %v2466_v29, 0.0  ;;  %v2725_v58 = vsel %vm2597_vm11, %v2463_v2, %v2661_v1 }
 0x2b9   : > { %v2728_v54 = vsel %vm2600_vm10, %v2474_v13, %v2664_v27  ;;  %v3794_v2 = vadd.f32 %v5466_v12, %v5812_v16 }
 0x2ba   : > { %v3630_v56 = vpop.f32.mrb[172].mxu1  ;;  %v2799_v7 = vmul.f32 %v5344_v41, %v2728_v54  ;;  %v2229_v21 = vpop.f32.mrb[108].mxu0  ;;  %v2726_v50 = vsel %vm2598_vm12, %v2466_v29, %v2662_v55 }
 0x2bb   : > { %v2487_v43 = vadd.f32 %v5453_v9, %v3630_v56  ;;  %v2478_v8 = vpop.f32.mrb[173].mxu1  ;;  %2904 = vadd.xlane.f32.xlu0 %v2798_v17  ;;  %v5522_v38 = vadd.f32 %v3788_v10, %v2229_v21  ;;  %v2231_v25 = vpop.f32.mrb[109].mxu0  ;;  %v2796_v9 = vmul.f32 %v5344_v41, %v2725_v58  ;;  %v2797_v19 = vmul.f32 %v5344_v41, %v2726_v50  ;;  %v5813_v10 = vld [vmem:[#allocation14_spill] sm:$0xff] }
 0x2bc   : > { %v2479_v6 = vadd.f32 %v5437_v4, %v2478_v8  ;;  %v3631_v59 = vpop.f32.mrb[174].mxu1  ;;  %2906 = vadd.xlane.f32.xlu1 %v2799_v7  ;;  %v2232_v40 = vpop.f32.mrb[110].mxu0  ;;  %v3796_v56 = vadd.f32 %v5466_v12, %v5813_v10  ;;  %v5817_v10 = vld [vmem:[#allocation18_spill] sm:$0xff] }
 0x2bd   : > { %v2667_v45 = vmul.f32 0.01, %v2487_v43  ;;  %v2490_v63 = vadd.f32 %v5458_v23, %v3631_v59  ;;  %v2481_v52 = vpop.f32.mrb[175].mxu1  ;;  %vm2603_vm13 = vcmp.gt.f32.partialorder %v2487_v43, 0.0  ;;  %v5527_v62 = vadd.f32 %v3790_v47, %v2232_v40  ;;  %v2234_v22 = vpop.f32.mrb[111].mxu0 }
 0x2be   : > { %v2665_v51 = vmul.f32 0.01, %v2479_v6  ;;  %v2482_v3 = vadd.f32 %v5442_v42, %v2481_v52  ;;  %vm2601_vm15 = vcmp.gt.f32.partialorder %v2479_v6, 0.0  ;;  %v3798_v47 = vadd.f32 %v5466_v12, %v5814_v60 }
 0x2bf   : > { %v2668_v28 = vmul.f32 0.01, %v2490_v63  ;;  %2900 = vadd.xlane.f32.xlu0 %v2796_v9  ;;  %v2731_v4 = vsel %vm2603_vm13, %v2487_v43, %v2667_v45  ;;  %vm2604_vm14 = vcmp.gt.f32.partialorder %v2490_v63, 0.0 }
 0x2c0   : > { %v2666_v33 = vmul.f32 0.01, %v2482_v3  ;;  %2902 = vadd.xlane.f32.xlu1 %v2797_v19  ;;  %v2802_v23 = vmul.f32 %v5344_v41, %v2731_v4  ;;  %vm2602_vm0 = vcmp.gt.f32.partialorder %v2482_v3, 0.0  ;;  %v2729_v26 = vsel %vm2601_vm15, %v2479_v6, %v2665_v51 }
 0x2c1   : > { %v2732_v35 = vsel %vm2604_vm14, %v2490_v63, %v2668_v28 }
 0x2c2   : > { %v3634_v53 = vpop.f32.mrb[176].mxu1  ;;  %v2803_v42 = vmul.f32 %v5344_v41, %v2732_v35  ;;  %v2237_v5 = vpop.f32.mrb[112].mxu0  ;;  %v2730_v20 = vsel %vm2602_vm0, %v2482_v3, %v2666_v33  ;;  %v5815_v35 = vld [vmem:[#allocation16_spill] sm:$0xff] }
 0x2c3   : > { %v2503_v36 = vadd.f32 %v5490_v39, %v3634_v53  ;;  %v2494_v18 = vpop.f32.mrb[177].mxu1  ;;  %2912 = vadd.xlane.f32.xlu0 %v2802_v23  ;;  %v5538_v32 = vadd.f32 %v3792_v37, %v2237_v5  ;;  %v2239_v44 = vpop.f32.mrb[113].mxu0  ;;  %v2800_v39 = vmul.f32 %v5344_v41, %v2729_v26  ;;  %v2801_v55 = vmul.f32 %v5344_v41, %v2730_v20 }
 0x2c4   : > { %v2495_v34 = vadd.f32 %v5474_v31, %v2494_v18  ;;  %v3635_v13 = vpop.f32.mrb[178].mxu1  ;;  %2914 = vadd.xlane.f32.xlu1 %v2803_v42  ;;  %v2240_v11 = vpop.f32.mrb[114].mxu0  ;;  %v3800_v46 = vadd.f32 %v5466_v12, %v5815_v35  ;;  %v5816_v18 = vld [vmem:[#allocation17_spill] sm:$0xff] }
 0x2c5   : > { %v2671_v30 = vmul.f32 0.01, %v2503_v36  ;;  %v2506_v1 = vadd.f32 %v5495_v49, %v3635_v13  ;;  %v2497_v29 = vpop.f32.mrb[179].mxu1  ;;  %vm2607_vm1 = vcmp.gt.f32.partialorder %v2503_v36, 0.0  ;;  %v5543_v61 = vadd.f32 %v3794_v2, %v2240_v11  ;;  %v2242_v57 = vpop.f32.mrb[115].mxu0 }
 0x2c6   : > { %v2669_v0 = vmul.f32 0.01, %v2495_v34  ;;  %v2498_v27 = vadd.f32 %v5479_v24, %v2497_v29  ;;  %vm2605_vm3 = vcmp.gt.f32.partialorder %v2495_v34, 0.0  ;;  %v3802_v20 = vadd.f32 %v5466_v12, %v5816_v18 }
 0x2c7   : > { %v2672_v17 = vmul.f32 0.01, %v2506_v1  ;;  %2908 = vadd.xlane.f32.xlu0 %v2800_v39  ;;  %v2735_v31 = vsel %vm2607_vm1, %v2503_v36, %v2671_v30  ;;  %vm2608_vm2 = vcmp.gt.f32.partialorder %v2506_v1, 0.0  ;;  %vm3334_vm1 = vcmask 7168  }
 0x2c8   : > { %v2670_v54 = vmul.f32 0.01, %v2498_v27  ;;  %2910 = vadd.xlane.f32.xlu1 %v2801_v55  ;;  %v2806_v49 = vmul.f32 %v5344_v41, %v2735_v31  ;;  %vm2606_vm4 = vcmp.gt.f32.partialorder %v2498_v27, 0.0  ;;  %v2733_v58 = vsel %vm2605_vm3, %v2495_v34, %v2669_v0 }
 0x2c9   : > { %v2736_v14 = vsel %vm2608_vm2, %v2506_v1, %v2672_v17  ;;  %v2804_v51 = vmul.f32 %v5344_v41, %v2733_v58 }
 0x2ca   : > { %v3638_v7 = vpop.f32.mrb[180].mxu1  ;;  %v2807_v24 = vmul.f32 %v5344_v41, %v2736_v14  ;;  %v2245_v21 = vpop.f32.mrb[116].mxu0  ;;  %v2734_v50 = vsel %vm2606_vm4, %v2498_v27, %v2670_v54  ;;  %v4252_v54 = vld [vmem:[%s5782_s3] ss:$0 sm:$0xff] }
 0x2cb   : > { %v2519_v43 = vadd.f32 %v5522_v38, %v3638_v7  ;;  %v2510_v8 = vpop.f32.mrb[181].mxu1  ;;  %2920 = vadd.xlane.f32.xlu0 %v2806_v49  ;;  %v3797_v25 = vadd.f32 %v3796_v56, %v2245_v21  ;;  %v2247_v6 = vpop.f32.mrb[117].mxu0  ;;  %v2805_v28 = vmul.f32 %v5344_v41, %v2734_v50 }
 0x2cc   : > { %v2511_v59 = vadd.f32 %v5506_v48, %v2510_v8  ;;  %v3639_v45 = vpop.f32.mrb[182].mxu1  ;;  %2922 = vadd.xlane.f32.xlu1 %v2807_v24  ;;  %v2248_v63 = vpop.f32.mrb[118].mxu0 }
 0x2cd   : > { %v2675_v40 = vmul.f32 0.01, %v2519_v43  ;;  %v2522_v52 = vadd.f32 %v5527_v62, %v3639_v45  ;;  %v2513_v9 = vpop.f32.mrb[183].mxu1  ;;  %vm2611_vm5 = vcmp.gt.f32.partialorder %v2519_v43, 0.0  ;;  %v3799_v3 = vadd.f32 %v3798_v47, %v2248_v63  ;;  %v2250_v19 = vpop.f32.mrb[119].mxu0 }
 0x2ce   : > { %v2673_v38 = vmul.f32 0.01, %v2511_v59  ;;  %v2514_v22 = vadd.f32 %v5511_v15, %v2513_v9  ;;  %vm2609_vm7 = vcmp.gt.f32.partialorder %v2511_v59, 0.0 }
 0x2cf   : > { %v2676_v4 = vmul.f32 0.01, %v2522_v52  ;;  %2916 = vadd.xlane.f32.xlu0 %v2804_v51  ;;  %v2739_v48 = vsel %vm2611_vm5, %v2519_v43, %v2675_v40  ;;  %vm2612_vm6 = vcmp.gt.f32.partialorder %v2522_v52, 0.0  ;;  %v5818_v43 = vld [vmem:[#allocation19_spill] sm:$0xff] }
 0x2d0   : > { %v2674_v33 = vmul.f32 0.01, %v2514_v22  ;;  %2918 = vadd.xlane.f32.xlu1 %v2805_v28  ;;  %v2810_v62 = vmul.f32 %v5344_v41, %v2739_v48  ;;  %vm2610_vm8 = vcmp.gt.f32.partialorder %v2514_v22, 0.0  ;;  %v2737_v53 = vsel %vm2609_vm7, %v2511_v59, %v2673_v38 }
 0x2d1   : > { %v2740_v23 = vsel %vm2612_vm6, %v2522_v52, %v2676_v4  ;;  %v2808_v29 = vmul.f32 %v5344_v41, %v2737_v53  ;;  %v3806_v8 = vadd.f32 %v5466_v12, %v5818_v43 }
 0x2d2   : > { %v3642_v37 = vpop.f32.mrb[184].mxu1  ;;  %v2811_v15 = vmul.f32 %v5344_v41, %v2740_v23  ;;  %v2253_v42 = vpop.f32.mrb[120].mxu0  ;;  %v2738_v36 = vsel %vm2610_vm8, %v2514_v22, %v2674_v33 }
 0x2d3   : > { %v2535_v26 = vadd.f32 %v3797_v25, %v3642_v37  ;;  %v2526_v5 = vpop.f32.mrb[185].mxu1  ;;  %2928 = vadd.xlane.f32.xlu0 %v2810_v62  ;;  %v3801_v16 = vadd.f32 %v3800_v46, %v2253_v42  ;;  %v2255_v2 = vpop.f32.mrb[121].mxu0  ;;  %v2809_v55 = vmul.f32 %v5344_v41, %v2738_v36  ;;  %v5576_v37 = vstv %s2948_s12 }
 0x2d4   : > { %v2527_v44 = vadd.f32 %v5538_v32, %v2526_v5  ;;  %v3643_v34 = vpop.f32.mrb[186].mxu1  ;;  %2930 = vadd.xlane.f32.xlu1 %v2811_v15  ;;  %v2256_v30 = vpop.f32.mrb[122].mxu0 }
 0x2d5   : > { %v2679_v13 = vmul.f32 0.01, %v2535_v26  ;;  %v2538_v11 = vadd.f32 %v3799_v3, %v3643_v34  ;;  %v2529_v1 = vpop.f32.mrb[187].mxu1  ;;  %vm2615_vm9 = vcmp.gt.f32.partialorder %v2535_v26, 0.0  ;;  %v3803_v0 = vadd.f32 %v3802_v20, %v2256_v30  ;;  %v2258_v57 = vpop.f32.mrb[123].mxu0 }
 0x2d6   : > { %v2677_v39 = vmul.f32 0.01, %v2527_v44  ;;  %v2530_v27 = vadd.f32 %v5543_v61, %v2529_v1  ;;  %vm2613_vm11 = vcmp.gt.f32.partialorder %v2527_v44, 0.0  ;;  %v3804_v61 = vadd.f32 %v5466_v12, %v5817_v10 }
 0x2d7   : > { %v2680_v17 = vmul.f32 0.01, %v2538_v11  ;;  %2924 = vadd.xlane.f32.xlu0 %v2808_v29  ;;  %v2743_v31 = vsel %vm2615_vm9, %v2535_v26, %v2679_v13  ;;  %vm2616_vm10 = vcmp.gt.f32.partialorder %v2538_v11, 0.0 }
 0x2d8   : > { %v2678_v32 = vmul.f32 0.01, %v2530_v27  ;;  %2926 = vadd.xlane.f32.xlu1 %v2809_v55  ;;  %v2814_v49 = vmul.f32 %v4252_v54, %v2743_v31  ;;  %vm2614_vm12 = vcmp.gt.f32.partialorder %v2530_v27, 0.0  ;;  %v2741_v41 = vsel %vm2613_vm11, %v2527_v44, %v2677_v39 }
 0x2d9   : > { %v2744_v14 = vsel %vm2616_vm10, %v2538_v11, %v2680_v17  ;;  %v2812_v45 = vmul.f32 %v4252_v54, %v2741_v41 }
 0x2da   : > { %v3646_v56 = vpop.f32.mrb[188].mxu1  ;;  %v2815_v7 = vmul.f32 %v4252_v54, %v2744_v14  ;;  %v2742_v24 = vsel %vm2614_vm12, %v2530_v27, %v2678_v32  ;;  %v2261_v58 = vpop.f32.mrb[124].mxu0 }
 0x2db   : > { %v2542_v21 = vpop.f32.mrb[189].mxu1  ;;  %2936 = vadd.xlane.f32.xlu0 %v2814_v49  ;;  %v3805_v50 = vadd.f32 %v3804_v61, %v2261_v58  ;;  %v2263_v60 = vpop.f32.mrb[125].mxu0  ;;  %v2813_v40 = vmul.f32 %v4252_v54, %v2742_v24 }
 0x2dc   : > { %v2543_v47 = vadd.f32 %v3801_v16, %v2542_v21  ;;  %v3647_v25 = vpop.f32.mrb[190].mxu1  ;;  %2938 = vadd.xlane.f32.xlu1 %v2815_v7  ;;  %v2264_v6 = vpop.f32.mrb[126].mxu0 }
 0x2dd   : > { %v2545_v59 = vpop.f32.mrb[191].mxu1  ;;  %v2551_v63 = vadd.f32 %v3805_v50, %v3646_v56  ;;  %v3807_v9 = vadd.f32 %v3806_v8, %v2264_v6  ;;  %v2266_v38 = vpop.f32.mrb[127].mxu0 }
 0x2de   : > { %v2681_v52 = vmul.f32 0.01, %v2543_v47  ;;  %v2546_v51 = vadd.f32 %v3803_v0, %v2545_v59  ;;  %vm2617_vm13 = vcmp.gt.f32.partialorder %v2543_v47, 0.0 }
 0x2df   : > { %2932 = vadd.xlane.f32.xlu0 %v2812_v45  ;;  %v2683_v3 = vmul.f32 0.01, %v2551_v63  ;;  %v2554_v22 = vadd.f32 %v3807_v9, %v3647_v25  ;;  %vm2619_vm15 = vcmp.gt.f32.partialorder %v2551_v63, 0.0 }
 0x2e0   : > { %v2682_v19 = vmul.f32 0.01, %v2546_v51  ;;  %2934 = vadd.xlane.f32.xlu1 %v2813_v40  ;;  %v2745_v12 = vsel %vm2617_vm13, %v2543_v47, %v2681_v52  ;;  %vm2618_vm14 = vcmp.gt.f32.partialorder %v2546_v51, 0.0 }
 0x2e1   : > { %v2816_v28 = vmul.f32 %v4252_v54, %v2745_v12  ;;  %v2684_v4 = vmul.f32 0.01, %v2554_v22  ;;  %v2747_v33 = vsel %vm2619_vm15, %v2551_v63, %v2683_v3  ;;  %vm2620_vm0 = vcmp.gt.f32.partialorder %v2554_v22, 0.0 }
 0x2e2   : > { %v2746_v48 = vsel %vm2618_vm14, %v2546_v51, %v2682_v19  ;;  %v2818_v35 = vmul.f32 %v4252_v54, %v2747_v33 }
 0x2e3   : > { %2940 = vadd.xlane.f32.xlu0 %v2816_v28  ;;  %v2817_v62 = vmul.f32 %v4252_v54, %v2746_v48  ;;  %v2748_v23 = vsel %vm2620_vm0, %v2554_v22, %v2684_v4 }
 0x2e4   : > { %v2819_v46 = vmul.f32 %v4252_v54, %v2748_v23 }
 0x2e5   : > { %2942 = vadd.xlane.f32.xlu1 %v2817_v62 }
 0x2e7   : > { %2944 = vadd.xlane.f32.xlu0 %v2818_v35 }
 0x2e9   : > { %2946 = vadd.xlane.f32.xlu1 %v2819_v46 }
 0x2f7   : > { %v2825_v15 = vpop.xlane.xlu1 %2824 }
 0x2f8   : > { %v2952_v53 = vadd.f32 %v5576_v37, %v2825_v15  ;;  %v2821_v42 = vpop.xlane.xlu0 %2820 }
 0x2f9   : > { %v2950_v26 = vadd.f32 %v5576_v37, %v2821_v42 }
 0x2fa   : > { %v3016_v5 = vsub.f32 0.0, %v2952_v53 }
 0x2fb   : > { %v3014_v36 = vsub.f32 0.0, %v2950_v26  ;;  %v2827_v18 = vpop.xlane.xlu1 %2826 }
 0x2fc   : > { %v3082_v20 = vmul.f32 1.442695, %v3016_v5  ;;  %v2953_v16 = vadd.f32 %v5576_v37, %v2827_v18  ;;  %v2823_v2 = vpop.xlane.xlu0 %2822 }
 0x2fd   : > { %v3078_v44 = vmul.f32 1.442695, %v3014_v36  ;;  %v2951_v34 = vadd.f32 %v5576_v37, %v2823_v2 }
 0x2fe   : > { %3995 = vpow2.f32 %v3082_v20  ;;  %v3017_v13 = vsub.f32 0.0, %v2953_v16 }
 0x2ff   : > { %3997 = vpow2.f32 %v3078_v44  ;;  %v3015_v30 = vsub.f32 0.0, %v2951_v34 }
 0x300   : > { %v3084_v11 = vmul.f32 1.442695, %v3017_v13  ;;  %v2833_v1 = vpop.xlane.xlu0 %2832 }
 0x301   : > { %v3080_v29 = vmul.f32 1.442695, %v3015_v30  ;;  %v2956_v39 = vadd.f32 %v5576_v37, %v2833_v1  ;;  %v2835_v0 = vpop.xlane.xlu1 %2834 }
 0x302   : > { %3999 = vpow2.f32 %v3084_v11  ;;  %v2957_v27 = vadd.f32 %v5576_v37, %v2835_v0 }
 0x303   : > { %4001 = vpow2.f32 %v3080_v29  ;;  %v3020_v57 = vsub.f32 0.0, %v2956_v39 }
 0x304   : > { %v3021_v55 = vsub.f32 0.0, %v2957_v27  ;;  %v2829_v17 = vpop.xlane.xlu0 %2828 }
 0x305   : > { %v3090_v31 = vmul.f32 1.442695, %v3020_v57  ;;  %v2954_v32 = vadd.f32 %v5576_v37, %v2829_v17  ;;  %v2831_v54 = vpop.xlane.xlu1 %2830 }
 0x306   : > { %v3092_v49 = vmul.f32 1.442695, %v3021_v55  ;;  %v2955_v14 = vadd.f32 %v5576_v37, %v2831_v54 }
 0x307   : > { %4003 = vpow2.f32 %v3090_v31  ;;  %v3018_v10 = vsub.f32 0.0, %v2954_v32 }
 0x308   : > { %v3996_v61 = vpop.eup %3995  ;;  %4005 = vpow2.f32 %v3092_v49  ;;  %v3019_v56 = vsub.f32 0.0, %v2955_v14  ;;  %v2841_v7 = vpop.xlane.xlu0 %2840 }
 0x309   : > { %v3998_v41 = vpop.eup %3997  ;;  %v3208_v24 = vadd.f32 1.0, %v3996_v61  ;;  %v3086_v58 = vmul.f32 1.442695, %v3018_v10  ;;  %v2960_v21 = vadd.f32 %v5576_v37, %v2841_v7  ;;  %v2843_v43 = vpop.xlane.xlu1 %2842 }
 0x30a   : > { %v3206_v8 = vadd.f32 1.0, %v3998_v41  ;;  %v3088_v50 = vmul.f32 1.442695, %v3019_v56  ;;  %v2961_v60 = vadd.f32 %v5576_v37, %v2843_v43 }
 0x30b   : > { %4007 = vrcp.f32 %v3208_v24  ;;  %v3024_v47 = vsub.f32 0.0, %v2960_v21 }
 0x30c   : > { %v4000_v25 = vpop.eup %3999  ;;  %4009 = vrcp.f32 %v3206_v8  ;;  %v3025_v6 = vsub.f32 0.0, %v2961_v60  ;;  %v2837_v59 = vpop.xlane.xlu0 %2836 }
 0x30d   : > { %v4002_v45 = vpop.eup %4001  ;;  %v3209_v40 = vadd.f32 1.0, %v4000_v25  ;;  %4011 = vpow2.f32 %v3086_v58  ;;  %v3098_v63 = vmul.f32 1.442695, %v3024_v47  ;;  %v2958_v52 = vadd.f32 %v5576_v37, %v2837_v59  ;;  %v2839_v9 = vpop.xlane.xlu1 %2838 }
 0x30e   : > { %v3207_v51 = vadd.f32 1.0, %v4002_v45  ;;  %4013 = vpow2.f32 %v3088_v50  ;;  %v3100_v38 = vmul.f32 1.442695, %v3025_v6  ;;  %v2959_v3 = vadd.f32 %v5576_v37, %v2839_v9 }
 0x30f   : > { %4015 = vrcp.f32 %v3209_v40  ;;  %v3022_v22 = vsub.f32 0.0, %v2958_v52 }
 0x310   : > { %4017 = vrcp.f32 %v3207_v51  ;;  %v3023_v19 = vsub.f32 0.0, %v2959_v3  ;;  %v2849_v12 = vpop.xlane.xlu0 %2848 }
 0x311   : > { %v4004_v28 = vpop.eup %4003  ;;  %4019 = vpow2.f32 %v3098_v63  ;;  %v3094_v4 = vmul.f32 1.442695, %v3022_v22  ;;  %v2964_v48 = vadd.f32 %v5576_v37, %v2849_v12  ;;  %v2851_v33 = vpop.xlane.xlu1 %2850 }
 0x312   : > { %v4006_v62 = vpop.eup %4005  ;;  %v3212_v23 = vadd.f32 1.0, %v4004_v28  ;;  %4021 = vpow2.f32 %v3100_v38  ;;  %v3096_v35 = vmul.f32 1.442695, %v3023_v19  ;;  %v2965_v46 = vadd.f32 %v5576_v37, %v2851_v33 }
 0x313   : > { %v3213_v15 = vadd.f32 1.0, %v4006_v62  ;;  %4023 = vpow2.f32 %v3094_v4  ;;  %v3028_v53 = vsub.f32 0.0, %v2964_v48 }
 0x314   : > { %4025 = vrcp.f32 %v3212_v23  ;;  %v3029_v42 = vsub.f32 0.0, %v2965_v46  ;;  %v2845_v26 = vpop.xlane.xlu0 %2844 }
 0x315   : > { %v4008_v5 = vpop.eup %4007  ;;  %4027 = vrcp.f32 %v3213_v15  ;;  %v3106_v36 = vmul.f32 1.442695, %v3028_v53  ;;  %v2962_v18 = vadd.f32 %v5576_v37, %v2845_v26  ;;  %v2847_v20 = vpop.xlane.xlu1 %2846 }
 0x316   : > { %v4010_v16 = vpop.eup %4009  ;;  %3337 = vst.msk [vmem:[%s5596_s17 + $0x10] sm:$0xff] %vm3334_vm1, %v4008_v5  ;;  %4029 = vpow2.f32 %v3096_v35  ;;  %v3108_v2 = vmul.f32 1.442695, %v3029_v42  ;;  %v2963_v44 = vadd.f32 %v5576_v37, %v2847_v20 }
 0x317   : > { %v4012_v34 = vpop.eup %4011  ;;  %3335 = vst.msk [vmem:[%s5596_s17] sm:$0xff] %vm3334_vm1, %v4010_v16  ;;  %4031 = vpow2.f32 %v3106_v36  ;;  %v3026_v13 = vsub.f32 0.0, %v2962_v18 }
 0x318   : > { %v4014_v30 = vpop.eup %4013  ;;  %v3210_v11 = vadd.f32 1.0, %v4012_v34  ;;  %4033 = vpow2.f32 %v3108_v2  ;;  %v3027_v1 = vsub.f32 0.0, %v2963_v44  ;;  %v2857_v29 = vpop.xlane.xlu0 %2856 }
 0x319   : > { %v4016_v39 = vpop.eup %4015  ;;  %v3211_v0 = vadd.f32 1.0, %v4014_v30  ;;  %v3102_v27 = vmul.f32 1.442695, %v3026_v13  ;;  %v2968_v57 = vadd.f32 %v5576_v37, %v2857_v29  ;;  %v2859_v55 = vpop.xlane.xlu1 %2858 }
 0x31a   : > { %v4018_v17 = vpop.eup %4017  ;;  %3338 = vst.msk [vmem:[%s5596_s17 + $0x18] sm:$0xff] %vm3334_vm1, %v4016_v39  ;;  %4035 = vrcp.f32 %v3210_v11  ;;  %v3104_v31 = vmul.f32 1.442695, %v3027_v1  ;;  %v2969_v32 = vadd.f32 %v5576_v37, %v2859_v55 }
 0x31b   : > { %v4020_v54 = vpop.eup %4019  ;;  %3336 = vst.msk [vmem:[%s5596_s17 + $0x8] sm:$0xff] %vm3334_vm1, %v4018_v17  ;;  %4037 = vrcp.f32 %v3211_v0  ;;  %v3032_v49 = vsub.f32 0.0, %v2968_v57 }
 0x31c   : > { %v4022_v14 = vpop.eup %4021  ;;  %v3216_v10 = vadd.f32 1.0, %v4020_v54  ;;  %4039 = vpow2.f32 %v3102_v27  ;;  %v3033_v61 = vsub.f32 0.0, %v2969_v32  ;;  %v2853_v56 = vpop.xlane.xlu0 %2852 }
 0x31d   : > { %v4024_v7 = vpop.eup %4023  ;;  %v3217_v41 = vadd.f32 1.0, %v4022_v14  ;;  %4041 = vpow2.f32 %v3104_v31  ;;  %v3114_v24 = vmul.f32 1.442695, %v3032_v49  ;;  %v2966_v58 = vadd.f32 %v5576_v37, %v2853_v56  ;;  %v2855_v21 = vpop.xlane.xlu1 %2854 }
 0x31e   : > { %v4026_v43 = vpop.eup %4025  ;;  %4043 = vrcp.f32 %v3216_v10  ;;  %v3214_v8 = vadd.f32 1.0, %v4024_v7  ;;  %v3116_v50 = vmul.f32 1.442695, %v3033_v61  ;;  %v2967_v60 = vadd.f32 %v5576_v37, %v2855_v21 }
 0x31f   : > { %v4028_v47 = vpop.eup %4027  ;;  %3341 = vst.msk [vmem:[%s5596_s17 + $0x30] sm:$0xff] %vm3334_vm1, %v4026_v43  ;;  %4045 = vrcp.f32 %v3217_v41  ;;  %v3030_v25 = vsub.f32 0.0, %v2966_v58 }
 0x320   : > { %v4030_v6 = vpop.eup %4029  ;;  %3342 = vst.msk [vmem:[%s5596_s17 + $0x38] sm:$0xff] %vm3334_vm1, %v4028_v47  ;;  %4047 = vrcp.f32 %v3214_v8  ;;  %v3031_v59 = vsub.f32 0.0, %v2967_v60  ;;  %v2865_v45 = vpop.xlane.xlu0 %2864 }
 0x321   : > { %v4032_v40 = vpop.eup %4031  ;;  %v3215_v63 = vadd.f32 1.0, %v4030_v6  ;;  %4049 = vpow2.f32 %v3114_v24  ;;  %v2972_v52 = vadd.f32 %v5576_v37, %v2865_v45  ;;  %v2867_v9 = vpop.xlane.xlu1 %2866  ;;  %v3110_v3 = vmul.f32 1.442695, %v3030_v25 }
 0x322   : > { %v4034_v51 = vpop.eup %4033  ;;  %v3220_v38 = vadd.f32 1.0, %v4032_v40  ;;  %4051 = vpow2.f32 %v3116_v50  ;;  %v2973_v22 = vadd.f32 %v5576_v37, %v2867_v9  ;;  %v3112_v12 = vmul.f32 1.442695, %v3031_v59 }
 0x323   : > { %4053 = vrcp.f32 %v3215_v63  ;;  %v3221_v19 = vadd.f32 1.0, %v4034_v51  ;;  %v3036_v28 = vsub.f32 0.0, %v2972_v52 }
 0x324   : > { %v4036_v4 = vpop.eup %4035  ;;  %4055 = vrcp.f32 %v3220_v38  ;;  %v3037_v48 = vsub.f32 0.0, %v2973_v22  ;;  %v2861_v33 = vpop.xlane.xlu0 %2860 }
 0x325   : > { %v4038_v62 = vpop.eup %4037  ;;  %3339 = vst.msk [vmem:[%s5596_s17 + $0x20] sm:$0xff] %vm3334_vm1, %v4036_v4  ;;  %4057 = vrcp.f32 %v3221_v19  ;;  %v3122_v23 = vmul.f32 1.442695, %v3036_v28  ;;  %v2970_v35 = vadd.f32 %v5576_v37, %v2861_v33  ;;  %v2863_v46 = vpop.xlane.xlu1 %2862 }
 0x326   : > { %v4040_v15 = vpop.eup %4039  ;;  %3340 = vst.msk [vmem:[%s5596_s17 + $0x28] sm:$0xff] %vm3334_vm1, %v4038_v62  ;;  %4059 = vpow2.f32 %v3110_v3  ;;  %v2971_v53 = vadd.f32 %v5576_v37, %v2863_v46  ;;  %v3124_v5 = vmul.f32 1.442695, %v3037_v48 }
 0x327   : > { %v4042_v42 = vpop.eup %4041  ;;  %v3218_v26 = vadd.f32 1.0, %v4040_v15  ;;  %4061 = vpow2.f32 %v3112_v12  ;;  %v3034_v36 = vsub.f32 0.0, %v2970_v35 }
 0x328   : > { %v4044_v18 = vpop.eup %4043  ;;  %v3219_v20 = vadd.f32 1.0, %v4042_v42  ;;  %4063 = vpow2.f32 %v3122_v23  ;;  %v3035_v16 = vsub.f32 0.0, %v2971_v53  ;;  %v2873_v2 = vpop.xlane.xlu0 %2872 }
 0x329   : > { %v4046_v44 = vpop.eup %4045  ;;  %3345 = vst.msk [vmem:[%s5596_s17 + $0x50] sm:$0xff] %vm3334_vm1, %v4044_v18  ;;  %4065 = vrcp.f32 %v3218_v26  ;;  %v3118_v34 = vmul.f32 1.442695, %v3034_v36  ;;  %v2976_v13 = vadd.f32 %v5576_v37, %v2873_v2  ;;  %v2875_v30 = vpop.xlane.xlu1 %2874 }
 0x32a   : > { %v4048_v11 = vpop.eup %4047  ;;  %3346 = vst.msk [vmem:[%s5596_s17 + $0x58] sm:$0xff] %vm3334_vm1, %v4046_v44  ;;  %4067 = vrcp.f32 %v3219_v20  ;;  %v3120_v1 = vmul.f32 1.442695, %v3035_v16  ;;  %v2977_v29 = vadd.f32 %v5576_v37, %v2875_v30 }
 0x32b   : > { %v4050_v39 = vpop.eup %4049  ;;  %3343 = vst.msk [vmem:[%s5596_s17 + $0x40] sm:$0xff] %vm3334_vm1, %v4048_v11  ;;  %4069 = vpow2.f32 %v3124_v5  ;;  %v3040_v0 = vsub.f32 0.0, %v2976_v13 }
 0x32c   : > { %v4052_v27 = vpop.eup %4051  ;;  %v3224_v57 = vadd.f32 1.0, %v4050_v39  ;;  %4071 = vpow2.f32 %v3118_v34  ;;  %v3041_v55 = vsub.f32 0.0, %v2977_v29  ;;  %v2869_v17 = vpop.xlane.xlu0 %2868 }
 0x32d   : > { %v4054_v31 = vpop.eup %4053  ;;  %v3225_v32 = vadd.f32 1.0, %v4052_v27  ;;  %4073 = vpow2.f32 %v3120_v1  ;;  %v3130_v54 = vmul.f32 1.442695, %v3040_v0  ;;  %v2974_v49 = vadd.f32 %v5576_v37, %v2869_v17  ;;  %v2871_v14 = vpop.xlane.xlu1 %2870 }
 0x32e   : > { %v4056_v10 = vpop.eup %4055  ;;  %3344 = vst.msk [vmem:[%s5596_s17 + $0x48] sm:$0xff] %vm3334_vm1, %v4054_v31  ;;  %4075 = vrcp.f32 %v3224_v57  ;;  %v3132_v61 = vmul.f32 1.442695, %v3041_v55  ;;  %v2975_v56 = vadd.f32 %v5576_v37, %v2871_v14 }
 0x32f   : > { %v4058_v7 = vpop.eup %4057  ;;  %3349 = vst.msk [vmem:[%s5596_s17 + $0x70] sm:$0xff] %vm3334_vm1, %v4056_v10  ;;  %4077 = vrcp.f32 %v3225_v32  ;;  %v3038_v41 = vsub.f32 0.0, %v2974_v49 }
 0x330   : > { %v4060_v24 = vpop.eup %4059  ;;  %3350 = vst.msk [vmem:[%s5596_s17 + $0x78] sm:$0xff] %vm3334_vm1, %v4058_v7  ;;  %4079 = vpow2.f32 %v3130_v54  ;;  %v3039_v58 = vsub.f32 0.0, %v2975_v56  ;;  %v2881_v21 = vpop.xlane.xlu0 %2880 }
 0x331   : > { %v4062_v43 = vpop.eup %4061  ;;  %v3222_v8 = vadd.f32 1.0, %v4060_v24  ;;  %4081 = vpow2.f32 %v3132_v61  ;;  %v2980_v50 = vadd.f32 %v5576_v37, %v2881_v21  ;;  %v2883_v60 = vpop.xlane.xlu1 %2882  ;;  %v3126_v6 = vmul.f32 1.442695, %v3038_v41 }
 0x332   : > { %v4064_v47 = vpop.eup %4063  ;;  %v3223_v25 = vadd.f32 1.0, %v4062_v43  ;;  %v2981_v59 = vadd.f32 %v5576_v37, %v2883_v60  ;;  %v3128_v63 = vmul.f32 1.442695, %v3039_v58 }
 0x333   : > { %v4066_v45 = vpop.eup %4065  ;;  %4083 = vrcp.f32 %v3222_v8  ;;  %v3228_v40 = vadd.f32 1.0, %v4064_v47  ;;  %v3044_v52 = vsub.f32 0.0, %v2980_v50 }
 0x334   : > { %v4068_v9 = vpop.eup %4067  ;;  %3347 = vst.msk [vmem:[%s5596_s17 + $0x60] sm:$0xff] %vm3334_vm1, %v4066_v45  ;;  %4085 = vrcp.f32 %v3223_v25  ;;  %v3045_v51 = vsub.f32 0.0, %v2981_v59  ;;  %v2877_v38 = vpop.xlane.xlu0 %2876 }
 0x335   : > { %v4070_v3 = vpop.eup %4069  ;;  %3348 = vst.msk [vmem:[%s5596_s17 + $0x68] sm:$0xff] %vm3334_vm1, %v4068_v9  ;;  %4087 = vrcp.f32 %v3228_v40  ;;  %v2978_v22 = vadd.f32 %v5576_v37, %v2877_v38  ;;  %v2879_v19 = vpop.xlane.xlu1 %2878  ;;  %v3138_v62 = vmul.f32 1.442695, %v3044_v52 }
 0x336   : > { %v4072_v12 = vpop.eup %4071  ;;  %v3229_v28 = vadd.f32 1.0, %v4070_v3  ;;  %4089 = vpow2.f32 %v3126_v6  ;;  %v2979_v4 = vadd.f32 %v5576_v37, %v2879_v19  ;;  %v3140_v15 = vmul.f32 1.442695, %v3045_v51 }
 0x337   : > { %v4074_v48 = vpop.eup %4073  ;;  %v3226_v33 = vadd.f32 1.0, %v4072_v12  ;;  %4091 = vpow2.f32 %v3128_v63  ;;  %v3042_v23 = vsub.f32 0.0, %v2978_v22 }
 0x338   : > { %v4076_v35 = vpop.eup %4075  ;;  %4093 = vrcp.f32 %v3229_v28  ;;  %v3227_v46 = vadd.f32 1.0, %v4074_v48  ;;  %v3043_v53 = vsub.f32 0.0, %v2979_v4  ;;  %v2889_v42 = vpop.xlane.xlu0 %2888 }
 0x339   : > { %v4078_v26 = vpop.eup %4077  ;;  %3353 = vst.msk [vmem:[%s5596_s17 + $0x90] sm:$0xff] %vm3334_vm1, %v4076_v35  ;;  %4095 = vrcp.f32 %v3226_v33  ;;  %v2984_v5 = vadd.f32 %v5576_v37, %v2889_v42  ;;  %v2891_v36 = vpop.xlane.xlu1 %2890  ;;  %v3134_v44 = vmul.f32 1.442695, %v3042_v23 }
 0x33a   : > { %v4080_v18 = vpop.eup %4079  ;;  %3354 = vst.msk [vmem:[%s5596_s17 + $0x98] sm:$0xff] %vm3334_vm1, %v4078_v26  ;;  %4097 = vrcp.f32 %v3227_v46  ;;  %v2985_v20 = vadd.f32 %v5576_v37, %v2891_v36  ;;  %v3136_v30 = vmul.f32 1.442695, %v3043_v53 }
 0x33b   : > { %v4082_v16 = vpop.eup %4081  ;;  %v3232_v2 = vadd.f32 1.0, %v4080_v18  ;;  %4099 = vpow2.f32 %v3138_v62  ;;  %v3048_v34 = vsub.f32 0.0, %v2984_v5 }
 0x33c   : > { %v3233_v13 = vadd.f32 1.0, %v4082_v16  ;;  %4101 = vpow2.f32 %v3140_v15  ;;  %v3049_v11 = vsub.f32 0.0, %v2985_v20  ;;  %v2885_v1 = vpop.xlane.xlu0 %2884 }
 0x33d   : > { %v4084_v29 = vpop.eup %4083  ;;  %4103 = vrcp.f32 %v3232_v2  ;;  %v3146_v39 = vmul.f32 1.442695, %v3048_v34  ;;  %v2982_v0 = vadd.f32 %v5576_v37, %v2885_v1  ;;  %v2887_v27 = vpop.xlane.xlu1 %2886 }
 0x33e   : > { %v4086_v57 = vpop.eup %4085  ;;  %3351 = vst.msk [vmem:[%s5596_s17 + $0x80] sm:$0xff] %vm3334_vm1, %v4084_v29  ;;  %4105 = vrcp.f32 %v3233_v13  ;;  %v3148_v55 = vmul.f32 1.442695, %v3049_v11  ;;  %v2983_v17 = vadd.f32 %v5576_v37, %v2887_v27 }
 0x33f   : > { %v4088_v31 = vpop.eup %4087  ;;  %3352 = vst.msk [vmem:[%s5596_s17 + $0x88] sm:$0xff] %vm3334_vm1, %v4086_v57  ;;  %4107 = vpow2.f32 %v3134_v44  ;;  %v3046_v32 = vsub.f32 0.0, %v2982_v0 }
 0x340   : > { %v4090_v54 = vpop.eup %4089  ;;  %3357 = vst.msk [vmem:[%s5596_s17 + $0xb0] sm:$0xff] %vm3334_vm1, %v4088_v31  ;;  %4109 = vpow2.f32 %v3136_v30  ;;  %v3047_v49 = vsub.f32 0.0, %v2983_v17  ;;  %v2897_v14 = vpop.xlane.xlu0 %2896 }
 0x341   : > { %v4092_v10 = vpop.eup %4091  ;;  %v3230_v61 = vadd.f32 1.0, %v4090_v54  ;;  %4111 = vpow2.f32 %v3146_v39  ;;  %v3142_v56 = vmul.f32 1.442695, %v3046_v32  ;;  %v2988_v7 = vadd.f32 %v5576_v37, %v2897_v14  ;;  %v2899_v41 = vpop.xlane.xlu1 %2898 }
 0x342   : > { %v4094_v24 = vpop.eup %4093  ;;  %v3231_v58 = vadd.f32 1.0, %v4092_v10  ;;  %4113 = vpow2.f32 %v3148_v55  ;;  %v3144_v21 = vmul.f32 1.442695, %v3047_v49  ;;  %v2989_v43 = vadd.f32 %v5576_v37, %v2899_v41 }
 0x343   : > { %v4096_v8 = vpop.eup %4095  ;;  %3358 = vst.msk [vmem:[%s5596_s17 + $0xb8] sm:$0xff] %vm3334_vm1, %v4094_v24  ;;  %4115 = vrcp.f32 %v3230_v61  ;;  %v3052_v50 = vsub.f32 0.0, %v2988_v7 }
 0x344   : > { %v4098_v60 = vpop.eup %4097  ;;  %3355 = vst.msk [vmem:[%s5596_s17 + $0xa0] sm:$0xff] %vm3334_vm1, %v4096_v8  ;;  %4117 = vrcp.f32 %v3231_v58  ;;  %v3053_v47 = vsub.f32 0.0, %v2989_v43  ;;  %v2893_v25 = vpop.xlane.xlu0 %2892 }
 0x345   : > { %v4100_v6 = vpop.eup %4099  ;;  %3356 = vst.msk [vmem:[%s5596_s17 + $0xa8] sm:$0xff] %vm3334_vm1, %v4098_v60  ;;  %4119 = vpow2.f32 %v3142_v56  ;;  %v3154_v59 = vmul.f32 1.442695, %v3052_v50  ;;  %v2986_v45 = vadd.f32 %v5576_v37, %v2893_v25  ;;  %v2895_v40 = vpop.xlane.xlu1 %2894 }
 0x346   : > { %v4102_v63 = vpop.eup %4101  ;;  %v3236_v52 = vadd.f32 1.0, %v4100_v6  ;;  %4121 = vpow2.f32 %v3144_v21  ;;  %v3156_v9 = vmul.f32 1.442695, %v3053_v47  ;;  %v2987_v51 = vadd.f32 %v5576_v37, %v2895_v40 }
 0x347   : > { %v4104_v38 = vpop.eup %4103  ;;  %v3237_v3 = vadd.f32 1.0, %v4102_v63  ;;  %4123 = vpow2.f32 %v3154_v59  ;;  %v3050_v22 = vsub.f32 0.0, %v2986_v45 }
 0x348   : > { %v4106_v19 = vpop.eup %4105  ;;  %3361 = vst.msk [vmem:[%s5596_s17 + $0xd0] sm:$0xff] %vm3334_vm1, %v4104_v38  ;;  %4125 = vrcp.f32 %v3236_v52  ;;  %v3051_v12 = vsub.f32 0.0, %v2987_v51  ;;  %v2905_v28 = vpop.xlane.xlu0 %2904 }
 0x349   : > { %v4108_v4 = vpop.eup %4107  ;;  %3362 = vst.msk [vmem:[%s5596_s17 + $0xd8] sm:$0xff] %vm3334_vm1, %v4106_v19  ;;  %4127 = vrcp.f32 %v3237_v3  ;;  %v3150_v48 = vmul.f32 1.442695, %v3050_v22  ;;  %v2992_v33 = vadd.f32 %v5576_v37, %v2905_v28  ;;  %v2907_v62 = vpop.xlane.xlu1 %2906 }
 0x34a   : > { %v4110_v23 = vpop.eup %4109  ;;  %v3234_v35 = vadd.f32 1.0, %v4108_v4  ;;  %4129 = vpow2.f32 %v3156_v9  ;;  %v2993_v46 = vadd.f32 %v5576_v37, %v2907_v62  ;;  %v3152_v36 = vmul.f32 1.442695, %v3051_v12 }
 0x34b   : > { %v4112_v15 = vpop.eup %4111  ;;  %v3235_v53 = vadd.f32 1.0, %v4110_v23  ;;  %4131 = vpow2.f32 %v3150_v48  ;;  %v3056_v42 = vsub.f32 0.0, %v2992_v33 }
 0x34c   : > { %v4114_v26 = vpop.eup %4113  ;;  %4133 = vrcp.f32 %v3234_v35  ;;  %v3240_v5 = vadd.f32 1.0, %v4112_v15  ;;  %v3057_v18 = vsub.f32 0.0, %v2993_v46  ;;  %v2901_v20 = vpop.xlane.xlu0 %2900 }
 0x34d   : > { %v4116_v16 = vpop.eup %4115  ;;  %4135 = vrcp.f32 %v3235_v53  ;;  %v3241_v2 = vadd.f32 1.0, %v4114_v26  ;;  %v3162_v44 = vmul.f32 1.442695, %v3056_v42  ;;  %v2990_v34 = vadd.f32 %v5576_v37, %v2901_v20  ;;  %v2903_v13 = vpop.xlane.xlu1 %2902 }
 0x34e   : > { %v4118_v30 = vpop.eup %4117  ;;  %3359 = vst.msk [vmem:[%s5596_s17 + $0xc0] sm:$0xff] %vm3334_vm1, %v4116_v16  ;;  %4137 = vrcp.f32 %v3240_v5  ;;  %v2991_v11 = vadd.f32 %v5576_v37, %v2903_v13  ;;  %v3164_v27 = vmul.f32 1.442695, %v3057_v18 }
 0x34f   : > { %v4120_v1 = vpop.eup %4119  ;;  %3360 = vst.msk [vmem:[%s5596_s17 + $0xc8] sm:$0xff] %vm3334_vm1, %v4118_v30  ;;  %4139 = vrcp.f32 %v3241_v2  ;;  %v3054_v29 = vsub.f32 0.0, %v2990_v34 }
 0x350   : > { %v4122_v39 = vpop.eup %4121  ;;  %v3238_v0 = vadd.f32 1.0, %v4120_v1  ;;  %4141 = vpow2.f32 %v3152_v36  ;;  %v2913_v57 = vpop.xlane.xlu0 %2912  ;;  %v3055_v31 = vsub.f32 0.0, %v2991_v11 }
 0x351   : > { %v4124_v55 = vpop.eup %4123  ;;  %v3239_v17 = vadd.f32 1.0, %v4122_v39  ;;  %4143 = vpow2.f32 %v3162_v44  ;;  %v2996_v32 = vadd.f32 %v5576_v37, %v2913_v57  ;;  %v2915_v54 = vpop.xlane.xlu1 %2914  ;;  %v3158_v10 = vmul.f32 1.442695, %v3054_v29 }
 0x352   : > { %v4126_v49 = vpop.eup %4125  ;;  %4145 = vrcp.f32 %v3238_v0  ;;  %v3244_v14 = vadd.f32 1.0, %v4124_v55  ;;  %v2997_v61 = vadd.f32 %v5576_v37, %v2915_v54  ;;  %v3160_v8 = vmul.f32 1.442695, %v3055_v31 }
 0x353   : > { %v4128_v56 = vpop.eup %4127  ;;  %3365 = vst.msk [vmem:[%s5596_s17 + $0xf0] sm:$0xff] %vm3334_vm1, %v4126_v49  ;;  %4147 = vrcp.f32 %v3239_v17  ;;  %v3060_v7 = vsub.f32 0.0, %v2996_v32 }
 0x354   : > { %v4130_v41 = vpop.eup %4129  ;;  %3366 = vst.msk [vmem:[%s5596_s17 + $0xf8] sm:$0xff] %vm3334_vm1, %v4128_v56  ;;  %4149 = vrcp.f32 %v3244_v14  ;;  %v3061_v24 = vsub.f32 0.0, %v2997_v61  ;;  %v2909_v58 = vpop.xlane.xlu0 %2908 }
 0x355   : > { %v4132_v21 = vpop.eup %4131  ;;  %v3245_v43 = vadd.f32 1.0, %v4130_v41  ;;  %4151 = vpow2.f32 %v3164_v27  ;;  %v2994_v50 = vadd.f32 %v5576_v37, %v2909_v58  ;;  %v2911_v60 = vpop.xlane.xlu1 %2910  ;;  %v3170_v6 = vmul.f32 1.442695, %v3060_v7 }
 0x356   : > { %v4134_v47 = vpop.eup %4133  ;;  %v3242_v25 = vadd.f32 1.0, %v4132_v21  ;;  %4153 = vpow2.f32 %v3158_v10  ;;  %v2995_v59 = vadd.f32 %v5576_v37, %v2911_v60  ;;  %v3172_v40 = vmul.f32 1.442695, %v3061_v24 }
 0x357   : > { %v4136_v45 = vpop.eup %4135  ;;  %3363 = vst.msk [vmem:[%s5596_s17 + $0xe0] sm:$0xff] %vm3334_vm1, %v4134_v47  ;;  %4155 = vrcp.f32 %v3245_v43  ;;  %v3058_v63 = vsub.f32 0.0, %v2994_v50 }
 0x358   : > { %v4138_v52 = vpop.eup %4137  ;;  %3364 = vst.msk [vmem:[%s5596_s17 + $0xe8] sm:$0xff] %vm3334_vm1, %v4136_v45  ;;  %4157 = vrcp.f32 %v3242_v25  ;;  %v3059_v9 = vsub.f32 0.0, %v2995_v59  ;;  %v2921_v51 = vpop.xlane.xlu0 %2920 }
 0x359   : > { %v4140_v38 = vpop.eup %4139  ;;  %3369 = vst.msk [vmem:[%s5596_s17 + $0x110] sm:$0xff] %vm3334_vm1, %v4138_v52  ;;  %4159 = vpow2.f32 %v3160_v8  ;;  %v3166_v3 = vmul.f32 1.442695, %v3058_v63  ;;  %v3000_v22 = vadd.f32 %v5576_v37, %v2921_v51  ;;  %v2923_v19 = vpop.xlane.xlu1 %2922 }
 0x35a   : > { %v4142_v12 = vpop.eup %4141  ;;  %3370 = vst.msk [vmem:[%s5596_s17 + $0x118] sm:$0xff] %vm3334_vm1, %v4140_v38  ;;  %4161 = vpow2.f32 %v3170_v6  ;;  %v3001_v28 = vadd.f32 %v5576_v37, %v2923_v19  ;;  %v3168_v33 = vmul.f32 1.442695, %v3059_v9 }
 0x35b   : > { %v4144_v4 = vpop.eup %4143  ;;  %v3243_v48 = vadd.f32 1.0, %v4142_v12  ;;  %4163 = vpow2.f32 %v3172_v40  ;;  %v3064_v62 = vsub.f32 0.0, %v3000_v22 }
 0x35c   : > { %v4146_v23 = vpop.eup %4145  ;;  %v3248_v35 = vadd.f32 1.0, %v4144_v4  ;;  %4165 = vpow2.f32 %v3166_v3  ;;  %v3065_v46 = vsub.f32 0.0, %v3001_v28  ;;  %v2917_v15 = vpop.xlane.xlu0 %2916 }
 0x35d   : > { %v4148_v53 = vpop.eup %4147  ;;  %3367 = vst.msk [vmem:[%s5596_s17 + $0x100] sm:$0xff] %vm3334_vm1, %v4146_v23  ;;  %4167 = vrcp.f32 %v3243_v48  ;;  %v3178_v42 = vmul.f32 1.442695, %v3064_v62  ;;  %v2998_v26 = vadd.f32 %v5576_v37, %v2917_v15  ;;  %v2919_v5 = vpop.xlane.xlu1 %2918 }
 0x35e   : > { %v4150_v36 = vpop.eup %4149  ;;  %3368 = vst.msk [vmem:[%s5596_s17 + $0x108] sm:$0xff] %vm3334_vm1, %v4148_v53  ;;  %4169 = vrcp.f32 %v3248_v35  ;;  %v3180_v18 = vmul.f32 1.442695, %v3065_v46  ;;  %v2999_v20 = vadd.f32 %v5576_v37, %v2919_v5 }
 0x35f   : > { %v4152_v16 = vpop.eup %4151  ;;  %3373 = vst.msk [vmem:[%s5596_s17 + $0x130] sm:$0xff] %vm3334_vm1, %v4150_v36  ;;  %4171 = vpow2.f32 %v3168_v33  ;;  %v3062_v2 = vsub.f32 0.0, %v2998_v26 }
 0x360   : > { %v4154_v44 = vpop.eup %4153  ;;  %v3249_v34 = vadd.f32 1.0, %v4152_v16  ;;  %4173 = vpow2.f32 %v3178_v42  ;;  %v3063_v13 = vsub.f32 0.0, %v2999_v20  ;;  %v2929_v30 = vpop.xlane.xlu0 %2928 }
 0x361   : > { %v4156_v11 = vpop.eup %4155  ;;  %v3246_v1 = vadd.f32 1.0, %v4154_v44  ;;  %4175 = vpow2.f32 %v3180_v18  ;;  %v3174_v29 = vmul.f32 1.442695, %v3062_v2  ;;  %v3004_v39 = vadd.f32 %v5576_v37, %v2929_v30  ;;  %v2931_v0 = vpop.xlane.xlu1 %2930 }
 0x362   : > { %v4158_v27 = vpop.eup %4157  ;;  %3374 = vst.msk [vmem:[%s5596_s17 + $0x138] sm:$0xff] %vm3334_vm1, %v4156_v11  ;;  %4177 = vrcp.f32 %v3249_v34  ;;  %v3176_v57 = vmul.f32 1.442695, %v3063_v13  ;;  %v3005_v55 = vadd.f32 %v5576_v37, %v2931_v0 }
 0x363   : > { %v4160_v17 = vpop.eup %4159  ;;  %3371 = vst.msk [vmem:[%s5596_s17 + $0x120] sm:$0xff] %vm3334_vm1, %v4158_v27  ;;  %4179 = vrcp.f32 %v3246_v1  ;;  %v3068_v31 = vsub.f32 0.0, %v3004_v39 }
 0x364   : > { %v4162_v32 = vpop.eup %4161  ;;  %v3247_v54 = vadd.f32 1.0, %v4160_v17  ;;  %4181 = vpow2.f32 %v3174_v29  ;;  %v3069_v49 = vsub.f32 0.0, %v3005_v55  ;;  %v2925_v14 = vpop.xlane.xlu0 %2924 }
 0x365   : > { %v4164_v10 = vpop.eup %4163  ;;  %v3252_v61 = vadd.f32 1.0, %v4162_v32  ;;  %4183 = vpow2.f32 %v3176_v57  ;;  %v3002_v56 = vadd.f32 %v5576_v37, %v2925_v14  ;;  %v2927_v7 = vpop.xlane.xlu1 %2926  ;;  %v3186_v58 = vmul.f32 1.442695, %v3068_v31 }
 0x366   : > { %v4166_v41 = vpop.eup %4165  ;;  %4185 = vrcp.f32 %v3247_v54  ;;  %v3253_v24 = vadd.f32 1.0, %v4164_v10  ;;  %v3003_v21 = vadd.f32 %v5576_v37, %v2927_v7  ;;  %v3188_v50 = vmul.f32 1.442695, %v3069_v49 }
 0x367   : > { %v4168_v43 = vpop.eup %4167  ;;  %4187 = vrcp.f32 %v3252_v61  ;;  %v3250_v8 = vadd.f32 1.0, %v4166_v41  ;;  %v3066_v60 = vsub.f32 0.0, %v3002_v56 }
 0x368   : > { %v4170_v47 = vpop.eup %4169  ;;  %3372 = vst.msk [vmem:[%s5596_s17 + $0x128] sm:$0xff] %vm3334_vm1, %v4168_v43  ;;  %4189 = vrcp.f32 %v3253_v24  ;;  %v3067_v25 = vsub.f32 0.0, %v3003_v21  ;;  %v2937_v6 = vpop.xlane.xlu0 %2936 }
 0x369   : > { %v4172_v59 = vpop.eup %4171  ;;  %3377 = vst.msk [vmem:[%s5596_s17 + $0x150] sm:$0xff] %vm3334_vm1, %v4170_v47  ;;  %4191 = vrcp.f32 %v3250_v8  ;;  %v3008_v45 = vadd.f32 %v5576_v37, %v2937_v6  ;;  %v2939_v40 = vpop.xlane.xlu1 %2938  ;;  %v3182_v3 = vmul.f32 1.442695, %v3066_v60 }
 0x36a   : > { %v4174_v63 = vpop.eup %4173  ;;  %v3251_v52 = vadd.f32 1.0, %v4172_v59  ;;  %4193 = vpow2.f32 %v3186_v58  ;;  %v3009_v9 = vadd.f32 %v5576_v37, %v2939_v40  ;;  %v3184_v28 = vmul.f32 1.442695, %v3067_v25 }
 0x36b   : > { %v4176_v51 = vpop.eup %4175  ;;  %v3256_v38 = vadd.f32 1.0, %v4174_v63  ;;  %4195 = vpow2.f32 %v3188_v50  ;;  %v3072_v22 = vsub.f32 0.0, %v3008_v45 }
 0x36c   : > { %v4178_v19 = vpop.eup %4177  ;;  %4197 = vrcp.f32 %v3251_v52  ;;  %v3257_v12 = vadd.f32 1.0, %v4176_v51  ;;  %v3073_v4 = vsub.f32 0.0, %v3009_v9  ;;  %v2933_v48 = vpop.xlane.xlu0 %2932 }
 0x36d   : > { %v4180_v33 = vpop.eup %4179  ;;  %3378 = vst.msk [vmem:[%s5596_s17 + $0x158] sm:$0xff] %vm3334_vm1, %v4178_v19  ;;  %4199 = vrcp.f32 %v3256_v38  ;;  %v3006_v62 = vadd.f32 %v5576_v37, %v2933_v48  ;;  %v2935_v23 = vpop.xlane.xlu1 %2934  ;;  %v3194_v42 = vmul.f32 1.442695, %v3072_v22 }
 0x36e   : > { %v4182_v35 = vpop.eup %4181  ;;  %3375 = vst.msk [vmem:[%s5596_s17 + $0x140] sm:$0xff] %vm3334_vm1, %v4180_v33  ;;  %4201 = vrcp.f32 %v3257_v12  ;;  %v3007_v46 = vadd.f32 %v5576_v37, %v2935_v23  ;;  %v3196_v18 = vmul.f32 1.442695, %v3073_v4 }
 0x36f   : > { %v4184_v15 = vpop.eup %4183  ;;  %v3254_v53 = vadd.f32 1.0, %v4182_v35  ;;  %4203 = vpow2.f32 %v3182_v3  ;;  %v3070_v26 = vsub.f32 0.0, %v3006_v62 }
 0x370   : > { %v4186_v5 = vpop.eup %4185  ;;  %v3255_v36 = vadd.f32 1.0, %v4184_v15  ;;  %4205 = vpow2.f32 %v3184_v28  ;;  %v3071_v20 = vsub.f32 0.0, %v3007_v46  ;;  %v2941_v16 = vpop.xlane.xlu0 %2940 }
 0x371   : > { %v4188_v2 = vpop.eup %4187  ;;  %3376 = vst.msk [vmem:[%s5596_s17 + $0x148] sm:$0xff] %vm3334_vm1, %v4186_v5  ;;  %4207 = vrcp.f32 %v3254_v53  ;;  %v3190_v44 = vmul.f32 1.442695, %v3070_v26  ;;  %v3010_v34 = vadd.f32 %v5576_v37, %v2941_v16 }
 0x372   : > { %v4190_v13 = vpop.eup %4189  ;;  %3381 = vst.msk [vmem:[%s5596_s17 + $0x170] sm:$0xff] %vm3334_vm1, %v4188_v2  ;;  %4209 = vrcp.f32 %v3255_v36  ;;  %v3192_v30 = vmul.f32 1.442695, %v3071_v20  ;;  %v2943_v11 = vpop.xlane.xlu1 %2942 }
 0x373   : > { %v4192_v1 = vpop.eup %4191  ;;  %3382 = vst.msk [vmem:[%s5596_s17 + $0x178] sm:$0xff] %vm3334_vm1, %v4190_v13  ;;  %4211 = vpow2.f32 %v3194_v42  ;;  %v3074_v29 = vsub.f32 0.0, %v3010_v34  ;;  %v3011_v39 = vadd.f32 %v5576_v37, %v2943_v11 }
 0x374   : > { %v4194_v0 = vpop.eup %4193  ;;  %3379 = vst.msk [vmem:[%s5596_s17 + $0x160] sm:$0xff] %vm3334_vm1, %v4192_v1  ;;  %4213 = vpow2.f32 %v3196_v18  ;;  %v2945_v27 = vpop.xlane.xlu0 %2944 }
 0x375   : > { %v4196_v57 = vpop.eup %4195  ;;  %v3260_v55 = vadd.f32 1.0, %v4194_v0  ;;  %4215 = vpow2.f32 %v3190_v44  ;;  %v3198_v17 = vmul.f32 1.442695, %v3074_v29  ;;  %v3075_v31 = vsub.f32 0.0, %v3011_v39 }
 0x376   : > { %v4198_v32 = vpop.eup %4197  ;;  %v3261_v54 = vadd.f32 1.0, %v4196_v57  ;;  %4217 = vpow2.f32 %v3192_v30  ;;  %v3012_v49 = vadd.f32 %v5576_v37, %v2945_v27  ;;  %v2947_v14 = vpop.xlane.xlu1 %2946 }
 0x377   : > { %v4200_v10 = vpop.eup %4199  ;;  %3380 = vst.msk [vmem:[%s5596_s17 + $0x168] sm:$0xff] %vm3334_vm1, %v4198_v32  ;;  %4219 = vrcp.f32 %v3260_v55  ;;  %v3200_v61 = vmul.f32 1.442695, %v3075_v31  ;;  %v3013_v56 = vadd.f32 %v5576_v37, %v2947_v14 }
 0x378   : > { %v4202_v7 = vpop.eup %4201  ;;  %3385 = vst.msk [vmem:[%s5596_s17 + $0x190] sm:$0xff] %vm3334_vm1, %v4200_v10  ;;  %4221 = vrcp.f32 %v3261_v54  ;;  %v3076_v41 = vsub.f32 0.0, %v3012_v49 }
 0x379   : > { %v4204_v24 = vpop.eup %4203  ;;  %3386 = vst.msk [vmem:[%s5596_s17 + $0x198] sm:$0xff] %vm3334_vm1, %v4202_v7  ;;  %4223 = vpow2.f32 %v3198_v17  ;;  %v3077_v58 = vsub.f32 0.0, %v3013_v56 }
 0x37a   : > { %v4206_v21 = vpop.eup %4205  ;;  %v3258_v43 = vadd.f32 1.0, %v4204_v24  ;;  %4225 = vpow2.f32 %v3200_v61  ;;  %v3202_v8 = vmul.f32 1.442695, %v3076_v41 }
 0x37b   : > { %v4208_v50 = vpop.eup %4207  ;;  %v3259_v60 = vadd.f32 1.0, %v4206_v21  ;;  %v3204_v47 = vmul.f32 1.442695, %v3077_v58 }
 0x37c   : > { %v4210_v37 = vpop.eup %4209  ;;  %3383 = vst.msk [vmem:[%s5596_s17 + $0x180] sm:$0xff] %vm3334_vm1, %v4208_v50  ;;  %4227 = vrcp.f32 %v3258_v43 }
 0x37d   : > { %v4212_v25 = vpop.eup %4211  ;;  %3384 = vst.msk [vmem:[%s5596_s17 + $0x188] sm:$0xff] %vm3334_vm1, %v4210_v37  ;;  %4229 = vrcp.f32 %v3259_v60 }
 0x37e   : > { %v4214_v6 = vpop.eup %4213  ;;  %v3264_v59 = vadd.f32 1.0, %v4212_v25  ;;  %4231 = vpow2.f32 %v3202_v8 }
 0x37f   : > { %v4216_v45 = vpop.eup %4215  ;;  %v3265_v40 = vadd.f32 1.0, %v4214_v6  ;;  %4233 = vpow2.f32 %v3204_v47 }
 0x380   : > { %v4218_v63 = vpop.eup %4217  ;;  %4235 = vrcp.f32 %v3264_v59  ;;  %v3262_v52 = vadd.f32 1.0, %v4216_v45 }
 0x381   : > { %v4220_v9 = vpop.eup %4219  ;;  %4237 = vrcp.f32 %v3265_v40  ;;  %v3263_v51 = vadd.f32 1.0, %v4218_v63 }
 0x382   : > { %v4222_v38 = vpop.eup %4221  ;;  %3389 = vst.msk [vmem:[%s5596_s17 + $0x1b0] sm:$0xff] %vm3334_vm1, %v4220_v9  ;;  %4239 = vrcp.f32 %v3262_v52 }
 0x383   : > { %v4224_v3 = vpop.eup %4223  ;;  %3390 = vst.msk [vmem:[%s5596_s17 + $0x1b8] sm:$0xff] %vm3334_vm1, %v4222_v38  ;;  %4241 = vrcp.f32 %v3263_v51 }
 0x384   : > { %v4226_v22 = vpop.eup %4225  ;;  %v3266_v19 = vadd.f32 1.0, %v4224_v3 }
 0x385   : > { %v3267_v12 = vadd.f32 1.0, %v4226_v22 }
 0x386   : > { %v4228_v28 = vpop.eup %4227  ;;  %4243 = vrcp.f32 %v3266_v19 }
 0x387   : > { %v4230_v4 = vpop.eup %4229  ;;  %3387 = vst.msk [vmem:[%s5596_s17 + $0x1a0] sm:$0xff] %vm3334_vm1, %v4228_v28  ;;  %4245 = vrcp.f32 %v3267_v12 }
 0x388   : > { %v4232_v48 = vpop.eup %4231  ;;  %3388 = vst.msk [vmem:[%s5596_s17 + $0x1a8] sm:$0xff] %vm3334_vm1, %v4230_v4 }
 0x389   : > { %v4234_v33 = vpop.eup %4233  ;;  %v3268_v62 = vadd.f32 1.0, %v4232_v48 }
 0x38a   : > { %v4236_v23 = vpop.eup %4235  ;;  %v3269_v35 = vadd.f32 1.0, %v4234_v33 }
 0x38b   : > { %v4238_v46 = vpop.eup %4237  ;;  %3393 = vst.msk [vmem:[%s5596_s17 + $0x1d0] sm:$0xff] %vm3334_vm1, %v4236_v23  ;;  %4247 = vrcp.f32 %v3268_v62 }
 0x38c   : > { %v4240_v15 = vpop.eup %4239  ;;  %3394 = vst.msk [vmem:[%s5596_s17 + $0x1d8] sm:$0xff] %vm3334_vm1, %v4238_v46  ;;  %4249 = vrcp.f32 %v3269_v35 }
 0x38d   : > { %v4242_v53 = vpop.eup %4241  ;;  %3391 = vst.msk [vmem:[%s5596_s17 + $0x1c0] sm:$0xff] %vm3334_vm1, %v4240_v15 }
 0x38e   : > { %3392 = vst.msk [vmem:[%s5596_s17 + $0x1c8] sm:$0xff] %vm3334_vm1, %v4242_v53 }
 0x390   : > { %v4244_v42 = vpop.eup %4243 }
 0x391   : > { %v4246_v26 = vpop.eup %4245  ;;  %3395 = vst.msk [vmem:[%s5596_s17 + $0x1e0] sm:$0xff] %vm3334_vm1, %v4244_v42 }
 0x392   : > { %3396 = vst.msk [vmem:[%s5596_s17 + $0x1e8] sm:$0xff] %vm3334_vm1, %v4246_v26 }
 0x395   : > { %v4248_v5 = vpop.eup %4247 }
 0x396   : > { %v4250_v36 = vpop.eup %4249  ;;  %3397 = vst.msk [vmem:[%s5596_s17 + $0x1f0] sm:$0xff] %vm3334_vm1, %v4248_v5 }
 0x397   : > { %3398 = vst.msk [vmem:[%s5596_s17 + $0x1f8] sm:$0xff] %vm3334_vm1, %v4250_v36 }
 0x398 PF: > { %s16_s20 = sadd.s32 1, %s4259_s20  }
 0x399   : > { %p13_p4 = scmp.ge.s32.totalorder %s16_s20, 4  }
 0x39b   :  { %15 = sbr.rel (!%p13_p4) target bundleno = 2 (0x2), region = 70 }

</bundles_post_ra>
